<compile_context>
chip_gen: v6e
topology: v6e:2x2x1
jax: 0.10.0
libtpu: 0.0.40
codegen_flags: <defaults>
</compile_context>

<pallas_src>
import functools

import jax
import jax.numpy as jnp
from jax.experimental import pallas as pl
from jax.experimental.pallas import tpu as pltpu


def _round_up(x, m):
    return ((x + m - 1) // m) * m


def _num_tensorcores():
    """Best-effort TensorCore count (1 on v5e/v6e, 2 on v7x). Falls back to 1."""
    try:
        info = pltpu.get_tpu_info()
        for attr in ("num_cores", "core_count", "num_tensorcores", "tensorcore_count"):
            n = getattr(info, attr, None)
            if isinstance(n, int) and n > 0:
                return n
    except Exception:
        pass
    try:
        n = getattr(jax.devices()[0], "num_cores", None)
        if isinstance(n, int) and n > 0:
            return n
    except Exception:
        pass
    return 1


def qnet_kernel(x_ref, w1_ref, b1_ref, w2_ref, b2_ref, out_ref):
    """One batch tile of relu(x @ w1 + b1) @ w2 + b2 (lane-dense padded output).

    Per-tile shapes:
      x:   (bt, S)        S tiny (e.g. 4)
      w1:  (S, H)
      b1:  (1, H)
      w2:  (H, OUTP)      OUTP = action_dim zero-padded to 128 lanes
      b2:  (1, OUTP)
      out: (bt, OUTP)
    """
    # fc1 on the MXU (f32 path via HIGHEST precision -> matches f32 reference).
    h = jnp.dot(
        x_ref[...], w1_ref[...],
        preferred_element_type=jnp.float32,
        precision=jax.lax.Precision.HIGHEST,
    ) + b1_ref[...]
    h = jnp.maximum(h, 0.0)  # ReLU on the VPU

    # fc2 on the MXU with a lane-dense (bt, 128) output block -> unmasked stores.
    out = jnp.dot(
        h, w2_ref[...],
        preferred_element_type=jnp.float32,
        precision=jax.lax.Precision.HIGHEST,
    ) + b2_ref[...]
    out_ref[...] = out.astype(out_ref.dtype)


@functools.partial(jax.jit, static_argnames=("block_b",))
def qnet_forward(x, w1, b1, w2, b2, *, block_b=None):
    """x: (B, state_dim). Returns (B, action_dim) Q-values."""
    B, S = x.shape
    H = w1.shape[1]
    A = w2.shape[1]

    # One grid step per TensorCore (multiple of 8 rows), capped at 256 rows so
    # the (bt, H) hidden activation keeps vreg/VMEM pressure flat; larger
    # batches strip-mine through the grid axis instead.
    if block_b is None:
        bt = min(_round_up(pl.cdiv(B, _num_tensorcores()), 8), 256)
    else:
        bt = min(_round_up(block_b, 8), _round_up(B, 8))
    n_blocks = pl.cdiv(B, bt)
    B_pad = n_blocks * bt
    x_in = x if B_pad == B else jnp.pad(x, ((0, B_pad - B), (0, 0)))

    # Lane-dense output: pad fc2 weights/bias to a 128-lane output width.
    out_w = _round_up(A, 128)
    w2_pad = w2 if out_w == A else jnp.pad(w2, ((0, 0), (0, out_w - A)))
    b2_pad = jnp.pad(b2.reshape(1, A), ((0, 0), (0, out_w - A)))
    b1_2d = b1.reshape(1, H)

    out = pl.pallas_call(
        qnet_kernel,
        out_shape=jax.ShapeDtypeStruct((B_pad, out_w), x.dtype),
        grid=(n_blocks,),
        in_specs=[
            pl.BlockSpec((bt, S), lambda i: (i, 0)),       # batch-tiled activations
            pl.BlockSpec((S, H), lambda i: (0, 0)),        # weights VMEM-resident
            pl.BlockSpec((1, H), lambda i: (0, 0)),
            pl.BlockSpec((H, out_w), lambda i: (0, 0)),
            pl.BlockSpec((1, out_w), lambda i: (0, 0)),
        ],
        out_specs=pl.BlockSpec((bt, out_w), lambda i: (i, 0)),
        compiler_params=pltpu.CompilerParams(
            dimension_semantics=("parallel",)),            # megacore-shardable batch
    )(x_in, w1, b1_2d, w2_pad, b2_pad)

    return out[:B, :A]


def init_qnet_params(key, state_dim, hidden_dim, action_dim, dtype=jnp.float32):
    """Deterministic init mimicking torch.nn.Linear default (uniform +-1/sqrt(fan_in))."""
    k1, k2, k3, k4 = jax.random.split(key, 4)
    bound1 = 1.0 / float(state_dim) ** 0.5
    bound2 = 1.0 / float(hidden_dim) ** 0.5
    # w1 stored as (in, out) == torch fc1.weight.T ; w2 stored as (in, out) == torch fc2.weight.T
    w1 = jax.random.uniform(k1, (state_dim, hidden_dim), dtype, -bound1, bound1)
    b1 = jax.random.uniform(k2, (hidden_dim,), dtype, -bound1, bound1)
    w2 = jax.random.uniform(k3, (hidden_dim, action_dim), dtype, -bound2, bound2)
    b2 = jax.random.uniform(k4, (action_dim,), dtype, -bound2, bound2)
    return w1, b1, w2, b2


def qnet_reference(x, w1, b1, w2, b2):
    h = jnp.maximum(x @ w1 + b1, 0.0)
    return h @ w2 + b2


if __name__ == "__main__":
    # CartPole-style DQN shapes: state_dim=4, hidden_dim=128, action_dim=2.
    # Batch = 256 (a full replay batch) -> one grid step on v5e/v6e, two on v7x.
    batch, state_dim, hidden_dim, action_dim = 256, 4, 128, 2

    key = jax.random.PRNGKey(0)
    kx, kp = jax.random.split(key)
    x = jax.random.normal(kx, (batch, state_dim), jnp.float32)
    w1, b1, w2, b2 = init_qnet_params(kp, state_dim, hidden_dim, action_dim)

    out = qnet_forward(x, w1, b1, w2, b2)
    out = jax.block_until_ready(out)

    ref = qnet_reference(x, w1, b1, w2, b2)
    assert out.shape == (batch, action_dim)
    assert jnp.allclose(out, ref, atol=2e-5, rtol=1e-5), "mismatch vs reference"

    print("KERNEL_OK")
</pallas_src>

<mosaic_0001>
module attributes {stable_mosaic.version = 11 : i64} {
  func.func @qnet_kernel(%arg0: i32, %arg1: memref<256x4xf32, #tpu.memory_space<vmem>>, %arg2: memref<4x128xf32, #tpu.memory_space<vmem>>, %arg3: memref<1x128xf32, #tpu.memory_space<vmem>>, %arg4: memref<128x128xf32, #tpu.memory_space<vmem>>, %arg5: memref<1x128xf32, #tpu.memory_space<vmem>>, %arg6: memref<256x128xf32, #tpu.memory_space<vmem>>) attributes {dimension_semantics = [#tpu.dimension_semantics<parallel>], iteration_bounds = array<i64: 1>, scalar_prefetch = 0 : i64, scratch_operands = 0 : i64, tpu.core_type = #tpu.core_type<tc>, window_params = [{transform_indices = @transform_0, window_bounds = array<i64: 256, 4>}, {pipeline_mode = #tpu.pipeline_mode<synchronous>, transform_indices = @transform_1, window_bounds = array<i64: 4, 128>}, {pipeline_mode = #tpu.pipeline_mode<synchronous>, transform_indices = @transform_2, window_bounds = array<i64: 1, 128>}, {pipeline_mode = #tpu.pipeline_mode<synchronous>, transform_indices = @transform_3, window_bounds = array<i64: 128, 128>}, {pipeline_mode = #tpu.pipeline_mode<synchronous>, transform_indices = @transform_4, window_bounds = array<i64: 1, 128>}, {transform_indices = @transform_5, window_bounds = array<i64: 256, 128>}]} {
    %c0 = arith.constant 0 : index
    %c0_0 = arith.constant 0 : index
    %0 = vector.load %arg1[%c0, %c0_0] : memref<256x4xf32, #tpu.memory_space<vmem>>, vector<256x4xf32>
    %c0_1 = arith.constant 0 : index
    %c0_2 = arith.constant 0 : index
    %1 = vector.load %arg2[%c0_1, %c0_2] : memref<4x128xf32, #tpu.memory_space<vmem>>, vector<4x128xf32>
    %cst = arith.constant dense<0.000000e+00> : vector<256x128xf32>
    %2 = tpu.matmul %0, %1, %cst {dimension_numbers = #tpu.dot_dimension_numbers<[1], [0], [0], [1], [0, 0, 1, 1], [], []>, precision = #tpu.contract_precision<fp32>} : vector<256x4xf32>, vector<4x128xf32>, vector<256x128xf32> -> vector<256x128xf32>
    %c0_3 = arith.constant 0 : index
    %c0_4 = arith.constant 0 : index
    %3 = vector.load %arg3[%c0_3, %c0_4] : memref<1x128xf32, #tpu.memory_space<vmem>>, vector<1x128xf32>
    %4 = vector.broadcast %3 : vector<1x128xf32> to vector<256x128xf32>
    %5 = arith.addf %2, %4 : vector<256x128xf32>
    %cst_5 = arith.constant 0.000000e+00 : f32
    %6 = vector.broadcast %cst_5 : f32 to vector<256x128xf32>
    %7 = arith.maximumf %5, %6 : vector<256x128xf32>
    %c0_6 = arith.constant 0 : index
    %c0_7 = arith.constant 0 : index
    %8 = vector.load %arg4[%c0_6, %c0_7] : memref<128x128xf32, #tpu.memory_space<vmem>>, vector<128x128xf32>
    %cst_8 = arith.constant dense<0.000000e+00> : vector<256x128xf32>
    %9 = tpu.matmul %7, %8, %cst_8 {dimension_numbers = #tpu.dot_dimension_numbers<[1], [0], [0], [1], [0, 0, 1, 1], [], []>, precision = #tpu.contract_precision<fp32>} : vector<256x128xf32>, vector<128x128xf32>, vector<256x128xf32> -> vector<256x128xf32>
    %c0_9 = arith.constant 0 : index
    %c0_10 = arith.constant 0 : index
    %10 = vector.load %arg5[%c0_9, %c0_10] : memref<1x128xf32, #tpu.memory_space<vmem>>, vector<1x128xf32>
    %11 = vector.broadcast %10 : vector<1x128xf32> to vector<256x128xf32>
    %12 = arith.addf %9, %11 : vector<256x128xf32>
    %c0_11 = arith.constant 0 : index
    %c0_12 = arith.constant 0 : index
    %13 = vector.load %arg6[%c0_11, %c0_12] : memref<256x128xf32, #tpu.memory_space<vmem>>, vector<256x128xf32>
    tpu.vector_store %arg6[%c0_11, %c0_12], %12 {strides = array<i32>} : memref<256x128xf32, #tpu.memory_space<vmem>>, vector<256x128xf32>,
    return
  }
  func.func @transform_0(%arg0: i32) -> (i32, i32) {
    %c0_i32 = arith.constant 0 : i32
    %c0_i32_0 = arith.constant 0 : i32
    return %arg0, %c0_i32 : i32, i32
  }
  func.func @transform_1(%arg0: i32) -> (i32, i32) {
    %c0_i32 = arith.constant 0 : i32
    %c0_i32_0 = arith.constant 0 : i32
    %c0_i32_1 = arith.constant 0 : i32
    return %c0_i32, %c0_i32_0 : i32, i32
  }
  func.func @transform_2(%arg0: i32) -> (i32, i32) {
    %c0_i32 = arith.constant 0 : i32
    %c0_i32_0 = arith.constant 0 : i32
    %c0_i32_1 = arith.constant 0 : i32
    return %c0_i32, %c0_i32_0 : i32, i32
  }
  func.func @transform_3(%arg0: i32) -> (i32, i32) {
    %c0_i32 = arith.constant 0 : i32
    %c0_i32_0 = arith.constant 0 : i32
    %c0_i32_1 = arith.constant 0 : i32
    return %c0_i32, %c0_i32_0 : i32, i32
  }
  func.func @transform_4(%arg0: i32) -> (i32, i32) {
    %c0_i32 = arith.constant 0 : i32
    %c0_i32_0 = arith.constant 0 : i32
    %c0_i32_1 = arith.constant 0 : i32
    return %c0_i32, %c0_i32_0 : i32, i32
  }
  func.func @transform_5(%arg0: i32) -> (i32, i32) {
    %c0_i32 = arith.constant 0 : i32
    %c0_i32_0 = arith.constant 0 : i32
    return %arg0, %c0_i32 : i32, i32
  }
}

</mosaic_0001>

<bundles_post_ra>
// kernel: qnet_forward.1
= control target key start
LH: loop header
LB: loop body
LE: loop exit
PB: predicated region body
PF: predicated region fallthrough
CT: control target
= control target key end

     0   :  { %vm157_vm0 = vcmask 1043456   ;;  %vm60_vm1 = vcmask 31744   ;;  %s7555_s1 = inlined_call_operand.vmem [shape: f32[4,128], index: 1, kind: input, shape index: {}]   ;;  %s7556_s0 = inlined_call_operand.vmem [shape: f32[256,4], index: 0, kind: input, shape index: {}]   ;;  %s7557_s3 = inlined_call_operand.vmem [shape: f32[128,128], index: 3, kind: input, shape index: {}]   ;;  %s7558_s2 = inlined_call_operand.vmem [shape: f32[1,128], index: 2, kind: input, shape index: {}]   ;;  %s7559_s4 = inlined_call_operand.vmem [shape: f32[1,128], index: 4, kind: input, shape index: {}]   ;;  %s7560_s5 = inlined_call_operand.vmem [shape: f32[256,128], index: 5, kind: output, shape index: {}]  }
   0x1   :  { %v52_v0 = vld [vmem:[%s7555_s1] sm:$0xf]  ;;  %v21_v2 = vld [vmem:[%s7556_s0 + $0x8] sm:$0xff]  ;;  %v22_v6 = vld [vmem:[%s7556_s0 + $0x10] sm:$0xff] }
   0x2   :  { %v20_v1 = vld [vmem:[%s7556_s0] sm:$0xff]  ;;  %v159_v3 = vsel %vm157_vm0, %v52_v0, 0  ;;  %v65_v5 = vsel %vm60_vm1, %v21_v2, 0  ;;  %v23_v7 = vld [vmem:[%s7556_s0 + $0x18] sm:$0xff]  ;;  %v68_v12 = vsel %vm60_vm1, %v22_v6, 0  ;;  %v25_v13 = vld [vmem:[%s7556_s0 + $0x28] sm:$0xff] }
   0x3   :  { %v62_v4 = vsel %vm60_vm1, %v20_v1, 0  ;;  %v24_v8 = vld [vmem:[%s7556_s0 + $0x20] sm:$0xff]  ;;  %v5323_v9 = vand.u32 4294901760, %v159_v3  ;;  %v5327_v11 = vand.u32 4294901760, %v65_v5  ;;  %v26_v14 = vld [vmem:[%s7556_s0 + $0x30] sm:$0xff]  ;;  %v5336_v15 = vand.u32 4294901760, %v68_v12 }
   0x4   :  { %v5325_v10 = vand.u32 4294901760, %v62_v4  ;;  %v71_v16 = vsel %vm60_vm1, %v23_v7, 0  ;;  %v74_v17 = vsel %vm60_vm1, %v24_v8, 0  ;;  %v77_v18 = vsel %vm60_vm1, %v25_v13, 0  ;;  %v27_v43 = vld [vmem:[%s7556_s0 + $0x38] sm:$0xff]  ;;  %v28_v44 = vld [vmem:[%s7556_s0 + $0x40] sm:$0xff] }
   0x5   :  { %4493 = vmatprep.subr.mxu0 %v5323_v9  ;;  %v579_v20 = vsub.f32 %v159_v3, %v5323_v9  ;;  %v5347_v21 = vsub.f32 %v65_v5, %v5327_v11  ;;  %v5350_v22 = vand.u32 4294901760, %v71_v16  ;;  %v5354_v23 = vsub.f32 %v68_v12, %v5336_v15  ;;  %v29_v45 = vld [vmem:[%s7556_s0 + $0x48] sm:$0xff]  ;;  %v30_v54 = vld [vmem:[%s7556_s0 + $0x50] sm:$0xff]  ;;  %v31_v55 = vld [vmem:[%s7556_s0 + $0x58] sm:$0xff] }
   0x6   :  { %v5343_v19 = vsub.f32 %v62_v4, %v5325_v10  ;;  %4545 = vmatprep.mubr.f32.mxu1 %v5325_v10  ;;  %4494 = vmatpush3.msra.mxu0 %v5323_v9  ;;  %v5356_v24 = vand.u32 4294901760, %v74_v17  ;;  %v5358_v25 = vand.u32 4294901760, %v77_v18  ;;  %v80_v26 = vsel %vm60_vm1, %v26_v14, 0  ;;  %v32_v0 = vld [vmem:[%s7556_s0 + $0x60] sm:$0xff]  ;;  %v33_v1 = vld [vmem:[%s7556_s0 + $0x68] sm:$0xff]  ;;  %v34_v13 = vld [vmem:[%s7556_s0 + $0x70] sm:$0xff] }
   0x7   :  { %v5362_v28 = vand.u32 4294901760, %v579_v20  ;;  %4593 = vmatprep.subr.mxu0 %v579_v20  ;;  %v7576_v29 = vand.u32 4294901760, %v5347_v21  ;;  %v5366_v30 = vsub.f32 %v71_v16, %v5350_v22  ;;  %v7574_v31 = vand.u32 4294901760, %v5354_v23 }
   0x8   :  { %v7577_v27 = vand.u32 4294901760, %v5343_v19  ;;  %v5370_v32 = vsub.f32 %v74_v17, %v5356_v24  ;;  %v5373_v33 = vsub.f32 %v77_v18, %v5358_v25  ;;  %v5375_v34 = vand.u32 4294901760, %v80_v26 }
   0x9   :  { %v581_v36 = vsub.f32 %v579_v20, %v5362_v28  ;;  %v240_v37 = vsub.f32 %v5347_v21, %v7576_v29  ;;  %v7572_v38 = vand.u32 4294901760, %v5366_v30  ;;  %v250_v39 = vsub.f32 %v5354_v23, %v7574_v31 }
   0xa   :  { %v230_v35 = vsub.f32 %v5343_v19, %v7577_v27  ;;  %v7571_v40 = vand.u32 4294901760, %v5370_v32  ;;  %v7570_v41 = vand.u32 4294901760, %v5373_v33  ;;  %v5391_v42 = vsub.f32 %v80_v26, %v5375_v34 }
   0xb   :  { %v582_v47 = vand.u32 4294901760, %v581_v36  ;;  %v241_v48 = vand.u32 4294901760, %v240_v37  ;;  %v260_v49 = vsub.f32 %v5366_v30, %v7572_v38  ;;  %v251_v50 = vand.u32 4294901760, %v250_v39 }
   0xc   :  { %v231_v46 = vand.u32 4294901760, %v230_v35  ;;  %v270_v51 = vsub.f32 %v5370_v32, %v7571_v40  ;;  %v280_v52 = vsub.f32 %v5373_v33, %v7570_v41  ;;  %v7569_v53 = vand.u32 4294901760, %v5391_v42 }
   0xd   :  { %4543 = vmatprep.subr.mxu1 %v582_v47  ;;  %v261_v56 = vand.u32 4294901760, %v260_v49  ;;  %v83_v57 = vsel %vm60_vm1, %v27_v43, 0  ;;  %v86_v58 = vsel %vm60_vm1, %v28_v44, 0  ;;  %v89_v59 = vsel %vm60_vm1, %v29_v45, 0 }
   0xe   :  { %4495 = vmatprep.mubr.f32.mxu0 %v231_v46  ;;  %4544 = vmatpush3.msra.mxu1 %v582_v47  ;;  %v271_v60 = vand.u32 4294901760, %v270_v51  ;;  %v281_v61 = vand.u32 4294901760, %v280_v52  ;;  %v290_v62 = vsub.f32 %v5391_v42, %v7569_v53  ;;  %v5424_v63 = vand.u32 4294901760, %v83_v57  ;;  %v35_v52 = vld [vmem:[%s7556_s0 + $0x78] sm:$0xff] }
   0xf   :  { %4496 = vmatmul.mubr.f32.vlgmr.msra.gmra.mxu0 %v241_v48  ;;  %4546 = vmatmul.mubr.f32.vlgmr.msra.gmra.mxu1 %v5327_v11  ;;  %v5433_v2 = vand.u32 4294901760, %v86_v58  ;;  %v5435_v3 = vand.u32 4294901760, %v89_v59  ;;  %v92_v4 = vsel %vm60_vm1, %v30_v54, 0  ;;  %v95_v5 = vsel %vm60_vm1, %v31_v55, 0 }
  0x10   :  { %7788 = vst [vmem:[#allocation2_spill] sm:$0xff] %v5424_v63  ;;  %4594 = vmatpush3.msra.mxu0 %v579_v20  ;;  %4643 = vmatprep.subr.mxu1 %v5323_v9  ;;  %v291_v6 = vand.u32 4294901760, %v290_v62  ;;  %v5441_v7 = vsub.f32 %v83_v57, %v5424_v63  ;;  %v5443_v8 = vand.u32 4294901760, %v92_v4  ;;  %v5445_v12 = vand.u32 4294901760, %v95_v5  ;;  %v38_v62 = vld [vmem:[%s7556_s0 + $0x90] sm:$0xff] }
  0x11   :  { %7789 = vst [vmem:[#allocation3_spill] sm:$0xff] %v5433_v2  ;;  %7790 = vst [vmem:[#allocation4_spill] sm:$0xff] %v5435_v3  ;;  %4498 = vmatprep.mubr.f32.mxu0 %v251_v50  ;;  %4644 = vmatpush3.msra.mxu1 %v5323_v9  ;;  %v5453_v14 = vsub.f32 %v86_v58, %v5433_v2  ;;  %v5456_v16 = vsub.f32 %v89_v59, %v5435_v3  ;;  %v98_v17 = vsel %vm60_vm1, %v32_v0, 0 }
  0x12   :  { %7791 = vst [vmem:[#allocation5_spill] sm:$0xff] %v5443_v8  ;;  %7792 = vst [vmem:[#allocation6_spill] sm:$0xff] %v5445_v12  ;;  %4548 = vmatprep.mubr.f32.mxu1 %v5336_v15  ;;  %v101_v18 = vsel %vm60_vm1, %v33_v1, 0  ;;  %v7568_v20 = vand.u32 4294901760, %v5441_v7  ;;  %v5462_v26 = vsub.f32 %v92_v4, %v5443_v8  ;;  %v5465_v35 = vsub.f32 %v95_v5, %v5445_v12 }
  0x13   :  { %4499 = vmatmul.mubr.f32.gmra.mxu0 %v261_v56  ;;  %v5467_v36 = vand.u32 4294901760, %v98_v17  ;;  %4693 = vmatprep.subr.mxu0 %v5362_v28  ;;  %v7565_v37 = vand.u32 4294901760, %v5453_v14  ;;  %v7563_v39 = vand.u32 4294901760, %v5456_v16  ;;  %v5473_v43 = vand.u32 4294901760, %v101_v18  ;;  %v36_v56 = vld [vmem:[%s7556_s0 + $0x80] sm:$0xff] }
  0x14   :  { %4549 = vmatmul.mubr.f32.gmra.mxu1 %v5350_v22  ;;  %4501 = vmatprep.mubr.f32.mxu0 %v271_v60  ;;  %v104_v44 = vsel %vm60_vm1, %v34_v13, 0  ;;  %v300_v45 = vsub.f32 %v5441_v7, %v7568_v20  ;;  %v7562_v46 = vand.u32 4294901760, %v5462_v26  ;;  %v7561_v47 = vand.u32 4294901760, %v5465_v35 }
  0x15   :  { %7793 = vst [vmem:[#allocation7_spill] sm:$0xff] %v5467_v36  ;;  %7794 = vst [vmem:[#allocation8_spill] sm:$0xff] %v5473_v43  ;;  %4551 = vmatprep.mubr.f32.mxu1 %v5356_v24  ;;  %v5483_v48 = vsub.f32 %v98_v17, %v5467_v36  ;;  %4743 = vmatprep.subr.mxu1 %v5323_v9  ;;  %v310_v49 = vsub.f32 %v5453_v14, %v7565_v37  ;;  %v5492_v51 = vand.u32 4294901760, %v104_v44  ;;  %v39_v17 = vld [vmem:[%s7556_s0 + $0x98] sm:$0xff] }
  0x16   :  { %v5490_v50 = vsub.f32 %v101_v18, %v5473_v43  ;;  %v301_v54 = vand.u32 4294901760, %v300_v45  ;;  %v320_v55 = vsub.f32 %v5456_v16, %v7563_v39  ;;  %v330_v58 = vsub.f32 %v5462_v26, %v7562_v46  ;;  %v40_v18 = vld [vmem:[%s7556_s0 + $0xa0] sm:$0xff] }
  0x17   :  { %7795 = vst [vmem:[#allocation9_spill] sm:$0xff] %v5492_v51  ;;  %4502 = vmatmul.mubr.f32.gmra.mxu0 %v281_v61  ;;  %v311_v57 = vand.u32 4294901760, %v310_v49  ;;  %v7564_v59 = vand.u32 4294901760, %v5483_v48  ;;  %v5509_v60 = vsub.f32 %v104_v44, %v5492_v51  ;;  %v37_v61 = vld [vmem:[%s7556_s0 + $0x88] sm:$0xff]  ;;  %v340_v0 = vsub.f32 %v5465_v35, %v7561_v47 }
  0x18   :  { %4552 = vmatmul.mubr.f32.gmra.mxu1 %v5358_v25  ;;  %4504 = vmatprep.mubr.f32.mxu0 %v291_v6  ;;  %v107_v1 = vsel %vm60_vm1, %v35_v52, 0  ;;  %v7566_v4 = vand.u32 4294901760, %v5490_v50  ;;  %v110_v13 = vsel %vm60_vm1, %v36_v56, 0  ;;  %v321_v44 = vand.u32 4294901760, %v320_v55 }
  0x19   :  { %4554 = vmatprep.mubr.f32.mxu1 %v5375_v34  ;;  %v7567_v5 = vand.u32 4294901760, %v5509_v60  ;;  %v5524_v6 = vand.u32 4294901760, %v107_v1  ;;  %v5533_v45 = vand.u32 4294901760, %v110_v13  ;;  %v113_v49 = vsel %vm60_vm1, %v37_v61, 0 }
  0x1a   :  { %v116_v52 = vsel %vm60_vm1, %v38_v62, 0  ;;  %v331_v56 = vand.u32 4294901760, %v330_v58  ;;  %v350_v47 = vsub.f32 %v5483_v48, %v7564_v59  ;;  %v5544_v39 = vand.u32 4294901760, %v113_v49 }
  0x1b   :  { %7796 = vst [vmem:[#allocation10_spill] sm:$0xff] %v5524_v6  ;;  %4505 = vmatmul.mubr.f32.gmra.mxu0 %v301_v54  ;;  %7797 = vst [vmem:[#allocation11_spill] sm:$0xff] %v5533_v45  ;;  %v5542_v46 = vsub.f32 %v107_v1, %v5524_v6  ;;  %v41_v54 = vld [vmem:[%s7556_s0 + $0xa8] sm:$0xff]  ;;  %v5551_v55 = vsub.f32 %v110_v13, %v5533_v45  ;;  %v119_v58 = vsel %vm60_vm1, %v39_v17, 0  ;;  %v122_v61 = vsel %vm60_vm1, %v40_v18, 0  ;;  %v42_v13 = vld [vmem:[%s7556_s0 + $0xb0] sm:$0xff] }
  0x1c   :  { %4555 = vmatmul.mubr.f32.gmra.mxu1 %v5424_v63  ;;  %4507 = vmatprep.mubr.f32.mxu0 %v311_v57  ;;  %7798 = vst [vmem:[#allocation12_spill] sm:$0xff] %v5544_v39  ;;  %v5553_v57 = vand.u32 4294901760, %v116_v52  ;;  %v341_v62 = vand.u32 4294901760, %v340_v0  ;;  %v360_v1 = vsub.f32 %v5490_v50, %v7566_v4  ;;  %v370_v59 = vsub.f32 %v5509_v60, %v7567_v5 }
  0x1d   :  { %4557 = vmatprep.mubr.f32.mxu1 %v5433_v2  ;;  %v7573_v37 = vand.u32 4294901760, %v5542_v46  ;;  %v5568_v17 = vsub.f32 %v113_v49, %v5544_v39  ;;  %v5570_v18 = vand.u32 4294901760, %v119_v58  ;;  %v125_v0 = vsel %vm60_vm1, %v41_v54, 0  ;;  %v43_v49 = vld [vmem:[%s7556_s0 + $0xb8] sm:$0xff] }
  0x1e   :  { %7799 = vst [vmem:[#allocation13_spill] sm:$0xff] %v5553_v57  ;;  %v351_v4 = vand.u32 4294901760, %v350_v47  ;;  %v7575_v5 = vand.u32 4294901760, %v5551_v55  ;;  %v5576_v20 = vsub.f32 %v116_v52, %v5553_v57  ;;  %v5578_v53 = vand.u32 4294901760, %v122_v61 }
  0x1f   :  { %4508 = vmatmul.mubr.f32.gmra.mxu0 %v321_v44  ;;  %7800 = vst [vmem:[#allocation14_spill] sm:$0xff] %v5570_v18  ;;  %v128_v44 = vsel %vm60_vm1, %v42_v13, 0  ;;  %v361_v54 = vand.u32 4294901760, %v360_v1  ;;  %v371_v41 = vand.u32 4294901760, %v370_v59  ;;  %v5585_v40 = vand.u32 4294901760, %v125_v0  ;;  %v44_v13 = vld [vmem:[%s7556_s0 + $0xc0] sm:$0xff] }
  0x20   :  { %4558 = vmatmul.mubr.f32.gmra.mxu1 %v5435_v3  ;;  %4510 = vmatprep.mubr.f32.mxu0 %v331_v56  ;;  %7801 = vst [vmem:[#allocation15_spill] sm:$0xff] %v5578_v53  ;;  %v380_v47 = vsub.f32 %v5542_v46, %v7573_v37  ;;  %v7582_v52 = vand.u32 4294901760, %v5568_v17  ;;  %v5592_v56 = vsub.f32 %v119_v58, %v5570_v18  ;;  %v5594_v38 = vand.u32 4294901760, %v128_v44  ;;  %v45_v37 = vld [vmem:[%s7556_s0 + $0xc8] sm:$0xff] }
  0x21   :  { %4560 = vmatprep.mubr.f32.mxu1 %v5443_v8  ;;  %v390_v59 = vsub.f32 %v5551_v55, %v7575_v5  ;;  %v5605_v1 = vsub.f32 %v122_v61, %v5578_v53  ;;  %v131_v58 = vsel %vm60_vm1, %v43_v49, 0  ;;  %v5613_v31 = vsub.f32 %v125_v0, %v5585_v40  ;;  %v46_v61 = vld [vmem:[%s7556_s0 + $0xd0] sm:$0xff] }
  0x22   :  { %v5618_v5 = vand.u32 4294901760, %v131_v58  ;;  %v134_v29 = vsel %vm60_vm1, %v44_v13, 0  ;;  %v381_v49 = vand.u32 4294901760, %v380_v47  ;;  %v400_v27 = vsub.f32 %v5568_v17, %v7582_v52  ;;  %v47_v52 = vld [vmem:[%s7556_s0 + $0xd8] sm:$0xff] }
  0x23   :  { %4511 = vmatmul.mubr.f32.gmra.mxu0 %v341_v62  ;;  %v5628_v62 = vand.u32 4294901760, %v134_v29  ;;  %v7802_v13 = vand.u32 4294901760, %v5576_v20  ;;  %v140_v47 = vsel %vm60_vm1, %v46_v61, 0 }
  0x24   :  { %4561 = vmatmul.mubr.f32.gmra.mxu1 %v5445_v12  ;;  %4513 = vmatprep.mubr.f32.mxu0 %v351_v4  ;;  %v5616_v4 = vsub.f32 %v128_v44, %v5594_v38  ;;  %v391_v44 = vand.u32 4294901760, %v390_v59  ;;  %v5644_v59 = vsub.f32 %v131_v58, %v5618_v5  ;;  %v7803_v12 = vand.u32 4294901760, %v5592_v56 }
  0x25   :  { %4563 = vmatprep.mubr.f32.mxu1 %v5467_v36  ;;  %v410_v36 = vsub.f32 %v5576_v20, %v7802_v13  ;;  %v48_v13 = vld [vmem:[%s7556_s0 + $0xe0] sm:$0xff]  ;;  %v5661_v8 = vand.u32 4294901760, %v140_v47 }
  0x26   :  { %v420_v61 = vsub.f32 %v5592_v56, %v7803_v12  ;;  %v146_v12 = vsel %vm60_vm1, %v48_v13, 0 }
  0x27   :  { %4514 = vmatmul.mubr.f32.gmra.mxu0 %v361_v54  ;;  %v137_v54 = vsel %vm60_vm1, %v45_v37, 0  ;;  %v401_v37 = vand.u32 4294901760, %v400_v27  ;;  %v411_v58 = vand.u32 4294901760, %v410_v36  ;;  %v143_v27 = vsel %vm60_vm1, %v47_v52, 0  ;;  %v50_v52 = vld [vmem:[%s7556_s0 + $0xf0] sm:$0xff] }
  0x28   :  { %4564 = vmatmul.mubr.f32.gmra.mxu1 %v5473_v43  ;;  %4516 = vmatprep.mubr.f32.mxu0 %v371_v41  ;;  %v5655_v43 = vand.u32 4294901760, %v137_v54  ;;  %v7804_v41 = vand.u32 4294901760, %v5605_v1  ;;  %v421_v13 = vand.u32 4294901760, %v420_v61  ;;  %v5683_v2 = vand.u32 4294901760, %v143_v27 }
  0x29   :  { %4566 = vmatprep.mubr.f32.mxu1 %v5492_v51  ;;  %v5653_v51 = vsub.f32 %v134_v29, %v5628_v62  ;;  %v49_v29 = vld [vmem:[%s7556_s0 + $0xe8] sm:$0xff] }
  0x2a   :  { %v430_v0 = vsub.f32 %v5605_v1, %v7804_v41  ;;  %v5681_v3 = vsub.f32 %v137_v54, %v5655_v43  ;;  %v149_v63 = vsel %vm60_vm1, %v49_v29, 0  ;;  %v51_v54 = vld [vmem:[%s7556_s0 + $0xf8] sm:$0xff] }
  0x2b   :  { %4517 = vmatmul.mubr.f32.gmra.mxu0 %v381_v49  ;;  %v7805_v49 = vand.u32 4294901760, %v5613_v31 }
  0x2c   :  { %4567 = vmatmul.mubr.f32.gmra.mxu1 %v5524_v6  ;;  %4519 = vmatprep.mubr.f32.mxu0 %v391_v44  ;;  %v7806_v44 = vand.u32 4294901760, %v5616_v4  ;;  %v5689_v6 = vand.u32 4294901760, %v146_v12  ;;  %v7607_v29 = vand.u32 4294901760, %v5681_v3 }
  0x2d   :  { %4569 = vmatprep.mubr.f32.mxu1 %v5533_v45  ;;  %v440_v36 = vsub.f32 %v5613_v31, %v7805_v49  ;;  %v431_v49 = vand.u32 4294901760, %v430_v0 }
  0x2e   :  { %v450_v41 = vsub.f32 %v5616_v4, %v7806_v44  ;;  %v5687_v44 = vsub.f32 %v140_v47, %v5661_v8  ;;  %v7808_v47 = vand.u32 4294901760, %v5653_v51 }
  0x2f   :  { %4520 = vmatmul.mubr.f32.gmra.mxu0 %v401_v37  ;;  %v152_v37 = vsel %vm60_vm1, %v50_v52, 0  ;;  %v441_v61 = vand.u32 4294901760, %v440_v36  ;;  %v5707_v52 = vand.u32 4294901760, %v149_v63 }
  0x30   :  { %4570 = vmatmul.mubr.f32.gmra.mxu1 %v5544_v39  ;;  %4522 = vmatprep.mubr.f32.mxu0 %v411_v58  ;;  %v451_v45 = vand.u32 4294901760, %v450_v41  ;;  %v7807_v58 = vand.u32 4294901760, %v5644_v59  ;;  %v470_v39 = vsub.f32 %v5653_v51, %v7808_v47  ;;  %v5712_v41 = vsub.f32 %v146_v12, %v5689_v6 }
  0x31   :  { %4572 = vmatprep.mubr.f32.mxu1 %v5553_v57  ;;  %v5705_v57 = vsub.f32 %v143_v27, %v5683_v2  ;;  %v480_v27 = vsub.f32 %v5681_v3, %v7607_v29 }
  0x32   :  { %v460_v0 = vsub.f32 %v5644_v59, %v7807_v58  ;;  %v155_v58 = vsel %vm60_vm1, %v51_v54, 0  ;;  %v471_v12 = vand.u32 4294901760, %v470_v39  ;;  %v7809_v54 = vand.u32 4294901760, %v5687_v44 }
  0x33   :  { %4523 = vmatmul.mubr.f32.gmra.mxu0 %v421_v13  ;;  %v5714_v13 = vand.u32 4294901760, %v152_v37  ;;  %v5725_v36 = vand.u32 4294901760, %v155_v58 }
  0x34   :  { %4573 = vmatmul.mubr.f32.gmra.mxu1 %v5570_v18  ;;  %4525 = vmatprep.mubr.f32.mxu0 %v431_v49  ;;  %v461_v47 = vand.u32 4294901760, %v460_v0  ;;  %v7608_v18 = vand.u32 4294901760, %v5705_v57  ;;  %v5723_v49 = vsub.f32 %v149_v63, %v5707_v52  ;;  %v490_v0 = vsub.f32 %v5687_v44, %v7809_v54 }
  0x35   :  { %4575 = vmatprep.mubr.f32.mxu1 %v5578_v53  ;;  %v5733_v53 = vsub.f32 %v152_v37, %v5714_v13  ;;  %v481_v63 = vand.u32 4294901760, %v480_v27  ;;  %v5741_v39 = vsub.f32 %v155_v58, %v5725_v36 }
  0x36   :  { %v500_v29 = vsub.f32 %v5705_v57, %v7608_v18  ;;  %v491_v54 = vand.u32 4294901760, %v490_v0 }
  0x37   :  { %4526 = vmatmul.mubr.f32.gmra.mxu0 %v441_v61  ;;  %v7609_v61 = vand.u32 4294901760, %v5712_v41  ;;  %v539_v58 = vand.u32 4294901760, %v5741_v39 }
  0x38   :  { %4576 = vmatmul.mubr.f32.gmra.mxu1 %v5585_v40  ;;  %4528 = vmatprep.mubr.f32.mxu0 %v451_v45  ;;  %v519_v45 = vand.u32 4294901760, %v5723_v49  ;;  %v501_v27 = vand.u32 4294901760, %v500_v29 }
  0x39   :  { %4578 = vmatprep.mubr.f32.mxu1 %v5594_v38  ;;  %v510_v37 = vsub.f32 %v5712_v41, %v7609_v61  ;;  %v540_v29 = vsub.f32 %v5741_v39, %v539_v58 }
  0x3a   :  { %v520_v18 = vsub.f32 %v5723_v49, %v519_v45 }
  0x3b   :  { %4529 = vmatmul.mubr.f32.gmra.mxu0 %v461_v47  ;;  %v529_v47 = vand.u32 4294901760, %v5733_v53 }
  0x3c   :  { %4579 = vmatmul.mubr.f32.gmra.mxu1 %v5618_v5  ;;  %4531 = vmatprep.mubr.f32.mxu0 %v471_v12  ;;  %v511_v12 = vand.u32 4294901760, %v510_v37  ;;  %v521_v61 = vand.u32 4294901760, %v520_v18  ;;  %v7810_v18 = vand.u32 4294901760, %v5343_v19  ;;  %v7812_v37 = vand.u32 4294901760, %v5354_v23 }
  0x3d   :  { %4581 = vmatprep.mubr.f32.mxu1 %v5628_v62  ;;  %v530_v0 = vsub.f32 %v5733_v53, %v529_v47 }
  0x3f   :  { %4532 = vmatmul.mubr.f32.gmra.mxu0 %v481_v63  ;;  %v531_v63 = vand.u32 4294901760, %v530_v0 }
  0x40   :  { %4582 = vmatmul.mubr.f32.gmra.mxu1 %v5655_v43  ;;  %4534 = vmatprep.mubr.f32.mxu0 %v491_v54  ;;  %v541_v54 = vand.u32 4294901760, %v540_v29 }
  0x41   :  { %4584 = vmatprep.mubr.f32.mxu1 %v5661_v8 }
  0x43   :  { %4535 = vmatmul.mubr.f32.gmra.mxu0 %v501_v27  ;;  %v7813_v27 = vand.u32 4294901760, %v5366_v30 }
  0x44   :  { %4585 = vmatmul.mubr.f32.gmra.mxu1 %v5683_v2  ;;  %4537 = vmatprep.mubr.f32.mxu0 %v511_v12 }
  0x45   :  { %4587 = vmatprep.mubr.f32.mxu1 %v5689_v6 }
  0x47   :  { %4538 = vmatmul.mubr.f32.gmra.mxu0 %v521_v61  ;;  %v7811_v61 = vand.u32 4294901760, %v5347_v21 }
  0x48   :  { %4588 = vmatmul.mubr.f32.gmra.mxu1 %v5707_v52  ;;  %4540 = vmatprep.mubr.f32.mxu0 %v531_v63  ;;  %v7856_v63 = vld [vmem:[#allocation12_spill] sm:$0xff] }
  0x49   :  { %4590 = vmatprep.mubr.f32.mxu1 %v5714_v13 }
  0x4b   :  { %4541 = vmatmul.mubr.f32.gmra.mxu0 %v541_v54 }
  0x4c   :  { %4591 = vmatmul.mubr.f32.gmra.mxu1 %v5725_v36  ;;  %4595 = vmatprep.mubr.f32.mxu0 %v5343_v19  ;;  %v7814_v19 = vand.u32 4294901760, %v5370_v32 }
  0x4d   :  { %4645 = vmatprep.mubr.f32.mxu1 %v7810_v18 }
  0x4f   :  { %4596 = vmatmul.mubr.f32.vlgmr.msra.gmra.mxu0 %v5347_v21  ;;  %v7815_v21 = vand.u32 4294901760, %v5373_v33 }
  0x50   :  { %4694 = vmatpush3.msra.mxu0 %v5362_v28  ;;  %4646 = vmatmul.mubr.f32.vlgmr.msra.gmra.mxu1 %v7811_v61  ;;  %v7818_v28 = vand.u32 4294901760, %v5453_v14  ;;  %v7858_v61 = vld [vmem:[#allocation13_spill] sm:$0xff] }
  0x51   :  { %4744 = vmatpush3.msra.mxu1 %v5323_v9  ;;  %4598 = vmatprep.mubr.f32.mxu0 %v5354_v23  ;;  %v7816_v9 = vand.u32 4294901760, %v5391_v42  ;;  %v7817_v23 = vand.u32 4294901760, %v5441_v7 }
  0x52   :  { %4648 = vmatprep.mubr.f32.mxu1 %v7812_v37  ;;  %v1984_v37 = vld [vmem:[%s7557_s3 + $0x60] sm:$0xff] }
  0x53   :  { %4599 = vmatmul.mubr.f32.gmra.mxu0 %v5366_v30  ;;  %v7819_v30 = vand.u32 4294901760, %v5456_v16 }
  0x54   :  { %4649 = vmatmul.mubr.f32.gmra.mxu1 %v7813_v27  ;;  %4601 = vmatprep.mubr.f32.mxu0 %v5370_v32  ;;  %v7820_v32 = vand.u32 4294901760, %v5462_v26 }
  0x55   :  { %4651 = vmatprep.mubr.f32.mxu1 %v7814_v19 }
  0x57   :  { %4602 = vmatmul.mubr.f32.gmra.mxu0 %v5373_v33  ;;  %v7821_v33 = vand.u32 4294901760, %v5465_v35 }
  0x58   :  { %4652 = vmatmul.mubr.f32.gmra.mxu1 %v7815_v21  ;;  %4604 = vmatprep.mubr.f32.mxu0 %v5391_v42  ;;  %v7822_v42 = vand.u32 4294901760, %v5483_v48  ;;  %v5947_v21 = vand.u32 4294901760, %v1984_v37 }
  0x59   :  { %4654 = vmatprep.mubr.f32.mxu1 %v7816_v9  ;;  %v7861_v9 = vld [vmem:[#allocation14_spill] sm:$0xff] }
  0x5b   :  { %4605 = vmatmul.mubr.f32.gmra.mxu0 %v5441_v7  ;;  %v7823_v7 = vand.u32 4294901760, %v5490_v50 }
  0x5c   :  { %4655 = vmatmul.mubr.f32.gmra.mxu1 %v7817_v23  ;;  %4607 = vmatprep.mubr.f32.mxu0 %v5453_v14  ;;  %v7824_v14 = vand.u32 4294901760, %v5509_v60 }
  0x5d   :  { %4657 = vmatprep.mubr.f32.mxu1 %v7818_v28  ;;  %v5954_v28 = vsub.f32 %v1984_v37, %v5947_v21 }
  0x5f   :  { %4608 = vmatmul.mubr.f32.gmra.mxu0 %v5456_v16  ;;  %v7825_v16 = vand.u32 4294901760, %v5542_v46  ;;  %7862 = vst [vmem:[#allocation12_spill] sm:$0xff] %v5954_v28 }
  0x60   :  { %4658 = vmatmul.mubr.f32.gmra.mxu1 %v7819_v30  ;;  %4610 = vmatprep.mubr.f32.mxu0 %v5462_v26  ;;  %v7826_v26 = vand.u32 4294901760, %v5551_v55  ;;  %v7863_v30 = vld [vmem:[#allocation15_spill] sm:$0xff] }
  0x61   :  { %4660 = vmatprep.mubr.f32.mxu1 %v7820_v32  ;;  %v1983_v32 = vld [vmem:[%s7557_s3 + $0x58] sm:$0xff] }
  0x63   :  { %4611 = vmatmul.mubr.f32.gmra.mxu0 %v5465_v35  ;;  %v7827_v35 = vand.u32 4294901760, %v5568_v17 }
  0x64   :  { %4661 = vmatmul.mubr.f32.gmra.mxu1 %v7821_v33  ;;  %4613 = vmatprep.mubr.f32.mxu0 %v5483_v48  ;;  %v7828_v48 = vand.u32 4294901760, %v5576_v20 }
  0x65   :  { %4663 = vmatprep.mubr.f32.mxu1 %v7822_v42  ;;  %v5963_v42 = vand.u32 4294901760, %v5954_v28 }
  0x67   :  { %4614 = vmatmul.mubr.f32.gmra.mxu0 %v5490_v50  ;;  %v7830_v50 = vand.u32 4294901760, %v5605_v1  ;;  %7864 = vst [vmem:[#allocation13_spill] sm:$0xff] %v5963_v42 }
  0x68   :  { %4664 = vmatmul.mubr.f32.gmra.mxu1 %v7823_v7  ;;  %4616 = vmatprep.mubr.f32.mxu0 %v5509_v60  ;;  %v7831_v60 = vand.u32 4294901760, %v5613_v31  ;;  %v5965_v7 = vand.u32 4294901760, %v1983_v32 }
  0x69   :  { %4666 = vmatprep.mubr.f32.mxu1 %v7824_v14  ;;  %v2421_v14 = vsub.f32 %v5954_v28, %v5963_v42 }
  0x6a   :  { %7865 = vst [vmem:[#allocation14_spill] sm:$0xff] %v5965_v7 }
  0x6b   :  { %4617 = vmatmul.mubr.f32.gmra.mxu0 %v5542_v46  ;;  %v7829_v46 = vand.u32 4294901760, %v5592_v56 }
  0x6c   :  { %4667 = vmatmul.mubr.f32.gmra.mxu1 %v7825_v16  ;;  %4619 = vmatprep.mubr.f32.mxu0 %v5551_v55  ;;  %v7833_v55 = vand.u32 4294901760, %v5644_v59  ;;  %v5972_v16 = vsub.f32 %v1983_v32, %v5965_v7 }
  0x6d   :  { %4669 = vmatprep.mubr.f32.mxu1 %v7826_v26  ;;  %v1982_v26 = vld [vmem:[%s7557_s3 + $0x50] sm:$0xff] }
  0x6e   :  { %7866 = vst [vmem:[#allocation15_spill] sm:$0xff] %v5972_v16 }
  0x6f   :  { %4620 = vmatmul.mubr.f32.gmra.mxu0 %v5568_v17  ;;  %v7834_v17 = vand.u32 4294901760, %v5653_v51 }
  0x70   :  { %4670 = vmatmul.mubr.f32.gmra.mxu1 %v7827_v35  ;;  %4622 = vmatprep.mubr.f32.mxu0 %v5576_v20  ;;  %v7832_v20 = vand.u32 4294901760, %v5616_v4  ;;  %v2422_v35 = vand.u32 4294901760, %v2421_v14  ;;  %v6114_v14 = vld [vmem:[%s7558_s2] ss:$0 sm:$0xff] }
  0x71   :  { %4672 = vmatprep.mubr.f32.mxu1 %v7828_v48  ;;  %v5981_v48 = vand.u32 4294901760, %v5972_v16 }
  0x73   :  { %4623 = vmatmul.mubr.f32.gmra.mxu0 %v5592_v56  ;;  %v7836_v56 = vand.u32 4294901760, %v5687_v44  ;;  %7867 = vst [vmem:[#allocation16_spill] sm:$0xff] %v5981_v48 }
  0x74   :  { %4673 = vmatmul.mubr.f32.gmra.mxu1 %v7829_v46  ;;  %4625 = vmatprep.mubr.f32.mxu0 %v5605_v1  ;;  %v7837_v1 = vand.u32 4294901760, %v5705_v57  ;;  %v5983_v46 = vand.u32 4294901760, %v1982_v26 }
  0x75   :  { %4675 = vmatprep.mubr.f32.mxu1 %v7830_v50 }
  0x76   :  { %7868 = vst [vmem:[#allocation17_spill] sm:$0xff] %v5983_v46  ;;  %v5990_v50 = vsub.f32 %v1982_v26, %v5983_v46 }
  0x77   :  { %4626 = vmatmul.mubr.f32.gmra.mxu0 %v5613_v31  ;;  %v7835_v31 = vand.u32 4294901760, %v5681_v3 }
  0x78   :  { %4676 = vmatmul.mubr.f32.gmra.mxu1 %v7831_v60  ;;  %4628 = vmatprep.mubr.f32.mxu0 %v5616_v4  ;;  %7869 = vst [vmem:[#allocation18_spill] sm:$0xff] %v5990_v50 }
  0x79   :  { %4678 = vmatprep.mubr.f32.mxu1 %v7832_v20  ;;  %v5999_v20 = vand.u32 4294901760, %v5990_v50 }
  0x7b   :  { %4629 = vmatmul.mubr.f32.gmra.mxu0 %v5644_v59  ;;  %v1986_v59 = vld [vmem:[%s7557_s3 + $0x70] sm:$0xff]  ;;  %7870 = vst [vmem:[#allocation19_spill] sm:$0xff] %v5999_v20 }
  0x7c   :  { %4679 = vmatmul.mubr.f32.gmra.mxu1 %v7833_v55  ;;  %4631 = vmatprep.mubr.f32.mxu0 %v5653_v51  ;;  %v7838_v51 = vand.u32 4294901760, %v5712_v41 }
  0x7d   :  { %4681 = vmatprep.mubr.f32.mxu1 %v7834_v17  ;;  %v2435_v17 = vsub.f32 %v5990_v50, %v5999_v20 }
  0x7f   :  { %4632 = vmatmul.mubr.f32.gmra.mxu0 %v5681_v3  ;;  %v7846_v3 = vld [vmem:[#allocation8_spill] sm:$0xff] }
  0x80   :  { %4682 = vmatmul.mubr.f32.gmra.mxu1 %v7835_v31  ;;  %4634 = vmatprep.mubr.f32.mxu0 %v5687_v44  ;;  %v5906_v44 = vand.u32 4294901760, %v1986_v59 }
  0x81   :  { %4684 = vmatprep.mubr.f32.mxu1 %v7836_v56  ;;  %v1979_v56 = vld [vmem:[%s7557_s3 + $0x38] sm:$0xff] }
  0x83   :  { %4635 = vmatmul.mubr.f32.gmra.mxu0 %v5705_v57  ;;  %v7847_v57 = vld [vmem:[#allocation9_spill] sm:$0xff] }
  0x84   :  { %4685 = vmatmul.mubr.f32.gmra.mxu1 %v7837_v1  ;;  %4637 = vmatprep.mubr.f32.mxu0 %v5712_v41  ;;  %v2436_v1 = vand.u32 4294901760, %v2435_v17 }
  0x85   :  { %4687 = vmatprep.mubr.f32.mxu1 %v7838_v51 }
  0x87   :  { %4638 = vmatmul.mubr.f32.gmra.mxu0 %v5723_v49  ;;  %v7851_v49 = vld [vmem:[#allocation10_spill] sm:$0xff] }
  0x88   :  { %4688 = vmatmul.mubr.f32.gmra.mxu1 %v519_v45  ;;  %4640 = vmatprep.mubr.f32.mxu0 %v5733_v53  ;;  %v5915_v45 = vsub.f32 %v1986_v59, %v5906_v44 }
  0x89   :  { %4690 = vmatprep.mubr.f32.mxu1 %v529_v47 }
  0x8a   :  { %v5927_v12 = vand.u32 4294901760, %v5915_v45 }
  0x8b   :  { %4641 = vmatmul.mubr.f32.gmra.mxu0 %v5741_v39  ;;  %v7853_v39 = vld [vmem:[#allocation11_spill] sm:$0xff] }
  0x8c   :  { %4691 = vmatmul.mubr.f32.gmra.mxu1 %v539_v58  ;;  %4695 = vmatprep.mubr.f32.mxu0 %v5325_v10  ;;  %v1985_v58 = vld [vmem:[%s7557_s3 + $0x68] sm:$0xff]  ;;  %v2407_v54 = vsub.f32 %v5915_v45, %v5927_v12  ;;  %7860 = vst [vmem:[#allocation11_spill] sm:$0xff] %v5947_v21 }
  0x8d   :  { %4745 = vmatprep.mubr.f32.mxu1 %v5325_v10  ;;  %v7839_v10 = vld [vmem:[#allocation2_spill] sm:$0xff]  ;;  %v5929_v0 = vand.u32 4294901760, %v1985_v58 }
  0x8e   :  { %v2408_v27 = vand.u32 4294901760, %v2407_v54 }
  0x8f   :  { %4696 = vmatmul.mubr.f32.vlgmr.msra.gmra.mxu0 %v5327_v11  ;;  %7855 = vst [vmem:[#allocation8_spill] sm:$0xff] %v5929_v0  ;;  %v5936_v18 = vsub.f32 %v1985_v58, %v5929_v0 }
  0x90   :  { %4746 = vmatmul.mubr.f32.vlgmr.msra.gmra.mxu1 %v5327_v11  ;;  %4698 = vmatprep.mubr.f32.mxu0 %v5336_v15  ;;  %v7840_v11 = vld [vmem:[#allocation3_spill] sm:$0xff] }
  0x91   :  { %4748 = vmatprep.mubr.f32.mxu1 %v5336_v15  ;;  %v7841_v15 = vld [vmem:[#allocation4_spill] sm:$0xff]  ;;  %7857 = vst [vmem:[#allocation9_spill] sm:$0xff] %v5936_v18  ;;  %v5945_v19 = vand.u32 4294901760, %v5936_v18 }
  0x92   :  { %7849 = vst [vmem:[#allocation4_spill] sm:$0xff] %v5906_v44 }
  0x93   :  { %4699 = vmatmul.mubr.f32.gmra.mxu0 %v5350_v22  ;;  %7859 = vst [vmem:[#allocation10_spill] sm:$0xff] %v5945_v19  ;;  %v2414_v23 = vsub.f32 %v5936_v18, %v5945_v19 }
  0x94   :  { %4749 = vmatmul.mubr.f32.gmra.mxu1 %v5350_v22  ;;  %4701 = vmatprep.mubr.f32.mxu0 %v5356_v24  ;;  %v7842_v22 = vld [vmem:[#allocation5_spill] sm:$0xff] }
  0x95   :  { %4751 = vmatprep.mubr.f32.mxu1 %v5356_v24  ;;  %v7843_v24 = vld [vmem:[#allocation6_spill] sm:$0xff]  ;;  %v2415_v33 = vand.u32 4294901760, %v2414_v23 }
  0x96   :  { %7852 = vst [vmem:[#allocation6_spill] sm:$0xff] %v5915_v45 }
  0x97   :  { %4702 = vmatmul.mubr.f32.gmra.mxu0 %v5358_v25 }
  0x98   :  { %4752 = vmatmul.mubr.f32.gmra.mxu1 %v5358_v25  ;;  %4704 = vmatprep.mubr.f32.mxu0 %v5375_v34  ;;  %v7844_v25 = vld [vmem:[#allocation7_spill] sm:$0xff] }
  0x99   :  { %4754 = vmatprep.mubr.f32.mxu1 %v5375_v34  ;;  %v1987_v34 = vld [vmem:[%s7557_s3 + $0x78] sm:$0xff]  ;;  %7854 = vst [vmem:[#allocation7_spill] sm:$0xff] %v5927_v12 }
  0x9a   :  { %v5893_v53 = vand.u32 4294901760, %v1987_v34 }
  0x9b   :  { %4705 = vmatmul.mubr.f32.gmra.mxu0 %v7839_v10 }
  0x9c   :  { %4755 = vmatmul.mubr.f32.gmra.mxu1 %v7839_v10  ;;  %4707 = vmatprep.mubr.f32.mxu0 %v7840_v11  ;;  %7845 = vst [vmem:[#allocation2_spill] sm:$0xff] %v5893_v53  ;;  %v5899_v4 = vsub.f32 %v1987_v34, %v5893_v53 }
  0x9d   :  { %4757 = vmatprep.mubr.f32.mxu1 %v7840_v11  ;;  %4793 = vmatprep.subr.mxu0 %v5893_v53  ;;  %v6028_v11 = vand.u32 4294901760, %v1979_v56 }
  0x9e   :  { %7848 = vst [vmem:[#allocation3_spill] sm:$0xff] %v5899_v4  ;;  %4794 = vmatpush3.msra.mxu0 %v5893_v53  ;;  %v5910_v41 = vand.u32 4294901760, %v5899_v4 }
  0x9f   :  { %4708 = vmatmul.mubr.f32.gmra.mxu0 %v7841_v15  ;;  %4795 = vmatprep.subr.mxu0 %v5906_v44  ;;  %7876 = vst [vmem:[#allocation25_spill] sm:$0xff] %v6028_v11 }
  0xa0   :  { %4758 = vmatmul.mubr.f32.gmra.mxu1 %v7841_v15  ;;  %4710 = vmatprep.mubr.f32.mxu0 %v7842_v22  ;;  %7850 = vst [vmem:[#allocation5_spill] sm:$0xff] %v5910_v41  ;;  %v2400_v47 = vsub.f32 %v5899_v4, %v5910_v41 }
  0xa1   :  { %4760 = vmatprep.mubr.f32.mxu1 %v7842_v22  ;;  %4796 = vmatpush3.msra.mxu0 %v5906_v44  ;;  %v6041_v22 = vsub.f32 %v1979_v56, %v6028_v11 }
  0xa2   :  { %v2401_v29 = vand.u32 4294901760, %v2400_v47  ;;  %4797 = vmatprep.subr.mxu0 %v5929_v0 }
  0xa3   :  { %4711 = vmatmul.mubr.f32.gmra.mxu0 %v7843_v24  ;;  %7878 = vst [vmem:[#allocation27_spill] sm:$0xff] %v6041_v22 }
  0xa4   :  { %4761 = vmatmul.mubr.f32.gmra.mxu1 %v7843_v24  ;;  %4713 = vmatprep.mubr.f32.mxu0 %v7844_v25 }
  0xa5   :  { %4763 = vmatprep.mubr.f32.mxu1 %v7844_v25  ;;  %4873 = vmatprep.subr.mxu1 %v2401_v29  ;;  %v1977_v25 = vld [vmem:[%s7557_s3 + $0x28] sm:$0xff] }
  0xa6   :  { %4874 = vmatpush3.msra.mxu1 %v2401_v29  ;;  %4798 = vmatpush3.msra.mxu0 %v5929_v0 }
  0xa7   :  { %4714 = vmatmul.mubr.f32.gmra.mxu0 %v7846_v3  ;;  %4875 = vmatprep.subr.mxu1 %v2408_v27 }
  0xa8   :  { %4764 = vmatmul.mubr.f32.gmra.mxu1 %v7846_v3  ;;  %4716 = vmatprep.mubr.f32.mxu0 %v7847_v57 }
  0xa9   :  { %4766 = vmatprep.mubr.f32.mxu1 %v7847_v57  ;;  %4876 = vmatpush3.msra.mxu1 %v2408_v27  ;;  %v6055_v57 = vand.u32 4294901760, %v6041_v22 }
  0xaa   :  { %4799 = vmatprep.subr.mxu0 %v5947_v21  ;;  %4877 = vmatprep.subr.mxu1 %v2415_v33 }
  0xab   :  { %4717 = vmatmul.mubr.f32.gmra.mxu0 %v7851_v49  ;;  %4878 = vmatpush3.msra.mxu1 %v2415_v33  ;;  %7880 = vst [vmem:[#allocation29_spill] sm:$0xff] %v6055_v57 }
  0xac   :  { %4767 = vmatmul.mubr.f32.gmra.mxu1 %v7851_v49  ;;  %4719 = vmatprep.mubr.f32.mxu0 %v7853_v39 }
  0xad   :  { %4769 = vmatprep.mubr.f32.mxu1 %v7853_v39  ;;  %4800 = vmatpush3.msra.mxu0 %v5947_v21  ;;  %v2456_v39 = vsub.f32 %v6041_v22, %v6055_v57 }
  0xae   :  { %4879 = vmatprep.subr.mxu1 %v2422_v35  ;;  %4801 = vmatprep.subr.mxu0 %v5965_v7 }
  0xaf   :  { %4720 = vmatmul.mubr.f32.gmra.mxu0 %v7856_v63  ;;  %4880 = vmatpush3.msra.mxu1 %v2422_v35  ;;  %v2457_v37 = vand.u32 4294901760, %v2456_v39 }
  0xb0   :  { %4770 = vmatmul.mubr.f32.gmra.mxu1 %v7856_v63  ;;  %4722 = vmatprep.mubr.f32.mxu0 %v7858_v61  ;;  %v1975_v63 = vld [vmem:[%s7557_s3 + $0x18] sm:$0xff] }
  0xb1   :  { %4772 = vmatprep.mubr.f32.mxu1 %v7858_v61  ;;  %4802 = vmatpush3.msra.mxu0 %v5965_v7 }
  0xb2   :  { %4803 = vmatprep.subr.mxu0 %v5983_v46 }
  0xb3   :  { %4723 = vmatmul.mubr.f32.gmra.mxu0 %v7861_v9 }
  0xb4   :  { %4773 = vmatmul.mubr.f32.gmra.mxu1 %v7861_v9  ;;  %4725 = vmatprep.mubr.f32.mxu0 %v7863_v30 }
  0xb5   :  { %4775 = vmatprep.mubr.f32.mxu1 %v7863_v30  ;;  %4804 = vmatpush3.msra.mxu0 %v5983_v46 }
  0xb7   :  { %4726 = vmatmul.mubr.f32.gmra.mxu0 %v5585_v40 }
  0xb8   :  { %4776 = vmatmul.mubr.f32.gmra.mxu1 %v5585_v40  ;;  %4728 = vmatprep.mubr.f32.mxu0 %v5594_v38  ;;  %v2428_v40 = vsub.f32 %v5972_v16, %v5981_v48 }
  0xb9   :  { %4778 = vmatprep.mubr.f32.mxu1 %v5594_v38  ;;  %v1981_v38 = vld [vmem:[%s7557_s3 + $0x48] sm:$0xff] }
  0xba   :  { %v2429_v60 = vand.u32 4294901760, %v2428_v40  ;;  %v6001_v55 = vand.u32 4294901760, %v1981_v38  ;;  %v1973_v40 = vld [vmem:[%s7557_s3 + $0x8] sm:$0xff] }
  0xbb   :  { %4729 = vmatmul.mubr.f32.gmra.mxu0 %v5618_v5 }
  0xbc   :  { %4779 = vmatmul.mubr.f32.gmra.mxu1 %v5618_v5  ;;  %4731 = vmatprep.mubr.f32.mxu0 %v5628_v62  ;;  %7871 = vst [vmem:[#allocation20_spill] sm:$0xff] %v6001_v55  ;;  %v1980_v5 = vld [vmem:[%s7557_s3 + $0x40] sm:$0xff] }
  0xbd   :  { %4781 = vmatprep.mubr.f32.mxu1 %v5628_v62  ;;  %4881 = vmatprep.subr.mxu1 %v2429_v60  ;;  %v6011_v62 = vsub.f32 %v1981_v38, %v6001_v55  ;;  %v6013_v31 = vand.u32 4294901760, %v1980_v5 }
  0xbe   :  { %4882 = vmatpush3.msra.mxu1 %v2429_v60  ;;  %4805 = vmatprep.subr.mxu0 %v6001_v55  ;;  %v6129_v60 = vand.u32 4294901760, %v1973_v40 }
  0xbf   :  { %4732 = vmatmul.mubr.f32.gmra.mxu0 %v5655_v43  ;;  %7872 = vst [vmem:[#allocation21_spill] sm:$0xff] %v6011_v62  ;;  %7873 = vst [vmem:[#allocation22_spill] sm:$0xff] %v6013_v31  ;;  %v6023_v51 = vand.u32 4294901760, %v6011_v62  ;;  %v6026_v10 = vsub.f32 %v1980_v5, %v6013_v31  ;;  %4883 = vmatprep.subr.mxu1 %v2436_v1 }
  0xc0   :  { %4782 = vmatmul.mubr.f32.gmra.mxu1 %v5655_v43  ;;  %4734 = vmatprep.mubr.f32.mxu0 %v5661_v8  ;;  %v1978_v43 = vld [vmem:[%s7557_s3 + $0x30] sm:$0xff]  ;;  %7894 = vst [vmem:[#allocation43_spill] sm:$0xff] %v6129_v60 }
  0xc1   :  { %4784 = vmatprep.mubr.f32.mxu1 %v5661_v8  ;;  %7874 = vst [vmem:[#allocation23_spill] sm:$0xff] %v6023_v51  ;;  %7875 = vst [vmem:[#allocation24_spill] sm:$0xff] %v6026_v10  ;;  %v2442_v8 = vsub.f32 %v6011_v62, %v6023_v51  ;;  %v6038_v15 = vand.u32 4294901760, %v6026_v10  ;;  %v6043_v24 = vand.u32 4294901760, %v1978_v43  ;;  %4884 = vmatpush3.msra.mxu1 %v2436_v1  ;;  %v1972_v1 = vld [vmem:[%s7557_s3] sm:$0xff] }
  0xc2   :  { %4806 = vmatpush3.msra.mxu0 %v6001_v55 }
  0xc3   :  { %4735 = vmatmul.mubr.f32.gmra.mxu0 %v5683_v2  ;;  %7877 = vst [vmem:[#allocation26_spill] sm:$0xff] %v6038_v15  ;;  %7879 = vst [vmem:[#allocation28_spill] sm:$0xff] %v6043_v24  ;;  %v2443_v34 = vand.u32 4294901760, %v2442_v8  ;;  %v2449_v3 = vsub.f32 %v6026_v10, %v6038_v15  ;;  %v6058_v59 = vsub.f32 %v1978_v43, %v6043_v24  ;;  %4807 = vmatprep.subr.mxu0 %v6013_v31 }
  0xc4   :  { %4785 = vmatmul.mubr.f32.gmra.mxu1 %v5683_v2  ;;  %4737 = vmatprep.mubr.f32.mxu0 %v5689_v6  ;;  %v6061_v2 = vand.u32 4294901760, %v1977_v25 }
  0xc5   :  { %4787 = vmatprep.mubr.f32.mxu1 %v5689_v6  ;;  %7881 = vst [vmem:[#allocation30_spill] sm:$0xff] %v6058_v59  ;;  %v1976_v6 = vld [vmem:[%s7557_s3 + $0x20] sm:$0xff]  ;;  %4885 = vmatprep.subr.mxu1 %v2443_v34  ;;  %v2450_v49 = vand.u32 4294901760, %v2449_v3  ;;  %v6070_v47 = vand.u32 4294901760, %v6058_v59  ;;  %v6145_v3 = vand.u32 4294901760, %v1972_v1 }
  0xc6   :  { %7882 = vst [vmem:[#allocation31_spill] sm:$0xff] %v6061_v2  ;;  %v6072_v58 = vand.u32 4294901760, %v1976_v6  ;;  %v6077_v29 = vsub.f32 %v1977_v25, %v6061_v2  ;;  %4886 = vmatpush3.msra.mxu1 %v2443_v34  ;;  %4808 = vmatpush3.msra.mxu0 %v6013_v31  ;;  %v6143_v34 = vsub.f32 %v1973_v40, %v6129_v60 }
  0xc7   :  { %4738 = vmatmul.mubr.f32.gmra.mxu0 %v5707_v52  ;;  %7883 = vst [vmem:[#allocation32_spill] sm:$0xff] %v6070_v47  ;;  %v2463_v54 = vsub.f32 %v6058_v59, %v6070_v47  ;;  %4887 = vmatprep.subr.mxu1 %v2450_v49  ;;  %7897 = vst [vmem:[#allocation46_spill] sm:$0xff] %v6145_v3 }
  0xc8   :  { %7884 = vst [vmem:[#allocation33_spill] sm:$0xff] %v6072_v58  ;;  %4788 = vmatmul.mubr.f32.gmra.mxu1 %v5707_v52  ;;  %4740 = vmatprep.mubr.f32.mxu0 %v5714_v13  ;;  %7885 = vst [vmem:[#allocation34_spill] sm:$0xff] %v6077_v29  ;;  %v6087_v61 = vsub.f32 %v1976_v6, %v6072_v58  ;;  %v6089_v52 = vand.u32 4294901760, %v1975_v63  ;;  %v6093_v27 = vand.u32 4294901760, %v6077_v29 }
  0xc9   :  { %4790 = vmatprep.mubr.f32.mxu1 %v5714_v13  ;;  %v1974_v13 = vld [vmem:[%s7557_s3 + $0x10] sm:$0xff]  ;;  %v2464_v32 = vand.u32 4294901760, %v2463_v54  ;;  %4888 = vmatpush3.msra.mxu1 %v2450_v49  ;;  %7896 = vst [vmem:[#allocation45_spill] sm:$0xff] %v6143_v34 }
  0xca   :  { %7886 = vst [vmem:[#allocation35_spill] sm:$0xff] %v6087_v61  ;;  %7887 = vst [vmem:[#allocation36_spill] sm:$0xff] %v6089_v52  ;;  %v6100_v9 = vand.u32 4294901760, %v6087_v61  ;;  %v6103_v23 = vsub.f32 %v1975_v63, %v6089_v52  ;;  %v6105_v30 = vand.u32 4294901760, %v1974_v13  ;;  %v2470_v33 = vsub.f32 %v6077_v29, %v6093_v27  ;;  %4809 = vmatprep.subr.mxu0 %v6028_v11 }
  0xcb   :  { %7888 = vst [vmem:[#allocation37_spill] sm:$0xff] %v6093_v27  ;;  %4741 = vmatmul.mubr.f32.gmra.mxu0 %v5725_v36  ;;  %4889 = vmatprep.subr.mxu1 %v2457_v37 }
  0xcc   :  { %7889 = vst [vmem:[#allocation38_spill] sm:$0xff] %v6100_v9  ;;  %7890 = vst [vmem:[#allocation39_spill] sm:$0xff] %v6103_v23  ;;  %4791 = vmatmul.mubr.f32.gmra.mxu1 %v5725_v36  ;;  %v2477_v26 = vsub.f32 %v6087_v61, %v6100_v9  ;;  %v6120_v35 = vand.u32 4294901760, %v6103_v23  ;;  %v6123_v36 = vsub.f32 %v1974_v13, %v6105_v30  ;;  %4810 = vmatpush3.msra.mxu0 %v6028_v11 }
  0xcd   :  { %7891 = vst [vmem:[#allocation40_spill] sm:$0xff] %v6105_v30  ;;  %v2471_v38 = vand.u32 4294901760, %v2470_v33  ;;  %4890 = vmatpush3.msra.mxu1 %v2457_v37  ;;  %4811 = vmatprep.subr.mxu0 %v6043_v24  ;;  %v6158_v37 = vand.u32 4294901760, %v6143_v34  ;;  %v6161_v13 = vsub.f32 %v1972_v1, %v6145_v3 }
  0xce   :  { %7892 = vst [vmem:[#allocation41_spill] sm:$0xff] %v6120_v35  ;;  %7893 = vst [vmem:[#allocation42_spill] sm:$0xff] %v6123_v36  ;;  %v2484_v17 = vsub.f32 %v6103_v23, %v6120_v35  ;;  %v6135_v56 = vand.u32 4294901760, %v6123_v36  ;;  %4812 = vmatpush3.msra.mxu0 %v6043_v24  ;;  %4891 = vmatprep.subr.mxu1 %v2464_v32  ;;  %v2478_v25 = vand.u32 4294901760, %v2477_v26 }
  0xcf   :  { %v4497_v5 = vpop.f32.mrf.mxu0  ;;  %v4547_v8 = vpop.f32.mrf.mxu1  ;;  %4892 = vmatpush3.msra.mxu1 %v2464_v32  ;;  %4813 = vmatprep.subr.mxu0 %v6061_v2  ;;  %7898 = vst [vmem:[#allocation47_spill] sm:$0xff] %v6158_v37  ;;  %7899 = vst [vmem:[#allocation48_spill] sm:$0xff] %v6161_v13 }
  0xd0   :  { %7895 = vst [vmem:[#allocation44_spill] sm:$0xff] %v6135_v56  ;;  %v244_v43 = vadd.f32 %v4497_v5, %v6114_v14  ;;  %v2491_v49 = vsub.f32 %v6123_v36, %v6135_v56  ;;  %4814 = vmatpush3.msra.mxu0 %v6061_v2  ;;  %4893 = vmatprep.subr.mxu1 %v2471_v38  ;;  %v2485_v54 = vand.u32 4294901760, %v2484_v17  ;;  %v6169_v17 = vand.u32 4294901760, %v6161_v13 }
  0xd1   :  { %v6147_v6 = vpop.f32.mrf.mxu0  ;;  %v6154_v63 = vpop.f32.mrf.mxu1  ;;  %4894 = vmatpush3.msra.mxu1 %v2471_v38  ;;  %4815 = vmatprep.subr.mxu0 %v6072_v58  ;;  %v2498_v5 = vsub.f32 %v6143_v34, %v6158_v37 }
  0xd2   :  { %v6152_v39 = vadd.f32 %v4547_v8, %v244_v43  ;;  %4816 = vmatpush3.msra.mxu0 %v6072_v58  ;;  %4895 = vmatprep.subr.mxu1 %v2478_v25  ;;  %v2492_v40 = vand.u32 4294901760, %v2491_v49  ;;  %7900 = vst [vmem:[#allocation49_spill] sm:$0xff] %v6169_v17  ;;  %v2505_v49 = vsub.f32 %v6161_v13, %v6169_v17 }
  0xd3   :  { %v4500_v32 = vpop.f32.mrf.mxu0  ;;  %4896 = vmatpush3.msra.mxu1 %v2478_v25  ;;  %4817 = vmatprep.subr.mxu0 %v6089_v52  ;;  %v2499_v8 = vand.u32 4294901760, %v2498_v5 }
  0xd4   :  { %v264_v33 = vadd.f32 %v4500_v32, %v6114_v14  ;;  %v4550_v26 = vpop.f32.mrf.mxu1  ;;  %4818 = vmatpush3.msra.mxu0 %v6089_v52  ;;  %4897 = vmatprep.subr.mxu1 %v2485_v54 }
  0xd5   :  { %v6171_v43 = vpop.f32.mrf.mxu0  ;;  %4898 = vmatpush3.msra.mxu1 %v2485_v54  ;;  %4819 = vmatprep.subr.mxu0 %v6105_v30 }
  0xd6   :  { %v6174_v38 = vadd.f32 %v4550_v26, %v264_v33  ;;  %v6176_v1 = vpop.f32.mrf.mxu1  ;;  %4899 = vmatprep.subr.mxu1 %v2492_v40  ;;  %4820 = vmatpush3.msra.mxu0 %v6105_v30  ;;  %v2506_v33 = vand.u32 4294901760, %v2505_v49 }
  0xd7   :  { %v4503_v32 = vpop.f32.mrf.mxu0  ;;  %4900 = vmatpush3.msra.mxu1 %v2492_v40  ;;  %4821 = vmatprep.subr.mxu0 %v6129_v60 }
  0xd8   :  { %v284_v37 = vadd.f32 %v4503_v32, %v6114_v14  ;;  %v4553_v25 = vpop.f32.mrf.mxu1  ;;  %4901 = vmatprep.subr.mxu1 %v2499_v8  ;;  %4822 = vmatpush3.msra.mxu0 %v6129_v60 }
  0xd9   :  { %v6184_v26 = vpop.f32.mrf.mxu0  ;;  %4902 = vmatpush3.msra.mxu1 %v2499_v8  ;;  %4823 = vmatprep.subr.mxu0 %v6145_v3 }
  0xda   :  { %v6187_v5 = vadd.f32 %v4553_v25, %v284_v37  ;;  %v6189_v56 = vpop.f32.mrf.mxu1  ;;  %4903 = vmatprep.subr.mxu1 %v2506_v33  ;;  %4824 = vmatpush3.msra.mxu0 %v6145_v3 }
  0xdb   :  { %v4506_v54 = vpop.f32.mrf.mxu0  ;;  %4904 = vmatpush3.msra.mxu1 %v2506_v33  ;;  %4953 = vmatprep.subr.mxu0 %v5899_v4 }
  0xdc   :  { %v304_v32 = vadd.f32 %v4506_v54, %v6114_v14  ;;  %v4556_v17 = vpop.f32.mrf.mxu1  ;;  %5033 = vmatprep.subr.mxu1 %v5893_v53 }
  0xdd   :  { %v6195_v40 = vpop.f32.mrf.mxu0 }
  0xde   :  { %v6198_v37 = vadd.f32 %v4556_v17, %v304_v32  ;;  %v6200_v49 = vpop.f32.mrf.mxu1 }
  0xdf   :  { %v4509_v8 = vpop.f32.mrf.mxu0 }
  0xe0   :  { %v324_v25 = vadd.f32 %v4509_v8, %v6114_v14  ;;  %v4559_v35 = vpop.f32.mrf.mxu1 }
  0xe1   :  { %v6204_v54 = vpop.f32.mrf.mxu0 }
  0xe2   :  { %v6206_v9 = vadd.f32 %v4559_v35, %v324_v25  ;;  %v6208_v27 = vpop.f32.mrf.mxu1 }
  0xe3   :  { %v4512_v47 = vpop.f32.mrf.mxu0 }
  0xe4   :  { %v344_v33 = vadd.f32 %v4512_v47, %v6114_v14  ;;  %v4562_v57 = vpop.f32.mrf.mxu1 }
  0xe5   :  { %v6211_v17 = vpop.f32.mrf.mxu0 }
  0xe6   :  { %v6213_v32 = vadd.f32 %v4562_v57, %v344_v33  ;;  %v6215_v15 = vpop.f32.mrf.mxu1 }
  0xe7   :  { %v4515_v51 = vpop.f32.mrf.mxu0 }
  0xe8   :  { %v364_v8 = vadd.f32 %v4515_v51, %v6114_v14  ;;  %v4565_v20 = vpop.f32.mrf.mxu1 }
  0xe9   :  { %v6218_v48 = vpop.f32.mrf.mxu0 }
  0xea   :  { %v6220_v35 = vadd.f32 %v4565_v20, %v364_v8  ;;  %v6222_v25 = vpop.f32.mrf.mxu1 }
  0xeb   :  { %v4518_v42 = vpop.f32.mrf.mxu0 }
  0xec   :  { %v384_v47 = vadd.f32 %v4518_v42, %v6114_v14  ;;  %v4568_v19 = vpop.f32.mrf.mxu1 }
  0xed   :  { %v6225_v12 = vpop.f32.mrf.mxu0 }
  0xee   :  { %v6227_v57 = vadd.f32 %v4568_v19, %v384_v47  ;;  %v6229_v33 = vpop.f32.mrf.mxu1 }
  0xef   :  { %v4521_v41 = vpop.f32.mrf.mxu0 }
  0xf0   :  { %v404_v51 = vadd.f32 %v4521_v41, %v6114_v14  ;;  %v4571_v13 = vpop.f32.mrf.mxu1 }
  0xf1   :  { %v6232_v3 = vpop.f32.mrf.mxu0 }
  0xf2   :  { %v6234_v20 = vadd.f32 %v4571_v13, %v404_v51  ;;  %v6236_v8 = vpop.f32.mrf.mxu1 }
  0xf3   :  { %v4524_v34 = vpop.f32.mrf.mxu0 }
  0xf4   :  { %v424_v42 = vadd.f32 %v4524_v34, %v6114_v14  ;;  %v4574_v60 = vpop.f32.mrf.mxu1 }
  0xf5   :  { %v6239_v30 = vpop.f32.mrf.mxu0 }
  0xf6   :  { %v6241_v19 = vadd.f32 %v4574_v60, %v424_v42  ;;  %v6243_v47 = vpop.f32.mrf.mxu1 }
  0xf7   :  { %v4527_v36 = vpop.f32.mrf.mxu0 }
  0xf8   :  { %v444_v41 = vadd.f32 %v4527_v36, %v6114_v14  ;;  %v4577_v52 = vpop.f32.mrf.mxu1 }
  0xf9   :  { %v6246_v23 = vpop.f32.mrf.mxu0 }
  0xfa   :  { %v6248_v13 = vadd.f32 %v4577_v52, %v444_v41  ;;  %v6250_v51 = vpop.f32.mrf.mxu1 }
  0xfb   :  { %v4530_v58 = vpop.f32.mrf.mxu0 }
  0xfc   :  { %v464_v34 = vadd.f32 %v4530_v58, %v6114_v14  ;;  %v4580_v61 = vpop.f32.mrf.mxu1 }
  0xfd   :  { %v6253_v2 = vpop.f32.mrf.mxu0 }
  0xfe   :  { %v6255_v60 = vadd.f32 %v4580_v61, %v464_v34  ;;  %v6257_v42 = vpop.f32.mrf.mxu1 }
  0xff   :  { %v4533_v29 = vpop.f32.mrf.mxu0 }
 0x100   :  { %v484_v36 = vadd.f32 %v4533_v29, %v6114_v14  ;;  %v4583_v24 = vpop.f32.mrf.mxu1 }
 0x101   :  { %v6260_v59 = vpop.f32.mrf.mxu0 }
 0x102   :  { %v6262_v52 = vadd.f32 %v4583_v24, %v484_v36  ;;  %v6264_v41 = vpop.f32.mrf.mxu1 }
 0x103   :  { %v4536_v11 = vpop.f32.mrf.mxu0 }
 0x104   :  { %v504_v58 = vadd.f32 %v4536_v11, %v6114_v14  ;;  %v4586_v22 = vpop.f32.mrf.mxu1 }
 0x105   :  { %v6267_v31 = vpop.f32.mrf.mxu0 }
 0x106   :  { %v6269_v61 = vadd.f32 %v4586_v22, %v504_v58  ;;  %v6271_v34 = vpop.f32.mrf.mxu1 }
 0x107   :  { %7901 = vst [vmem:[#allocation50_spill] sm:$0xff] %v6271_v34  ;;  %v4539_v10 = vpop.f32.mrf.mxu0 }
 0x108   :  { %v524_v29 = vadd.f32 %v4539_v10, %v6114_v14  ;;  %v4589_v55 = vpop.f32.mrf.mxu1 }
 0x109   :  { %v6274_v62 = vpop.f32.mrf.mxu0 }
 0x10a   :  { %v6276_v24 = vadd.f32 %v4589_v55, %v524_v29  ;;  %v6278_v36 = vpop.f32.mrf.mxu1 }
 0x10b   :  { %7902 = vst [vmem:[#allocation51_spill] sm:$0xff] %v6278_v36  ;;  %v4542_v50 = vpop.f32.mrf.mxu0 }
 0x10c   :  { %v544_v11 = vadd.f32 %v4542_v50, %v6114_v14  ;;  %v4592_v16 = vpop.f32.mrf.mxu1 }
 0x10d   :  { %v6281_v46 = vpop.f32.mrf.mxu0 }
 0x10e   :  { %v6283_v22 = vadd.f32 %v4592_v16, %v544_v11  ;;  %v6285_v58 = vpop.f32.mrf.mxu1 }
 0x10f   :  { %7903 = vst [vmem:[#allocation52_spill] sm:$0xff] %v6285_v58  ;;  %v6287_v28 = vpop.f32.mrf.mxu0 }
 0x110   :  { %v6289_v10 = vpop.f32.mrf.mxu1 }
 0x111   :  { %7904 = vst [vmem:[#allocation53_spill] sm:$0xff] %v6289_v10  ;;  %v6291_v18 = vpop.f32.mrf.mxu0 }
 0x112   :  { %v6293_v55 = vpop.f32.mrf.mxu1 }
 0x113   :  { %7905 = vst [vmem:[#allocation54_spill] sm:$0xff] %v6293_v55  ;;  %v6295_v29 = vpop.f32.mrf.mxu0 }
 0x114   :  { %v6297_v45 = vpop.f32.mrf.mxu1 }
 0x115   :  { %7906 = vst [vmem:[#allocation55_spill] sm:$0xff] %v6297_v45  ;;  %v6299_v50 = vpop.f32.mrf.mxu0 }
 0x116   :  { %v6301_v7 = vpop.f32.mrf.mxu1 }
 0x117   :  { %7907 = vst [vmem:[#allocation56_spill] sm:$0xff] %v6301_v7  ;;  %v4603_v16 = vpop.f32.mrf.mxu0 }
 0x118   :  { %v915_v11 = vadd.f32 %v4603_v16, %v6187_v5  ;;  %v4653_v4 = vpop.f32.mrf.mxu1 }
 0x119   :  { %v6304_v21 = vpop.f32.mrf.mxu0 }
 0x11a   :  { %v6306_v0 = vadd.f32 %v4653_v4, %v915_v11  ;;  %v6308_v44 = vpop.f32.mrf.mxu1 }
 0x11b   :  { %7909 = vst [vmem:[#allocation58_spill] sm:$0xff] %v6308_v44  ;;  %v4606_v53 = vpop.f32.mrf.mxu0 }
 0x11c   :  { %7908 = vst [vmem:[#allocation57_spill] sm:$0xff] %v6306_v0  ;;  %v929_v55 = vadd.f32 %v4606_v53, %v6198_v37  ;;  %v4656_v58 = vpop.f32.mrf.mxu1 }
 0x11d   :  { %v6311_v36 = vpop.f32.mrf.mxu0 }
 0x11e   :  { %v6313_v45 = vadd.f32 %v4656_v58, %v929_v55  ;;  %v6315_v34 = vpop.f32.mrf.mxu1 }
 0x11f   :  { %7911 = vst [vmem:[#allocation60_spill] sm:$0xff] %v6315_v34  ;;  %v4609_v7 = vpop.f32.mrf.mxu0 }
 0x120   :  { %7910 = vst [vmem:[#allocation59_spill] sm:$0xff] %v6313_v45  ;;  %v943_v5 = vadd.f32 %v4609_v7, %v6206_v9  ;;  %v4659_v16 = vpop.f32.mrf.mxu1 }
 0x121   :  { %v6318_v10 = vpop.f32.mrf.mxu0 }
 0x122   :  { %v6320_v4 = vadd.f32 %v4659_v16, %v943_v5  ;;  %v6322_v11 = vpop.f32.mrf.mxu1 }
 0x123   :  { %7913 = vst [vmem:[#allocation62_spill] sm:$0xff] %v6322_v11  ;;  %v4612_v0 = vpop.f32.mrf.mxu0 }
 0x124   :  { %7912 = vst [vmem:[#allocation61_spill] sm:$0xff] %v6320_v4  ;;  %v957_v53 = vadd.f32 %v4612_v0, %v6213_v32  ;;  %v4662_v37 = vpop.f32.mrf.mxu1 }
 0x125   :  { %v6325_v44 = vpop.f32.mrf.mxu0 }
 0x126   :  { %v6327_v58 = vadd.f32 %v4662_v37, %v957_v53  ;;  %v6329_v55 = vpop.f32.mrf.mxu1 }
 0x127   :  { %7915 = vst [vmem:[#allocation64_spill] sm:$0xff] %v6329_v55  ;;  %v4615_v45 = vpop.f32.mrf.mxu0 }
 0x128   :  { %7914 = vst [vmem:[#allocation63_spill] sm:$0xff] %v6327_v58  ;;  %v971_v7 = vadd.f32 %v4615_v45, %v6220_v35  ;;  %v4665_v9 = vpop.f32.mrf.mxu1 }
 0x129   :  { %v6332_v34 = vpop.f32.mrf.mxu0 }
 0x12a   :  { %v6334_v5 = vadd.f32 %v4665_v9, %v971_v7  ;;  %v6336_v16 = vpop.f32.mrf.mxu1 }
 0x12b   :  { %7917 = vst [vmem:[#allocation66_spill] sm:$0xff] %v6336_v16  ;;  %v4618_v4 = vpop.f32.mrf.mxu0 }
 0x12c   :  { %7916 = vst [vmem:[#allocation65_spill] sm:$0xff] %v6334_v5  ;;  %v985_v0 = vadd.f32 %v4618_v4, %v6227_v57  ;;  %v4668_v32 = vpop.f32.mrf.mxu1 }
 0x12d   :  { %v6339_v11 = vpop.f32.mrf.mxu0 }
 0x12e   :  { %v6341_v53 = vadd.f32 %v4668_v32, %v985_v0  ;;  %v6343_v37 = vpop.f32.mrf.mxu1 }
 0x12f   :  { %7919 = vst [vmem:[#allocation68_spill] sm:$0xff] %v6343_v37  ;;  %v4621_v58 = vpop.f32.mrf.mxu0 }
 0x130   :  { %7918 = vst [vmem:[#allocation67_spill] sm:$0xff] %v6341_v53  ;;  %v999_v45 = vadd.f32 %v4621_v58, %v6234_v20  ;;  %v4671_v35 = vpop.f32.mrf.mxu1 }
 0x131   :  { %v6346_v55 = vpop.f32.mrf.mxu0 }
 0x132   :  { %v6348_v7 = vadd.f32 %v4671_v35, %v999_v45  ;;  %v6350_v9 = vpop.f32.mrf.mxu1 }
 0x133   :  { %7921 = vst [vmem:[#allocation70_spill] sm:$0xff] %v6350_v9  ;;  %v4624_v5 = vpop.f32.mrf.mxu0 }
 0x134   :  { %7920 = vst [vmem:[#allocation69_spill] sm:$0xff] %v6348_v7  ;;  %v1013_v57 = vadd.f32 %v4624_v5, %v6241_v19  ;;  %v4674_v4 = vpop.f32.mrf.mxu1 }
 0x135   :  { %v6353_v16 = vpop.f32.mrf.mxu0 }
 0x136   :  { %v6355_v0 = vadd.f32 %v4674_v4, %v1013_v57  ;;  %v6357_v32 = vpop.f32.mrf.mxu1 }
 0x137   :  { %7923 = vst [vmem:[#allocation72_spill] sm:$0xff] %v6357_v32  ;;  %v4627_v53 = vpop.f32.mrf.mxu0 }
 0x138   :  { %7922 = vst [vmem:[#allocation71_spill] sm:$0xff] %v6355_v0  ;;  %v1027_v20 = vadd.f32 %v4627_v53, %v6248_v13  ;;  %v4677_v58 = vpop.f32.mrf.mxu1 }
 0x139   :  { %v6360_v37 = vpop.f32.mrf.mxu0 }
 0x13a   :  { %v6362_v45 = vadd.f32 %v4677_v58, %v1027_v20  ;;  %v6364_v35 = vpop.f32.mrf.mxu1 }
 0x13b   :  { %v4630_v7 = vpop.f32.mrf.mxu0 }
 0x13c   :  { %7924 = vst [vmem:[#allocation73_spill] sm:$0xff] %v6362_v45  ;;  %v1041_v19 = vadd.f32 %v4630_v7, %v6255_v60  ;;  %v4680_v5 = vpop.f32.mrf.mxu1  ;;  %v234_v60 = vadd.f32 %v6114_v14, %v6147_v6  ;;  %v254_v7 = vadd.f32 %v6114_v14, %v6171_v43  ;;  %v354_v43 = vadd.f32 %v6114_v14, %v6218_v48 }
 0x13d   :  { %v6367_v9 = vpop.f32.mrf.mxu0 }
 0x13e   :  { %v6369_v57 = vadd.f32 %v4680_v5, %v1041_v19  ;;  %v6371_v4 = vpop.f32.mrf.mxu1  ;;  %v274_v5 = vadd.f32 %v6114_v14, %v6184_v26  ;;  %v374_v26 = vadd.f32 %v6114_v14, %v6225_v12  ;;  %v434_v12 = vadd.f32 %v6114_v14, %v6246_v23 }
 0x13f   :  { %v4633_v0 = vpop.f32.mrf.mxu0  ;;  %v887_v23 = vadd.f32 %v6287_v28, %v6152_v39  ;;  %v534_v28 = vadd.f32 %v6114_v14, %v6281_v46 }
 0x140   :  { %7925 = vst [vmem:[#allocation74_spill] sm:$0xff] %v6369_v57  ;;  %v1055_v13 = vadd.f32 %v4633_v0, %v6262_v52  ;;  %v4683_v53 = vpop.f32.mrf.mxu1  ;;  %v294_v52 = vadd.f32 %v6114_v14, %v6195_v40  ;;  %v644_v48 = vadd.f32 %v6189_v56, %v274_v5  ;;  %v692_v56 = vadd.f32 %v6222_v25, %v354_v43  ;;  %v7930_v43 = vld [vmem:[#allocation51_spill] sm:$0xff] }
 0x141   :  { %v6374_v32 = vpop.f32.mrf.mxu0 }
 0x142   :  { %v6376_v20 = vadd.f32 %v4683_v53, %v1055_v13  ;;  %v6378_v58 = vpop.f32.mrf.mxu1  ;;  %v314_v13 = vadd.f32 %v6114_v14, %v6204_v54  ;;  %v334_v53 = vadd.f32 %v6114_v14, %v6211_v17  ;;  %v394_v54 = vadd.f32 %v6114_v14, %v6232_v3 }
 0x143   :  { %7927 = vst [vmem:[#allocation76_spill] sm:$0xff] %v6378_v58  ;;  %v4636_v19 = vpop.f32.mrf.mxu0  ;;  %v414_v17 = vadd.f32 %v6114_v14, %v6239_v30  ;;  %v656_v58 = vadd.f32 %v6200_v49, %v294_v52  ;;  %v454_v3 = vadd.f32 %v6114_v14, %v6253_v2  ;;  %v474_v30 = vadd.f32 %v6114_v14, %v6260_v59 }
 0x144   :  { %7926 = vst [vmem:[#allocation75_spill] sm:$0xff] %v6376_v20  ;;  %v1069_v0 = vadd.f32 %v4636_v19, %v6269_v61  ;;  %v4686_v57 = vpop.f32.mrf.mxu1  ;;  %v620_v61 = vadd.f32 %v6154_v63, %v234_v60  ;;  %v632_v19 = vadd.f32 %v6176_v1, %v254_v7  ;;  %v668_v63 = vadd.f32 %v6208_v27, %v314_v13  ;;  %v7928_v13 = vld [vmem:[#allocation53_spill] sm:$0xff] }
 0x145   :  { %v6393_v6 = vpop.f32.mrf.mxu0  ;;  %v680_v1 = vadd.f32 %v6215_v15, %v334_v53  ;;  %v704_v49 = vadd.f32 %v6229_v33, %v374_v26  ;;  %v716_v15 = vadd.f32 %v6236_v8, %v394_v54  ;;  %v728_v2 = vadd.f32 %v6243_v47, %v414_v17  ;;  %v7933_v17 = vld [vmem:[#allocation55_spill] sm:$0xff] }
 0x146   :  { %v6399_v20 = vadd.f32 %v4686_v57, %v1069_v0  ;;  %v6401_v40 = vpop.f32.mrf.mxu1  ;;  %v494_v59 = vadd.f32 %v6114_v14, %v6267_v31  ;;  %v740_v33 = vadd.f32 %v6250_v51, %v434_v12  ;;  %v880_v39 = vadd.f32 %v6291_v18, %v620_v61  ;;  %v7934_v12 = vld [vmem:[#allocation56_spill] sm:$0xff] }
 0x147   :  { %v4639_v45 = vpop.f32.mrf.mxu0  ;;  %v752_v8 = vadd.f32 %v6257_v42, %v454_v3  ;;  %v764_v47 = vadd.f32 %v6264_v41, %v474_v30  ;;  %v901_v31 = vadd.f32 %v6295_v29, %v6174_v38  ;;  %v1179_v51 = vadd.f32 %v7928_v13, %v887_v23  ;;  %v7940_v13 = vld [vmem:[#allocation68_spill] sm:$0xff] }
 0x148   :  { %v1083_v57 = vadd.f32 %v4639_v45, %v6276_v24  ;;  %v4689_v0 = vpop.f32.mrf.mxu1  ;;  %v514_v45 = vadd.f32 %v6114_v14, %v6274_v62  ;;  %v894_v62 = vadd.f32 %v6299_v50, %v632_v19  ;;  %v908_v53 = vadd.f32 %v6304_v21, %v644_v48  ;;  %v7931_v50 = vld [vmem:[#allocation52_spill] sm:$0xff]  ;;  %v7932_v19 = vld [vmem:[#allocation54_spill] sm:$0xff] }
 0x149   :  { %v6420_v60 = vpop.f32.mrf.mxu0  ;;  %v922_v46 = vadd.f32 %v6311_v36, %v656_v58  ;;  %v936_v26 = vadd.f32 %v6318_v10, %v668_v63  ;;  %v950_v38 = vadd.f32 %v6325_v44, %v680_v1  ;;  %v800_v61 = vadd.f32 %v7931_v50, %v534_v28  ;;  %v7935_v63 = vld [vmem:[#allocation58_spill] sm:$0xff]  ;;  %v7936_v1 = vld [vmem:[#allocation60_spill] sm:$0xff] }
 0x14a   :  { %v6426_v24 = vadd.f32 %v4689_v0, %v1083_v57  ;;  %v6428_v27 = vpop.f32.mrf.mxu1  ;;  %v788_v41 = vadd.f32 %v7930_v43, %v514_v45  ;;  %v1171_v54 = vadd.f32 %v7932_v19, %v880_v39  ;;  %v964_v21 = vadd.f32 %v6332_v34, %v692_v56  ;;  %v7937_v34 = vld [vmem:[#allocation62_spill] sm:$0xff] }
 0x14b   :  { %v4642_v25 = vpop.f32.mrf.mxu0  ;;  %v1195_v48 = vadd.f32 %v7933_v17, %v901_v31  ;;  %v1187_v57 = vadd.f32 %v7934_v12, %v894_v62  ;;  %v978_v0 = vadd.f32 %v6339_v11, %v704_v49  ;;  %v992_v3 = vadd.f32 %v6346_v55, %v716_v15  ;;  %v7939_v49 = vld [vmem:[#allocation66_spill] sm:$0xff] }
 0x14c   :  { %v1097_v7 = vadd.f32 %v4642_v25, %v6283_v22  ;;  %v4692_v5 = vpop.f32.mrf.mxu1  ;;  %v7929_v22 = vld [vmem:[#allocation50_spill] sm:$0xff]  ;;  %v1203_v44 = vadd.f32 %v7935_v63, %v908_v53  ;;  %v6466_v30 = vadd.f32 %v7936_v1, %v922_v46  ;;  %v6469_v56 = vadd.f32 %v7937_v34, %v936_v26  ;;  %v7938_v25 = vld [vmem:[#allocation64_spill] sm:$0xff]  ;;  %v7948_v34 = vld [vmem:[#allocation59_spill] sm:$0xff] }
 0x14d   :  { %v1089_v52 = vpop.f32.mrf.mxu0  ;;  %v776_v42 = vadd.f32 %v7929_v22, %v494_v59  ;;  %v6472_v28 = vadd.f32 %v7938_v25, %v950_v38  ;;  %v1006_v39 = vadd.f32 %v6353_v16, %v728_v2  ;;  %v1020_v11 = vadd.f32 %v6360_v37, %v740_v33  ;;  %v7941_v53 = vld [vmem:[#allocation70_spill] sm:$0xff] }
 0x14e   :  { %v6449_v18 = vadd.f32 %v4692_v5, %v1097_v7  ;;  %v6451_v14 = vpop.f32.mrf.mxu1  ;;  %v6477_v15 = vadd.f32 %v7939_v49, %v964_v21  ;;  %v6483_v46 = vadd.f32 %v7941_v53, %v992_v3  ;;  %v1034_v22 = vadd.f32 %v6367_v9, %v752_v8 }
 0x14f   :  { %v4697_v29 = vpop.f32.mrf.mxu0  ;;  %v1048_v16 = vadd.f32 %v6374_v32, %v764_v47  ;;  %v6493_v19 = vadd.f32 %v6364_v35, %v1020_v11  ;;  %v1076_v21 = vadd.f32 %v6420_v60, %v788_v41  ;;  %v1090_v35 = vadd.f32 %v1089_v52, %v800_v61 }
 0x150   :  { %v1499_v36 = vadd.f32 %v4697_v29, %v1179_v51  ;;  %v4747_v58 = vpop.f32.mrf.mxu1  ;;  %v6480_v51 = vadd.f32 %v7940_v13, %v978_v0  ;;  %v7943_v29 = vld [vmem:[#allocation72_spill] sm:$0xff]  ;;  %v6503_v17 = vadd.f32 %v6371_v4, %v1034_v22 }
 0x151   :  { %v1492_v10 = vpop.f32.mrf.mxu0  ;;  %v6490_v50 = vadd.f32 %v7943_v29, %v1006_v39  ;;  %v6520_v63 = vadd.f32 %v6428_v27, %v1076_v21  ;;  %v7949_v39 = vld [vmem:[#allocation2_spill] sm:$0xff]  ;;  %v6534_v27 = vadd.f32 %v6451_v14, %v1090_v35  ;;  %v7955_v35 = vld [vmem:[#allocation11_spill] sm:$0xff] }
 0x152   :  { %v1757_v23 = vadd.f32 %v4747_v58, %v1499_v36  ;;  %v1493_v59 = vadd.f32 %v1492_v10, %v1171_v54  ;;  %v1750_v45 = vpop.f32.mrf.mxu1  ;;  %v1062_v54 = vadd.f32 %v6393_v6, %v776_v42 }
 0x153   :  { %v4700_v55 = vpop.f32.mrf.mxu0 }
 0x154   :  { %v1941_v7 = vmax.f32 %v1757_v23, 0.0  ;;  %v1751_v5 = vadd.f32 %v1750_v45, %v1493_v59  ;;  %v1511_v31 = vadd.f32 %v4700_v55, %v1195_v48  ;;  %v4750_v62 = vpop.f32.mrf.mxu1  ;;  %v7944_v48 = vld [vmem:[#allocation76_spill] sm:$0xff]  ;;  %v6517_v4 = vadd.f32 %v6401_v40, %v1062_v54 }
 0x155   :  { %v1504_v2 = vpop.f32.mrf.mxu0  ;;  %v6506_v12 = vadd.f32 %v7944_v48, %v1048_v16 }
 0x156   :  { %v6487_v37 = vand.u32 4294901760, %v1941_v7  ;;  %v1940_v33 = vmax.f32 %v1751_v5, 0.0  ;;  %v1769_v43 = vadd.f32 %v4750_v62, %v1511_v31  ;;  %v1505_v26 = vadd.f32 %v1504_v2, %v1187_v57  ;;  %v1762_v38 = vpop.f32.mrf.mxu1  ;;  %v7945_v57 = vld [vmem:[#allocation57_spill] sm:$0xff] }
 0x157   :  { %v4703_v9 = vpop.f32.mrf.mxu0 }
 0x158   :  { %7942 = vst [vmem:[#allocation53_spill] sm:$0xff] %v6487_v37  ;;  %v6498_v32 = vsub.f32 %v1941_v7, %v6487_v37  ;;  %v6500_v8 = vand.u32 4294901760, %v1940_v33  ;;  %v1943_v47 = vmax.f32 %v1769_v43, 0.0  ;;  %v1763_v36 = vadd.f32 %v1762_v38, %v1505_v26  ;;  %v4753_v58 = vpop.f32.mrf.mxu1  ;;  %v7950_v7 = vld [vmem:[#allocation4_spill] sm:$0xff]  ;;  %v7953_v38 = vld [vmem:[#allocation61_spill] sm:$0xff] }
 0x159   :  { %v1523_v6 = vadd.f32 %v4703_v9, %v7945_v57  ;;  %v1516_v42 = vpop.f32.mrf.mxu0  ;;  %v7952_v43 = vld [vmem:[#allocation8_spill] sm:$0xff] }
 0x15a   :  { %v7712_v60 = vand.u32 4294901760, %v6498_v32  ;;  %v6511_v41 = vsub.f32 %v1940_v33, %v6500_v8  ;;  %v6513_v0 = vand.u32 4294901760, %v1943_v47  ;;  %v1942_v3 = vmax.f32 %v1763_v36, 0.0  ;;  %v1774_v10 = vpop.f32.mrf.mxu1  ;;  %4905 = vmatprep.mubr.f32.mxu1 %v6500_v8 }
 0x15b   :  { %v1781_v52 = vadd.f32 %v4753_v58, %v1523_v6  ;;  %v1517_v61 = vadd.f32 %v1516_v42, %v1203_v44  ;;  %v4706_v1 = vpop.f32.mrf.mxu0  ;;  %4906 = vmatmul.mubr.f32.vlgmr.msra.gmra.mxu1 %v6487_v37 }
 0x15c   :  { %7946 = vst [vmem:[#allocation50_spill] sm:$0xff] %v6513_v0  ;;  %v2089_v23 = vsub.f32 %v6498_v32, %v7712_v60  ;;  %v6527_v59 = vsub.f32 %v1943_v47, %v6513_v0  ;;  %v6529_v45 = vand.u32 4294901760, %v1942_v3  ;;  %v1535_v40 = vadd.f32 %v4706_v1, %v7948_v34  ;;  %v4756_v25 = vpop.f32.mrf.mxu1  ;;  %5034 = vmatpush3.msra.mxu1 %v7949_v39 }
 0x15d   :  { %v1945_v44 = vmax.f32 %v1781_v52, 0.0  ;;  %v1775_v11 = vadd.f32 %v1774_v10, %v1517_v61  ;;  %v1528_v55 = vpop.f32.mrf.mxu0  ;;  %v7715_v49 = vand.u32 4294901760, %v6511_v41  ;;  %5035 = vmatprep.subr.mxu1 %v7950_v7 }
 0x15e   :  { %7947 = vst [vmem:[#allocation51_spill] sm:$0xff] %v6529_v45  ;;  %v2090_v5 = vand.u32 4294901760, %v2089_v23  ;;  %v6539_v31 = vsub.f32 %v1942_v3, %v6529_v45  ;;  %v1793_v62 = vadd.f32 %v4756_v25, %v1535_v40  ;;  %v1529_v13 = vadd.f32 %v1528_v55, %v6466_v30  ;;  %v1786_v53 = vpop.f32.mrf.mxu1  ;;  %4908 = vmatprep.mubr.f32.mxu1 %v6529_v45  ;;  %v7958_v55 = vld [vmem:[#allocation63_spill] sm:$0xff] }
 0x15f   :  { %5036 = vmatpush3.msra.mxu1 %v7950_v7  ;;  %v6544_v14 = vand.u32 4294901760, %v1945_v44  ;;  %v1944_v22 = vmax.f32 %v1775_v11, 0.0  ;;  %v4709_v16 = vpop.f32.mrf.mxu0  ;;  %v2079_v2 = vsub.f32 %v6511_v41, %v7715_v49  ;;  %v7710_v33 = vand.u32 4294901760, %v6527_v59 }
 0x160   :  { %4909 = vmatmul.mubr.f32.gmra.mxu1 %v6513_v0  ;;  %5037 = vmatprep.subr.mxu1 %v7952_v43  ;;  %v1947_v30 = vmax.f32 %v1793_v62, 0.0  ;;  %v1787_v26 = vadd.f32 %v1786_v53, %v1529_v13  ;;  %v1547_v29 = vadd.f32 %v4709_v16, %v7953_v38  ;;  %v4759_v54 = vpop.f32.mrf.mxu1  ;;  %v7711_v21 = vand.u32 4294901760, %v6539_v31  ;;  %v7959_v13 = vld [vmem:[#allocation3_spill] sm:$0xff] }
 0x161   :  { %7951 = vst [vmem:[#allocation52_spill] sm:$0xff] %v6544_v14  ;;  %5038 = vmatpush3.msra.mxu1 %v7952_v43  ;;  %v6556_v9 = vsub.f32 %v1945_v44, %v6544_v14  ;;  %v6558_v47 = vand.u32 4294901760, %v1944_v22  ;;  %v1540_v36 = vpop.f32.mrf.mxu0  ;;  %v2080_v58 = vand.u32 4294901760, %v2079_v2  ;;  %v2109_v48 = vsub.f32 %v6527_v59, %v7710_v33 }
 0x162   :  { %5039 = vmatprep.subr.mxu1 %v7955_v35  ;;  %v6564_v57 = vand.u32 4294901760, %v1947_v30  ;;  %v1946_v6 = vmax.f32 %v1787_v26, 0.0  ;;  %v1805_v42 = vadd.f32 %v4759_v54, %v1547_v29  ;;  %v1541_v3 = vadd.f32 %v1540_v36, %v6469_v56  ;;  %v1798_v10 = vpop.f32.mrf.mxu1  ;;  %v7962_v36 = vld [vmem:[#allocation6_spill] sm:$0xff] }
 0x163   :  { %7954 = vst [vmem:[#allocation54_spill] sm:$0xff] %v6558_v47  ;;  %5040 = vmatpush3.msra.mxu1 %v7955_v35  ;;  %v6569_v52 = vsub.f32 %v1944_v22, %v6558_v47  ;;  %4825 = vmatprep.mubr.f32.mxu0 %v2080_v58  ;;  %v4712_v61 = vpop.f32.mrf.mxu0  ;;  %v2099_v1 = vsub.f32 %v6539_v31, %v7711_v21  ;;  %v2110_v23 = vand.u32 4294901760, %v2109_v48  ;;  %v7706_v34 = vand.u32 4294901760, %v6556_v9  ;;  %v7974_v21 = vld [vmem:[#allocation69_spill] sm:$0xff] }
 0x164   :  { %7956 = vst [vmem:[#allocation55_spill] sm:$0xff] %v6564_v57  ;;  %4911 = vmatprep.mubr.f32.mxu1 %v6558_v47  ;;  %v6577_v40 = vsub.f32 %v1947_v30, %v6564_v57  ;;  %v6579_v56 = vand.u32 4294901760, %v1946_v6  ;;  %v1949_v25 = vmax.f32 %v1805_v42, 0.0  ;;  %v1799_v44 = vadd.f32 %v1798_v10, %v1541_v3  ;;  %4826 = vmatmul.mubr.f32.vlgmr.msra.gmra.mxu0 %v2090_v5  ;;  %v4762_v11 = vpop.f32.mrf.mxu1  ;;  %v7960_v30 = vld [vmem:[#allocation14_spill] sm:$0xff] }
 0x165   :  { %4912 = vmatmul.mubr.f32.gmra.mxu1 %v6544_v14  ;;  %v1559_v62 = vadd.f32 %v4712_v61, %v7958_v55  ;;  %4954 = vmatpush3.msra.mxu0 %v7959_v13  ;;  %v1552_v53 = vpop.f32.mrf.mxu0  ;;  %v2100_v22 = vand.u32 4294901760, %v2099_v1  ;;  %v7708_v16 = vand.u32 4294901760, %v6569_v52  ;;  %v2129_v2 = vsub.f32 %v6556_v9, %v7706_v34  ;;  %v7964_v1 = vld [vmem:[#allocation65_spill] sm:$0xff] }
 0x166   :  { %7957 = vst [vmem:[#allocation56_spill] sm:$0xff] %v6579_v56  ;;  %5041 = vmatprep.subr.mxu1 %v7960_v30  ;;  %v6590_v26 = vsub.f32 %v1946_v6, %v6579_v56  ;;  %v6592_v5 = vand.u32 4294901760, %v1949_v25  ;;  %v1948_v38 = vmax.f32 %v1799_v44, 0.0  ;;  %v1553_v29 = vadd.f32 %v1552_v53, %v6472_v28  ;;  %v1810_v54 = vpop.f32.mrf.mxu1  ;;  %4914 = vmatprep.mubr.f32.mxu1 %v6579_v56  ;;  %v7965_v53 = vld [vmem:[#allocation9_spill] sm:$0xff] }
 0x167   :  { %4955 = vmatprep.subr.mxu0 %v7962_v36  ;;  %v1817_v58 = vadd.f32 %v4762_v11, %v1559_v62  ;;  %4828 = vmatprep.mubr.f32.mxu0 %v2100_v22  ;;  %v4715_v48 = vpop.f32.mrf.mxu0  ;;  %v2119_v6 = vsub.f32 %v6569_v52, %v7708_v16  ;;  %v2130_v42 = vand.u32 4294901760, %v2129_v2  ;;  %v7705_v3 = vand.u32 4294901760, %v6577_v40 }
 0x168   :  { %7961 = vst [vmem:[#allocation58_spill] sm:$0xff] %v6592_v5  ;;  %4956 = vmatpush3.msra.mxu0 %v7962_v36  ;;  %v6603_v10 = vsub.f32 %v1949_v25, %v6592_v5  ;;  %v6605_v28 = vand.u32 4294901760, %v1948_v38  ;;  %v1811_v61 = vadd.f32 %v1810_v54, %v1553_v29  ;;  %v1571_v44 = vadd.f32 %v4715_v48, %v7964_v1  ;;  %v4765_v11 = vpop.f32.mrf.mxu1  ;;  %v7967_v1 = vld [vmem:[#allocation12_spill] sm:$0xff] }
 0x169   :  { %4829 = vmatmul.mubr.f32.gmra.mxu0 %v2110_v23  ;;  %4915 = vmatmul.mubr.f32.gmra.mxu1 %v6564_v57  ;;  %v1951_v55 = vmax.f32 %v1817_v58, 0.0  ;;  %v1564_v62 = vpop.f32.mrf.mxu0  ;;  %v2120_v13 = vand.u32 4294901760, %v2119_v6  ;;  %v7707_v22 = vand.u32 4294901760, %v6590_v26  ;;  %v2149_v25 = vsub.f32 %v6577_v40, %v7705_v3 }
 0x16a   :  { %7963 = vst [vmem:[#allocation60_spill] sm:$0xff] %v6605_v28  ;;  %4957 = vmatprep.subr.mxu0 %v7965_v53  ;;  %5042 = vmatpush3.msra.mxu1 %v7960_v30  ;;  %v6616_v2 = vsub.f32 %v1948_v38, %v6605_v28  ;;  %v1950_v23 = vmax.f32 %v1811_v61, 0.0  ;;  %v1829_v29 = vadd.f32 %v4765_v11, %v1571_v44  ;;  %v1822_v36 = vpop.f32.mrf.mxu1  ;;  %v7709_v61 = vand.u32 4294901760, %v6603_v10 }
 0x16b   :  { %v1565_v54 = vadd.f32 %v1564_v62, %v6477_v15  ;;  %4917 = vmatprep.mubr.f32.mxu1 %v6605_v28  ;;  %4958 = vmatpush3.msra.mxu0 %v7965_v53  ;;  %v6621_v58 = vand.u32 4294901760, %v1951_v55  ;;  %v4718_v48 = vpop.f32.mrf.mxu0  ;;  %v2139_v6 = vsub.f32 %v6590_v26, %v7707_v22  ;;  %v2150_v38 = vand.u32 4294901760, %v2149_v25  ;;  %v7969_v62 = vld [vmem:[#allocation67_spill] sm:$0xff] }
 0x16c   :  { %4831 = vmatprep.mubr.f32.mxu0 %v2120_v13  ;;  %4959 = vmatprep.subr.mxu0 %v7967_v1  ;;  %v6628_v44 = vand.u32 4294901760, %v1950_v23  ;;  %v1953_v15 = vmax.f32 %v1829_v29, 0.0  ;;  %v1583_v3 = vadd.f32 %v4718_v48, %v7969_v62  ;;  %v4768_v13 = vpop.f32.mrf.mxu1  ;;  %v7713_v25 = vand.u32 4294901760, %v6616_v2 }
 0x16d   :  { %7966 = vst [vmem:[#allocation62_spill] sm:$0xff] %v6621_v58  ;;  %v1823_v11 = vadd.f32 %v1822_v36, %v1565_v54  ;;  %4832 = vmatmul.mubr.f32.gmra.mxu0 %v2130_v42  ;;  %4918 = vmatmul.mubr.f32.gmra.mxu1 %v6592_v5  ;;  %v6633_v53 = vsub.f32 %v1951_v55, %v6621_v58  ;;  %v1576_v34 = vpop.f32.mrf.mxu0  ;;  %v2140_v22 = vand.u32 4294901760, %v2139_v6  ;;  %v7970_v54 = vld [vmem:[#allocation17_spill] sm:$0xff]  ;;  %v7972_v6 = vld [vmem:[#allocation15_spill] sm:$0xff] }
 0x16e   :  { %7968 = vst [vmem:[#allocation64_spill] sm:$0xff] %v6628_v44  ;;  %4960 = vmatpush3.msra.mxu0 %v7967_v1  ;;  %v2169_v29 = vsub.f32 %v6603_v10, %v7709_v61  ;;  %5043 = vmatprep.subr.mxu1 %v7970_v54  ;;  %v6642_v42 = vsub.f32 %v1950_v23, %v6628_v44  ;;  %v6644_v36 = vand.u32 4294901760, %v1953_v15  ;;  %v1834_v62 = vpop.f32.mrf.mxu1 }
 0x16f   :  { %v1952_v48 = vmax.f32 %v1823_v11, 0.0  ;;  %v1841_v55 = vadd.f32 %v4768_v13, %v1583_v3  ;;  %4920 = vmatprep.mubr.f32.mxu1 %v6628_v44  ;;  %4961 = vmatprep.subr.mxu0 %v7972_v6  ;;  %v1577_v1 = vadd.f32 %v1576_v34, %v6480_v51  ;;  %v4721_v16 = vpop.f32.mrf.mxu0  ;;  %v2159_v61 = vsub.f32 %v6616_v2, %v7713_v25 }
 0x170   :  { %7971 = vst [vmem:[#allocation66_spill] sm:$0xff] %v6644_v36  ;;  %4834 = vmatprep.mubr.f32.mxu0 %v2140_v22  ;;  %v2170_v33 = vand.u32 4294901760, %v2169_v29  ;;  %4962 = vmatpush3.msra.mxu0 %v7972_v6  ;;  %v7714_v23 = vand.u32 4294901760, %v6633_v53  ;;  %v6655_v3 = vsub.f32 %v1953_v15, %v6644_v36  ;;  %v1595_v60 = vadd.f32 %v4721_v16, %v7974_v21  ;;  %v4771_v51 = vpop.f32.mrf.mxu1  ;;  %v7975_v6 = vld [vmem:[#allocation18_spill] sm:$0xff] }
 0x171   :  { %v6657_v11 = vand.u32 4294901760, %v1952_v48  ;;  %v1955_v13 = vmax.f32 %v1841_v55, 0.0  ;;  %4835 = vmatmul.mubr.f32.gmra.mxu0 %v2150_v38  ;;  %4921 = vmatmul.mubr.f32.gmra.mxu1 %v6621_v58  ;;  %v1835_v34 = vadd.f32 %v1834_v62, %v1577_v1  ;;  %v1588_v22 = vpop.f32.mrf.mxu0  ;;  %v2160_v25 = vand.u32 4294901760, %v2159_v61 }
 0x172   :  { %v7720_v29 = vand.u32 4294901760, %v6642_v42  ;;  %4963 = vmatprep.subr.mxu0 %v7975_v6  ;;  %v2189_v15 = vsub.f32 %v6633_v53, %v7714_v23  ;;  %5044 = vmatpush3.msra.mxu1 %v7970_v54  ;;  %v1853_v16 = vadd.f32 %v4771_v51, %v1595_v60  ;;  %v1589_v38 = vadd.f32 %v1588_v22, %v6483_v46  ;;  %v1846_v62 = vpop.f32.mrf.mxu1  ;;  %v7978_v22 = vld [vmem:[#allocation71_spill] sm:$0xff] }
 0x173   :  { %7973 = vst [vmem:[#allocation68_spill] sm:$0xff] %v6657_v11  ;;  %v6668_v55 = vsub.f32 %v1952_v48, %v6657_v11  ;;  %v6670_v21 = vand.u32 4294901760, %v1955_v13  ;;  %4923 = vmatprep.mubr.f32.mxu1 %v6657_v11  ;;  %4964 = vmatpush3.msra.mxu0 %v7975_v6  ;;  %v1954_v61 = vmax.f32 %v1835_v34, 0.0  ;;  %v4724_v1 = vpop.f32.mrf.mxu0  ;;  %v7977_v48 = vld [vmem:[#allocation21_spill] sm:$0xff]  ;;  %v7723_v58 = vand.u32 4294901760, %v6655_v3 }
 0x174   :  { %4837 = vmatprep.mubr.f32.mxu0 %v2160_v25  ;;  %v2179_v23 = vsub.f32 %v6642_v42, %v7720_v29  ;;  %v2190_v49 = vand.u32 4294901760, %v2189_v15  ;;  %4965 = vmatprep.subr.mxu0 %v7977_v48  ;;  %v1957_v46 = vmax.f32 %v1853_v16, 0.0  ;;  %v1847_v51 = vadd.f32 %v1846_v62, %v1589_v38  ;;  %v4774_v25 = vpop.f32.mrf.mxu1 }
 0x175   :  { %7976 = vst [vmem:[#allocation70_spill] sm:$0xff] %v6670_v21  ;;  %v6681_v60 = vsub.f32 %v1955_v13, %v6670_v21  ;;  %v1607_v11 = vadd.f32 %v4724_v1, %v7978_v22  ;;  %4838 = vmatmul.mubr.f32.gmra.mxu0 %v2170_v33  ;;  %4924 = vmatmul.mubr.f32.gmra.mxu1 %v6644_v36  ;;  %v6685_v34 = vand.u32 4294901760, %v1954_v61  ;;  %v1600_v6 = vpop.f32.mrf.mxu0  ;;  %v7732_v15 = vand.u32 4294901760, %v6668_v55  ;;  %v7980_v13 = vld [vmem:[#allocation20_spill] sm:$0xff] }
 0x176   :  { %v2180_v29 = vand.u32 4294901760, %v2179_v23  ;;  %v2209_v44 = vsub.f32 %v6655_v3, %v7723_v58  ;;  %4966 = vmatpush3.msra.mxu0 %v7977_v48  ;;  %5045 = vmatprep.subr.mxu1 %v7980_v13  ;;  %v6693_v16 = vand.u32 4294901760, %v1957_v46  ;;  %v1956_v33 = vmax.f32 %v1847_v51, 0.0  ;;  %v1858_v1 = vpop.f32.mrf.mxu1  ;;  %v7982_v23 = vld [vmem:[#allocation24_spill] sm:$0xff] }
 0x177   :  { %7979 = vst [vmem:[#allocation72_spill] sm:$0xff] %v6685_v34  ;;  %v1865_v38 = vadd.f32 %v4774_v25, %v1607_v11  ;;  %v1601_v62 = vadd.f32 %v1600_v6, %v6490_v50  ;;  %5046 = vmatpush3.msra.mxu1 %v7980_v13  ;;  %4967 = vmatprep.subr.mxu0 %v7982_v23  ;;  %v4727_v48 = vpop.f32.mrf.mxu0  ;;  %v7733_v11 = vand.u32 4294901760, %v6681_v60 }
 0x178   :  { %7981 = vst [vmem:[#allocation76_spill] sm:$0xff] %v6693_v16  ;;  %v6699_v22 = vsub.f32 %v1954_v61, %v6685_v34  ;;  %4840 = vmatprep.mubr.f32.mxu0 %v2180_v29  ;;  %4926 = vmatprep.mubr.f32.mxu1 %v6685_v34  ;;  %v2199_v58 = vsub.f32 %v6668_v55, %v7732_v15  ;;  %v2210_v51 = vand.u32 4294901760, %v2209_v44  ;;  %v6709_v25 = vand.u32 4294901760, %v1956_v33  ;;  %v4777_v29 = vpop.f32.mrf.mxu1  ;;  %v7984_v61 = vld [vmem:[#allocation73_spill] sm:$0xff] }
 0x179   :  { %v6707_v50 = vsub.f32 %v1957_v46, %v6693_v16  ;;  %v1959_v6 = vmax.f32 %v1865_v38, 0.0  ;;  %v1859_v36 = vadd.f32 %v1858_v1, %v1601_v62  ;;  %4841 = vmatmul.mubr.f32.gmra.mxu0 %v2190_v49  ;;  %4927 = vmatmul.mubr.f32.gmra.mxu1 %v6670_v21  ;;  %v1619_v34 = vadd.f32 %v4727_v48, %v7984_v61  ;;  %v1612_v5 = vpop.f32.mrf.mxu0  ;;  %v7985_v46 = vld [vmem:[#allocation22_spill] sm:$0xff] }
 0x17a   :  { %7983 = vst [vmem:[#allocation57_spill] sm:$0xff] %v6709_v25  ;;  %v2200_v28 = vand.u32 4294901760, %v2199_v58  ;;  %v7740_v15 = vand.u32 4294901760, %v6699_v22  ;;  %v2229_v44 = vsub.f32 %v6681_v60, %v7733_v11  ;;  %4968 = vmatpush3.msra.mxu0 %v7982_v23  ;;  %5047 = vmatprep.subr.mxu1 %v7985_v46  ;;  %v6721_v49 = vsub.f32 %v1956_v33, %v6709_v25  ;;  %v1870_v48 = vpop.f32.mrf.mxu1  ;;  %v7987_v33 = vld [vmem:[#allocation27_spill] sm:$0xff] }
 0x17b   :  { %v6723_v62 = vand.u32 4294901760, %v1959_v6  ;;  %v1958_v1 = vmax.f32 %v1859_v36, 0.0  ;;  %4929 = vmatprep.mubr.f32.mxu1 %v6709_v25  ;;  %5048 = vmatpush3.msra.mxu1 %v7985_v46  ;;  %v1877_v58 = vadd.f32 %v4777_v29, %v1619_v34  ;;  %v1613_v61 = vadd.f32 %v1612_v5, %v6493_v19  ;;  %v4730_v23 = vpop.f32.mrf.mxu0  ;;  %v7990_v34 = vld [vmem:[#allocation74_spill] sm:$0xff] }
 0x17c   :  { %4843 = vmatprep.mubr.f32.mxu0 %v2200_v28  ;;  %v2219_v11 = vsub.f32 %v6699_v22, %v7740_v15  ;;  %v2230_v38 = vand.u32 4294901760, %v2229_v44  ;;  %4969 = vmatprep.subr.mxu0 %v7987_v33  ;;  %v7988_v21 = vand.u32 4294901760, %v6707_v50  ;;  %v1631_v19 = vadd.f32 %v4730_v23, %v7990_v34  ;;  %v4780_v5 = vpop.f32.mrf.mxu1 }
 0x17d   :  { %7986 = vst [vmem:[#allocation59_spill] sm:$0xff] %v6723_v62  ;;  %v6736_v25 = vsub.f32 %v1959_v6, %v6723_v62  ;;  %v6738_v57 = vand.u32 4294901760, %v1958_v1  ;;  %4844 = vmatmul.mubr.f32.gmra.mxu0 %v2210_v51  ;;  %4930 = vmatmul.mubr.f32.gmra.mxu1 %v6693_v16  ;;  %v1961_v28 = vmax.f32 %v1877_v58, 0.0  ;;  %v1871_v29 = vadd.f32 %v1870_v48, %v1613_v61  ;;  %v1624_v44 = vpop.f32.mrf.mxu0 }
 0x17e   :  { %v2249_v36 = vsub.f32 %v6707_v50, %v7988_v21  ;;  %v2220_v15 = vand.u32 4294901760, %v2219_v11  ;;  %v7749_v56 = vand.u32 4294901760, %v6721_v49  ;;  %4970 = vmatpush3.msra.mxu0 %v7987_v33  ;;  %v7991_v21 = vld [vmem:[#allocation25_spill] sm:$0xff]  ;;  %v1889_v23 = vadd.f32 %v4780_v5, %v1631_v19  ;;  %v1882_v34 = vpop.f32.mrf.mxu1 }
 0x17f   :  { %7989 = vst [vmem:[#allocation2_spill] sm:$0xff] %v6738_v57  ;;  %5049 = vmatprep.subr.mxu1 %v7991_v21  ;;  %v7752_v6 = vand.u32 4294901760, %v6736_v25  ;;  %v6747_v14 = vsub.f32 %v1958_v1, %v6738_v57  ;;  %v1625_v51 = vadd.f32 %v1624_v44, %v6503_v17  ;;  %4932 = vmatprep.mubr.f32.mxu1 %v6738_v57  ;;  %v6752_v11 = vand.u32 4294901760, %v1961_v28  ;;  %v4733_v58 = vpop.f32.mrf.mxu0  ;;  %v7993_v1 = vld [vmem:[#allocation30_spill] sm:$0xff]  ;;  %v7994_v44 = vld [vmem:[#allocation75_spill] sm:$0xff] }
 0x180   :  { %5050 = vmatpush3.msra.mxu1 %v7991_v21  ;;  %v1960_v48 = vmax.f32 %v1871_v29, 0.0  ;;  %4846 = vmatprep.mubr.f32.mxu0 %v2220_v15  ;;  %v2239_v61 = vsub.f32 %v6721_v49, %v7749_v56  ;;  %v2250_v33 = vand.u32 4294901760, %v2249_v36  ;;  %v1963_v19 = vmax.f32 %v1889_v23, 0.0  ;;  %v4783_v15 = vpop.f32.mrf.mxu1 }
 0x181   :  { %7992 = vst [vmem:[#allocation4_spill] sm:$0xff] %v6752_v11  ;;  %4971 = vmatprep.subr.mxu0 %v7993_v1  ;;  %v2269_v17 = vsub.f32 %v6736_v25, %v7752_v6  ;;  %v1883_v5 = vadd.f32 %v1882_v34, %v1625_v51  ;;  %v1643_v57 = vadd.f32 %v4733_v58, %v7994_v44  ;;  %v1636_v36 = vpop.f32.mrf.mxu0  ;;  %v7759_v47 = vand.u32 4294901760, %v6747_v14  ;;  %v7996_v6 = vld [vmem:[#allocation28_spill] sm:$0xff] }
 0x182   :  { %4847 = vmatmul.mubr.f32.gmra.mxu0 %v2230_v38  ;;  %4933 = vmatmul.mubr.f32.gmra.mxu1 %v6723_v62  ;;  %v6764_v29 = vsub.f32 %v1961_v28, %v6752_v11  ;;  %v6766_v16 = vand.u32 4294901760, %v1960_v48  ;;  %v2240_v56 = vand.u32 4294901760, %v2239_v61  ;;  %v6771_v23 = vand.u32 4294901760, %v1963_v19  ;;  %v1894_v58 = vpop.f32.mrf.mxu1  ;;  %v7998_v28 = vld [vmem:[#allocation34_spill] sm:$0xff] }
 0x183   :  { %4972 = vmatpush3.msra.mxu0 %v7993_v1  ;;  %5051 = vmatprep.subr.mxu1 %v7996_v6  ;;  %v1962_v51 = vmax.f32 %v1883_v5, 0.0  ;;  %v1901_v38 = vadd.f32 %v4783_v15, %v1643_v57  ;;  %v1637_v34 = vadd.f32 %v1636_v36, %v6506_v12  ;;  %v4736_v1 = vpop.f32.mrf.mxu0  ;;  %v2259_v57 = vsub.f32 %v6747_v14, %v7759_v47 }
 0x184   :  { %7995 = vst [vmem:[#allocation8_spill] sm:$0xff] %v6766_v16  ;;  %7997 = vst [vmem:[#allocation61_spill] sm:$0xff] %v6771_v23  ;;  %5052 = vmatpush3.msra.mxu1 %v7996_v6  ;;  %4973 = vmatprep.subr.mxu0 %v7998_v28  ;;  %v7762_v44 = vand.u32 4294901760, %v6764_v29  ;;  %v6778_v61 = vsub.f32 %v1960_v48, %v6766_v16  ;;  %v2270_v5 = vand.u32 4294901760, %v2269_v17  ;;  %v4786_v48 = vpop.f32.mrf.mxu1 }
 0x185   :  { %4849 = vmatprep.mubr.f32.mxu0 %v2240_v56  ;;  %4935 = vmatprep.mubr.f32.mxu1 %v6766_v16  ;;  %v6785_v12 = vsub.f32 %v1963_v19, %v6771_v23  ;;  %v6787_v15 = vand.u32 4294901760, %v1962_v51  ;;  %v1965_v36 = vmax.f32 %v1901_v38, 0.0  ;;  %v1895_v62 = vadd.f32 %v1894_v58, %v1637_v34  ;;  %v1648_v0 = vpop.f32.mrf.mxu0  ;;  %v8000_v19 = vld [vmem:[#allocation31_spill] sm:$0xff] }
 0x186   :  { %4850 = vmatmul.mubr.f32.gmra.mxu0 %v2250_v33  ;;  %4936 = vmatmul.mubr.f32.gmra.mxu1 %v6752_v11  ;;  %v2289_v56 = vsub.f32 %v6764_v29, %v7762_v44  ;;  %v1655_v16 = vadd.f32 %v4736_v1, %v6399_v20  ;;  %v2260_v47 = vand.u32 4294901760, %v2259_v57  ;;  %v7767_v17 = vand.u32 4294901760, %v6778_v61  ;;  %v1906_v11 = vpop.f32.mrf.mxu1 }
 0x187   :  { %7999 = vst [vmem:[#allocation11_spill] sm:$0xff] %v6787_v15  ;;  %4974 = vmatpush3.msra.mxu0 %v7998_v28  ;;  %5053 = vmatprep.subr.mxu1 %v8000_v19  ;;  %v7768_v38 = vand.u32 4294901760, %v6785_v12  ;;  %v6799_v33 = vsub.f32 %v1962_v51, %v6787_v15  ;;  %v6801_v34 = vand.u32 4294901760, %v1965_v36  ;;  %v1964_v58 = vmax.f32 %v1895_v62, 0.0  ;;  %v4739_v28 = vpop.f32.mrf.mxu0  ;;  %v8001_v51 = vld [vmem:[#allocation35_spill] sm:$0xff] }
 0x188   :  { %4938 = vmatprep.mubr.f32.mxu1 %v6787_v15  ;;  %5054 = vmatpush3.msra.mxu1 %v8000_v19  ;;  %v1913_v20 = vadd.f32 %v4786_v48, %v1655_v16  ;;  %v1649_v1 = vadd.f32 %v1648_v0, %v6517_v4  ;;  %v2279_v57 = vsub.f32 %v6778_v61, %v7767_v17  ;;  %v2290_v44 = vand.u32 4294901760, %v2289_v56  ;;  %v4789_v4 = vpop.f32.mrf.mxu1 }
 0x189   :  { %4852 = vmatprep.mubr.f32.mxu0 %v2260_v47  ;;  %4975 = vmatprep.subr.mxu0 %v8001_v51  ;;  %v2309_v62 = vsub.f32 %v6785_v12, %v7768_v38  ;;  %v6814_v15 = vsub.f32 %v1965_v36, %v6801_v34  ;;  %v6816_v45 = vand.u32 4294901760, %v1964_v58  ;;  %v1667_v0 = vadd.f32 %v4739_v28, %v6426_v24  ;;  %v1660_v48 = vpop.f32.mrf.mxu0  ;;  %v8003_v38 = vld [vmem:[#allocation33_spill] sm:$0xff] }
 0x18a   :  { %4853 = vmatmul.mubr.f32.gmra.mxu0 %v2270_v5  ;;  %4939 = vmatmul.mubr.f32.gmra.mxu1 %v6771_v23  ;;  %v1967_v47 = vmax.f32 %v1913_v20, 0.0  ;;  %v1907_v16 = vadd.f32 %v1906_v11, %v1649_v1  ;;  %v2280_v56 = vand.u32 4294901760, %v2279_v57  ;;  %v7773_v17 = vand.u32 4294901760, %v6799_v33  ;;  %v1918_v28 = vpop.f32.mrf.mxu1 }
 0x18b   :  { %8002 = vst [vmem:[#allocation63_spill] sm:$0xff] %v6816_v45  ;;  %4976 = vmatpush3.msra.mxu0 %v8001_v51  ;;  %5055 = vmatprep.subr.mxu1 %v8003_v38  ;;  %v7776_v36 = vand.u32 4294901760, %v6814_v15  ;;  %v6825_v37 = vsub.f32 %v1964_v58, %v6816_v45  ;;  %v1925_v24 = vadd.f32 %v4789_v4, %v1667_v0  ;;  %v4742_v1 = vpop.f32.mrf.mxu0  ;;  %v2310_v51 = vand.u32 4294901760, %v2309_v62  ;;  %v8004_v58 = vld [vmem:[#allocation39_spill] sm:$0xff] }
 0x18c   :  { %v1661_v5 = vadd.f32 %v1660_v48, %v6520_v63  ;;  %4941 = vmatprep.mubr.f32.mxu1 %v6816_v45  ;;  %5056 = vmatpush3.msra.mxu1 %v8003_v38  ;;  %v6830_v11 = vand.u32 4294901760, %v1967_v47  ;;  %v1966_v20 = vmax.f32 %v1907_v16, 0.0  ;;  %v2299_v57 = vsub.f32 %v6799_v33, %v7773_v17  ;;  %v4792_v16 = vpop.f32.mrf.mxu1 }
 0x18d   :  { %4855 = vmatprep.mubr.f32.mxu0 %v2280_v56  ;;  %4977 = vmatprep.subr.mxu0 %v8004_v58  ;;  %v2329_v63 = vsub.f32 %v6814_v15, %v7776_v36  ;;  %v1969_v0 = vmax.f32 %v1925_v24, 0.0  ;;  %v1679_v48 = vadd.f32 %v4742_v1, %v6449_v18  ;;  %v1672_v62 = vpop.f32.mrf.mxu0  ;;  %v7779_v23 = vand.u32 4294901760, %v6825_v37  ;;  %v8006_v36 = vld [vmem:[#allocation36_spill] sm:$0xff] }
 0x18e   :  { %v1919_v4 = vadd.f32 %v1918_v28, %v1661_v5  ;;  %4856 = vmatmul.mubr.f32.gmra.mxu0 %v2290_v44  ;;  %4942 = vmatmul.mubr.f32.gmra.mxu1 %v6801_v34  ;;  %v6842_v56 = vsub.f32 %v1967_v47, %v6830_v11  ;;  %v6844_v45 = vand.u32 4294901760, %v1966_v20  ;;  %v2300_v17 = vand.u32 4294901760, %v2299_v57  ;;  %v1930_v28 = vpop.f32.mrf.mxu1  ;;  %v8007_v47 = vld [vmem:[#allocation42_spill] sm:$0xff] }
 0x18f   :  { %4978 = vmatpush3.msra.mxu0 %v8004_v58  ;;  %5057 = vmatprep.subr.mxu1 %v8006_v36  ;;  %v6849_v24 = vand.u32 4294901760, %v1969_v0  ;;  %v1937_v44 = vadd.f32 %v4792_v16, %v1679_v48  ;;  %v1673_v5 = vadd.f32 %v1672_v62, %v6534_v27  ;;  %v2319_v58 = vsub.f32 %v6825_v37, %v7779_v23 }
 0x190   :  { %8005 = vst [vmem:[#allocation3_spill] sm:$0xff] %v6844_v45  ;;  %v1968_v18 = vmax.f32 %v1919_v4, 0.0  ;;  %5058 = vmatpush3.msra.mxu1 %v8006_v36  ;;  %4979 = vmatprep.subr.mxu0 %v8007_v47  ;;  %v7780_v1 = vand.u32 4294901760, %v6842_v56  ;;  %v6856_v57 = vsub.f32 %v1966_v20, %v6844_v45  ;;  %v2330_v62 = vand.u32 4294901760, %v2329_v63 }
 0x191   :  { %4858 = vmatprep.mubr.f32.mxu0 %v2300_v17  ;;  %4944 = vmatprep.mubr.f32.mxu1 %v6844_v45  ;;  %v6863_v4 = vsub.f32 %v1969_v0, %v6849_v24  ;;  %v1971_v48 = vmax.f32 %v1937_v44, 0.0  ;;  %v1931_v16 = vadd.f32 %v1930_v28, %v1673_v5  ;;  %v2320_v20 = vand.u32 4294901760, %v2319_v58  ;;  %v8009_v45 = vld [vmem:[#allocation40_spill] sm:$0xff]  ;;  %v8010_v28 = vld [vmem:[#allocation43_spill] sm:$0xff] }
 0x192   :  { %v6865_v27 = vand.u32 4294901760, %v1968_v18  ;;  %4859 = vmatmul.mubr.f32.gmra.mxu0 %v2310_v51  ;;  %4945 = vmatmul.mubr.f32.gmra.mxu1 %v6830_v11  ;;  %v2349_v17 = vsub.f32 %v6842_v56, %v7780_v1  ;;  %v7781_v23 = vand.u32 4294901760, %v6856_v57 }
 0x193   :  { %5059 = vmatprep.subr.mxu1 %v8009_v45  ;;  %4980 = vmatpush3.msra.mxu0 %v8007_v47  ;;  %v7784_v0 = vand.u32 4294901760, %v6863_v4  ;;  %v6878_v51 = vand.u32 4294901760, %v1971_v48  ;;  %v1970_v5 = vmax.f32 %v1931_v16, 0.0 }
 0x194   :  { %8008 = vst [vmem:[#allocation14_spill] sm:$0xff] %v6865_v27  ;;  %v6876_v44 = vsub.f32 %v1968_v18, %v6865_v27  ;;  %4947 = vmatprep.mubr.f32.mxu1 %v6865_v27  ;;  %5060 = vmatpush3.msra.mxu1 %v8009_v45  ;;  %v2339_v63 = vsub.f32 %v6856_v57, %v7781_v23  ;;  %v2350_v1 = vand.u32 4294901760, %v2349_v17 }
 0x195   :  { %4861 = vmatprep.mubr.f32.mxu0 %v2320_v20  ;;  %5061 = vmatprep.subr.mxu1 %v8010_v28  ;;  %v6887_v47 = vsub.f32 %v1971_v48, %v6878_v51  ;;  %v6889_v58 = vand.u32 4294901760, %v1970_v5  ;;  %v8012_v20 = vld [vmem:[#allocation45_spill] sm:$0xff]  ;;  %v2369_v23 = vsub.f32 %v6863_v4, %v7784_v0 }
 0x196   :  { %4862 = vmatmul.mubr.f32.gmra.mxu0 %v2330_v62  ;;  %4948 = vmatmul.mubr.f32.gmra.mxu1 %v6849_v24  ;;  %v7787_v18 = vand.u32 4294901760, %v6876_v44  ;;  %v2340_v16 = vand.u32 4294901760, %v2339_v63  ;;  %v8013_v62 = vld [vmem:[#allocation46_spill] sm:$0xff] }
 0x197   :  { %8011 = vst [vmem:[#allocation6_spill] sm:$0xff] %v6889_v58  ;;  %5062 = vmatpush3.msra.mxu1 %v8010_v28  ;;  %4981 = vmatprep.subr.mxu0 %v8012_v20  ;;  %v2388_v48 = vand.u32 4294901760, %v6887_v47  ;;  %v6900_v27 = vsub.f32 %v1970_v5, %v6889_v58  ;;  %v8014_v5 = vand.u32 4294901760, %v6511_v41 }
 0x198   :  { %4950 = vmatprep.mubr.f32.mxu1 %v6889_v58  ;;  %5063 = vmatprep.subr.mxu1 %v8013_v62  ;;  %v2359_v17 = vsub.f32 %v6876_v44, %v7787_v18  ;;  %v2370_v18 = vand.u32 4294901760, %v2369_v23 }
 0x199   :  { %4864 = vmatprep.mubr.f32.mxu0 %v2340_v16  ;;  %5064 = vmatpush3.msra.mxu1 %v8013_v62  ;;  %v2378_v0 = vand.u32 4294901760, %v6900_v27  ;;  %v2389_v58 = vsub.f32 %v6887_v47, %v2388_v48  ;;  %v8015_v16 = vld [vmem:[#allocation48_spill] sm:$0xff] }
 0x19a   :  { %4865 = vmatmul.mubr.f32.gmra.mxu0 %v2350_v1  ;;  %4951 = vmatmul.mubr.f32.gmra.mxu1 %v6878_v51  ;;  %v2360_v63 = vand.u32 4294901760, %v2359_v17  ;;  %v8016_v17 = vand.u32 4294901760, %v6498_v32 }
 0x19b   :  { %5065 = vmatprep.mubr.f32.mxu1 %v8014_v5  ;;  %4982 = vmatpush3.msra.mxu0 %v8012_v20  ;;  %v2379_v1 = vsub.f32 %v6900_v27, %v2378_v0  ;;  %v8017_v5 = vand.u32 4294901760, %v6539_v31  ;;  %v2390_v23 = vand.u32 4294901760, %v2389_v58  ;;  %v8021_v58 = vand.u32 4294901760, %v6556_v9 }
 0x19c   :  { %4867 = vmatprep.mubr.f32.mxu0 %v2360_v63  ;;  %4983 = vmatprep.subr.mxu0 %v8015_v16  ;;  %v8018_v63 = vld [vmem:[#allocation5_spill] sm:$0xff] }
 0x19d   :  { %4984 = vmatpush3.msra.mxu0 %v8015_v16  ;;  %5193 = vmatprep.subr.mxu1 %v7949_v39  ;;  %v2380_v20 = vand.u32 4294901760, %v2379_v1  ;;  %v8019_v16 = vand.u32 4294901760, %v6527_v59  ;;  %v8073_v1 = vld [vmem:[#allocation66_spill] sm:$0xff] }
 0x19e   :  { %4868 = vmatmul.mubr.f32.gmra.mxu0 %v2370_v18  ;;  %5066 = vmatmul.mubr.f32.vlgmr.msra.gmra.mxu1 %v8016_v17  ;;  %v8020_v18 = vand.u32 4294901760, %v6569_v52  ;;  %v8074_v17 = vld [vmem:[#allocation72_spill] sm:$0xff] }
 0x19f   :  { %5068 = vmatprep.mubr.f32.mxu1 %v8017_v5  ;;  %5113 = vmatprep.subr.mxu0 %v8018_v63  ;;  %v8076_v5 = vld [vmem:[#allocation57_spill] sm:$0xff] }
 0x1a0   :  { %4870 = vmatprep.mubr.f32.mxu0 %v2380_v20  ;;  %5194 = vmatpush3.msra.mxu1 %v7949_v39  ;;  %v8022_v39 = vand.u32 4294901760, %v6590_v26  ;;  %v8075_v20 = vld [vmem:[#allocation70_spill] sm:$0xff] }
 0x1a1   :  { %5195 = vmatprep.subr.mxu1 %v7950_v7 }
 0x1a2   :  { %4871 = vmatmul.mubr.f32.gmra.mxu0 %v2390_v23  ;;  %5069 = vmatmul.mubr.f32.gmra.mxu1 %v8019_v16  ;;  %v8078_v23 = vld [vmem:[#allocation2_spill] sm:$0xff]  ;;  %v8079_v16 = vld [vmem:[#allocation59_spill] sm:$0xff] }
 0x1a3   :  { %4985 = vmatprep.mubr.f32.mxu0 %v6511_v41  ;;  %5071 = vmatprep.mubr.f32.mxu1 %v8020_v18  ;;  %v8023_v41 = vld [vmem:[#allocation7_spill] sm:$0xff]  ;;  %v8080_v18 = vld [vmem:[#allocation8_spill] sm:$0xff] }
 0x1a4   :  { %5196 = vmatpush3.msra.mxu1 %v7950_v7  ;;  %v8025_v7 = vand.u32 4294901760, %v6616_v2 }
 0x1a5   :  { %5197 = vmatprep.subr.mxu1 %v7952_v43 }
 0x1a6   :  { %4986 = vmatmul.mubr.f32.vlgmr.msra.gmra.mxu0 %v6498_v32  ;;  %5072 = vmatmul.mubr.f32.gmra.mxu1 %v8021_v58  ;;  %v8024_v32 = vand.u32 4294901760, %v6577_v40  ;;  %v8081_v58 = vld [vmem:[#allocation4_spill] sm:$0xff] }
 0x1a7   :  { %5114 = vmatpush3.msra.mxu0 %v8018_v63  ;;  %4988 = vmatprep.mubr.f32.mxu0 %v6539_v31  ;;  %v8026_v31 = vld [vmem:[#allocation10_spill] sm:$0xff]  ;;  %v8077_v63 = vld [vmem:[#allocation76_spill] sm:$0xff] }
 0x1a8   :  { %5074 = vmatprep.mubr.f32.mxu1 %v8022_v39  ;;  %5115 = vmatprep.subr.mxu0 %v8023_v41  ;;  %v8082_v39 = vld [vmem:[#allocation11_spill] sm:$0xff] }
 0x1a9   :  { %5116 = vmatpush3.msra.mxu0 %v8023_v41  ;;  %5198 = vmatpush3.msra.mxu1 %v7952_v43  ;;  %v8028_v43 = vand.u32 4294901760, %v6642_v42  ;;  %v8083_v41 = vld [vmem:[#allocation61_spill] sm:$0xff] }
 0x1aa   :  { %4989 = vmatmul.mubr.f32.gmra.mxu0 %v6527_v59  ;;  %5075 = vmatmul.mubr.f32.gmra.mxu1 %v8024_v32  ;;  %v8027_v59 = vand.u32 4294901760, %v6603_v10  ;;  %v8084_v32 = vld [vmem:[#allocation63_spill] sm:$0xff] }
 0x1ab   :  { %4991 = vmatprep.mubr.f32.mxu0 %v6569_v52  ;;  %5077 = vmatprep.mubr.f32.mxu1 %v8025_v7  ;;  %v8029_v52 = vld [vmem:[#allocation13_spill] sm:$0xff]  ;;  %v8085_v7 = vld [vmem:[#allocation3_spill] sm:$0xff] }
 0x1ac   :  { %5117 = vmatprep.subr.mxu0 %v8026_v31  ;;  %5199 = vmatprep.subr.mxu1 %v7955_v35 }
 0x1ad   :  { %5118 = vmatpush3.msra.mxu0 %v8026_v31  ;;  %5200 = vmatpush3.msra.mxu1 %v7955_v35  ;;  %v8031_v35 = vand.u32 4294901760, %v6668_v55  ;;  %v8086_v31 = vld [vmem:[#allocation14_spill] sm:$0xff] }
 0x1ae   :  { %4992 = vmatmul.mubr.f32.gmra.mxu0 %v6556_v9  ;;  %5078 = vmatmul.mubr.f32.gmra.mxu1 %v8027_v59  ;;  %v8030_v9 = vand.u32 4294901760, %v6633_v53  ;;  %v8087_v59 = vld [vmem:[#allocation6_spill] sm:$0xff] }
 0x1af   :  { %4994 = vmatprep.mubr.f32.mxu0 %v6590_v26  ;;  %5080 = vmatprep.mubr.f32.mxu1 %v8028_v43  ;;  %v8032_v26 = vld [vmem:[#allocation16_spill] sm:$0xff] }
 0x1b0   :  { %5119 = vmatprep.subr.mxu0 %v8029_v52  ;;  %5201 = vmatprep.subr.mxu1 %v7960_v30 }
 0x1b1   :  { %5120 = vmatpush3.msra.mxu0 %v8029_v52  ;;  %5202 = vmatpush3.msra.mxu1 %v7960_v30  ;;  %v8034_v30 = vand.u32 4294901760, %v6699_v22 }
 0x1b2   :  { %4995 = vmatmul.mubr.f32.gmra.mxu0 %v6577_v40  ;;  %5081 = vmatmul.mubr.f32.gmra.mxu1 %v8030_v9  ;;  %v8033_v40 = vand.u32 4294901760, %v6655_v3 }
 0x1b3   :  { %4997 = vmatprep.mubr.f32.mxu0 %v6616_v2  ;;  %5083 = vmatprep.mubr.f32.mxu1 %v8031_v35  ;;  %v8035_v2 = vld [vmem:[#allocation19_spill] sm:$0xff]  ;;  %v7146_v35 = vld [vmem:[%s7559_s4] ss:$0 sm:$0xff] }
 0x1b4   :  { %5121 = vmatprep.subr.mxu0 %v8032_v26  ;;  %5203 = vmatprep.subr.mxu1 %v7970_v54 }
 0x1b5   :  { %5122 = vmatpush3.msra.mxu0 %v8032_v26  ;;  %5204 = vmatpush3.msra.mxu1 %v7970_v54  ;;  %v8037_v54 = vand.u32 4294901760, %v6721_v49 }
 0x1b6   :  { %4998 = vmatmul.mubr.f32.gmra.mxu0 %v6603_v10  ;;  %5084 = vmatmul.mubr.f32.gmra.mxu1 %v8033_v40  ;;  %v8036_v10 = vand.u32 4294901760, %v6681_v60 }
 0x1b7   :  { %5000 = vmatprep.mubr.f32.mxu0 %v6642_v42  ;;  %5086 = vmatprep.mubr.f32.mxu1 %v8034_v30  ;;  %v8038_v42 = vld [vmem:[#allocation23_spill] sm:$0xff] }
 0x1b8   :  { %5123 = vmatprep.subr.mxu0 %v8035_v2  ;;  %5205 = vmatprep.subr.mxu1 %v7980_v13 }
 0x1b9   :  { %5124 = vmatpush3.msra.mxu0 %v8035_v2  ;;  %5206 = vmatpush3.msra.mxu1 %v7980_v13  ;;  %v8041_v13 = vld [vmem:[#allocation26_spill] sm:$0xff] }
 0x1ba   :  { %5001 = vmatmul.mubr.f32.gmra.mxu0 %v6633_v53  ;;  %5087 = vmatmul.mubr.f32.gmra.mxu1 %v8036_v10  ;;  %v8039_v53 = vand.u32 4294901760, %v6707_v50 }
 0x1bb   :  { %5003 = vmatprep.mubr.f32.mxu0 %v6668_v55  ;;  %5089 = vmatprep.mubr.f32.mxu1 %v8037_v54  ;;  %v8040_v55 = vand.u32 4294901760, %v6747_v14 }
 0x1bc   :  { %5125 = vmatprep.subr.mxu0 %v8038_v42  ;;  %5207 = vmatprep.subr.mxu1 %v7985_v46 }
 0x1bd   :  { %5126 = vmatpush3.msra.mxu0 %v8038_v42  ;;  %5208 = vmatpush3.msra.mxu1 %v7985_v46  ;;  %v8044_v46 = vld [vmem:[#allocation29_spill] sm:$0xff] }
 0x1be   :  { %5004 = vmatmul.mubr.f32.gmra.mxu0 %v6655_v3  ;;  %5090 = vmatmul.mubr.f32.gmra.mxu1 %v8039_v53  ;;  %v8042_v3 = vand.u32 4294901760, %v6736_v25 }
 0x1bf   :  { %5006 = vmatprep.mubr.f32.mxu0 %v6699_v22  ;;  %5092 = vmatprep.mubr.f32.mxu1 %v8040_v55  ;;  %v8043_v22 = vand.u32 4294901760, %v6778_v61 }
 0x1c0   :  { %5127 = vmatprep.subr.mxu0 %v8041_v13  ;;  %5209 = vmatprep.subr.mxu1 %v7991_v21 }
 0x1c1   :  { %5128 = vmatpush3.msra.mxu0 %v8041_v13  ;;  %5210 = vmatpush3.msra.mxu1 %v7991_v21  ;;  %v8047_v21 = vld [vmem:[#allocation32_spill] sm:$0xff] }
 0x1c2   :  { %5007 = vmatmul.mubr.f32.gmra.mxu0 %v6681_v60  ;;  %5093 = vmatmul.mubr.f32.gmra.mxu1 %v8042_v3  ;;  %v8045_v60 = vand.u32 4294901760, %v6764_v29 }
 0x1c3   :  { %5009 = vmatprep.mubr.f32.mxu0 %v6721_v49  ;;  %5095 = vmatprep.mubr.f32.mxu1 %v8043_v22  ;;  %v8046_v49 = vand.u32 4294901760, %v6799_v33 }
 0x1c4   :  { %5129 = vmatprep.subr.mxu0 %v8044_v46  ;;  %5211 = vmatprep.subr.mxu1 %v7996_v6 }
 0x1c5   :  { %5130 = vmatpush3.msra.mxu0 %v8044_v46  ;;  %5212 = vmatpush3.msra.mxu1 %v7996_v6  ;;  %v8050_v6 = vld [vmem:[#allocation37_spill] sm:$0xff] }
 0x1c6   :  { %5010 = vmatmul.mubr.f32.gmra.mxu0 %v6707_v50  ;;  %5096 = vmatmul.mubr.f32.gmra.mxu1 %v8045_v60  ;;  %v8048_v50 = vand.u32 4294901760, %v6785_v12 }
 0x1c7   :  { %5012 = vmatprep.mubr.f32.mxu0 %v6747_v14  ;;  %5098 = vmatprep.mubr.f32.mxu1 %v8046_v49  ;;  %v8049_v14 = vand.u32 4294901760, %v6825_v37 }
 0x1c8   :  { %5131 = vmatprep.subr.mxu0 %v8047_v21  ;;  %5213 = vmatprep.subr.mxu1 %v8000_v19 }
 0x1c9   :  { %5132 = vmatpush3.msra.mxu0 %v8047_v21  ;;  %5214 = vmatpush3.msra.mxu1 %v8000_v19  ;;  %v8053_v19 = vld [vmem:[#allocation38_spill] sm:$0xff] }
 0x1ca   :  { %5013 = vmatmul.mubr.f32.gmra.mxu0 %v6736_v25  ;;  %5099 = vmatmul.mubr.f32.gmra.mxu1 %v8048_v50  ;;  %v8051_v25 = vand.u32 4294901760, %v6814_v15 }
 0x1cb   :  { %5015 = vmatprep.mubr.f32.mxu0 %v6778_v61  ;;  %5101 = vmatprep.mubr.f32.mxu1 %v8049_v14  ;;  %v8052_v61 = vand.u32 4294901760, %v6856_v57 }
 0x1cc   :  { %5133 = vmatprep.subr.mxu0 %v8050_v6  ;;  %5215 = vmatprep.subr.mxu1 %v8003_v38 }
 0x1cd   :  { %5134 = vmatpush3.msra.mxu0 %v8050_v6  ;;  %5216 = vmatpush3.msra.mxu1 %v8003_v38  ;;  %v8055_v38 = vand.u32 4294901760, %v6876_v44 }
 0x1ce   :  { %5016 = vmatmul.mubr.f32.gmra.mxu0 %v6764_v29  ;;  %5102 = vmatmul.mubr.f32.gmra.mxu1 %v8051_v25  ;;  %v8054_v29 = vand.u32 4294901760, %v6842_v56 }
 0x1cf   :  { %5018 = vmatprep.mubr.f32.mxu0 %v6799_v33  ;;  %5104 = vmatprep.mubr.f32.mxu1 %v8052_v61  ;;  %v8056_v33 = vld [vmem:[#allocation41_spill] sm:$0xff] }
 0x1d0   :  { %5135 = vmatprep.subr.mxu0 %v8053_v19  ;;  %5217 = vmatprep.subr.mxu1 %v8006_v36 }
 0x1d1   :  { %5136 = vmatpush3.msra.mxu0 %v8053_v19  ;;  %5218 = vmatpush3.msra.mxu1 %v8006_v36  ;;  %v8061_v36 = vld [vmem:[#allocation51_spill] sm:$0xff] }
 0x1d2   :  { %5019 = vmatmul.mubr.f32.gmra.mxu0 %v6785_v12  ;;  %5105 = vmatmul.mubr.f32.gmra.mxu1 %v8054_v29  ;;  %v8057_v12 = vand.u32 4294901760, %v6863_v4 }
 0x1d3   :  { %5021 = vmatprep.mubr.f32.mxu0 %v6825_v37  ;;  %5107 = vmatprep.mubr.f32.mxu1 %v8055_v38  ;;  %v8058_v37 = vld [vmem:[#allocation44_spill] sm:$0xff] }
 0x1d4   :  { %5137 = vmatprep.subr.mxu0 %v8056_v33  ;;  %5219 = vmatprep.subr.mxu1 %v8009_v45 }
 0x1d5   :  { %5138 = vmatpush3.msra.mxu0 %v8056_v33  ;;  %5220 = vmatpush3.msra.mxu1 %v8009_v45  ;;  %v8059_v45 = vld [vmem:[#allocation47_spill] sm:$0xff] }
 0x1d6   :  { %5022 = vmatmul.mubr.f32.gmra.mxu0 %v6814_v15  ;;  %5108 = vmatmul.mubr.f32.gmra.mxu1 %v8057_v12  ;;  %v8060_v15 = vld [vmem:[#allocation53_spill] sm:$0xff] }
 0x1d7   :  { %5024 = vmatprep.mubr.f32.mxu0 %v6856_v57  ;;  %5110 = vmatprep.mubr.f32.mxu1 %v2378_v0  ;;  %v8063_v57 = vld [vmem:[#allocation50_spill] sm:$0xff] }
 0x1d8   :  { %5139 = vmatprep.subr.mxu0 %v8058_v37  ;;  %5221 = vmatprep.subr.mxu1 %v8010_v28  ;;  %v8064_v0 = vld [vmem:[#allocation54_spill] sm:$0xff] }
 0x1d9   :  { %5140 = vmatpush3.msra.mxu0 %v8058_v37  ;;  %5222 = vmatpush3.msra.mxu1 %v8010_v28  ;;  %v8068_v28 = vld [vmem:[#allocation60_spill] sm:$0xff] }
 0x1da   :  { %5025 = vmatmul.mubr.f32.gmra.mxu0 %v6842_v56  ;;  %5111 = vmatmul.mubr.f32.gmra.mxu1 %v2388_v48  ;;  %v8062_v56 = vld [vmem:[#allocation49_spill] sm:$0xff]  ;;  %v8071_v48 = vld [vmem:[#allocation62_spill] sm:$0xff] }
 0x1db   :  { %5027 = vmatprep.mubr.f32.mxu0 %v6876_v44  ;;  %5225 = vmatprep.mubr.f32.mxu1 %v6500_v8  ;;  %v8067_v44 = vld [vmem:[#allocation55_spill] sm:$0xff] }
 0x1dc   :  { %5223 = vmatprep.subr.mxu1 %v8013_v62  ;;  %5141 = vmatprep.subr.mxu0 %v8059_v45 }
 0x1dd   :  { %5224 = vmatpush3.msra.mxu1 %v8013_v62  ;;  %5142 = vmatpush3.msra.mxu0 %v8059_v45  ;;  %v8072_v62 = vld [vmem:[#allocation68_spill] sm:$0xff] }
 0x1de   :  { %5028 = vmatmul.mubr.f32.gmra.mxu0 %v6863_v4  ;;  %5226 = vmatmul.mubr.f32.vlgmr.msra.gmra.mxu1 %v8060_v15  ;;  %v8065_v4 = vld [vmem:[#allocation52_spill] sm:$0xff] }
 0x1df   :  { %5030 = vmatprep.mubr.f32.mxu0 %v6900_v27  ;;  %5228 = vmatprep.mubr.f32.mxu1 %v8061_v36  ;;  %v8066_v27 = vld [vmem:[#allocation56_spill] sm:$0xff] }
 0x1e0   :  { %5143 = vmatprep.subr.mxu0 %v8062_v56 }
 0x1e1   :  { %5144 = vmatpush3.msra.mxu0 %v8062_v56 }
 0x1e2   :  { %5031 = vmatmul.mubr.f32.gmra.mxu0 %v6887_v47  ;;  %5229 = vmatmul.mubr.f32.gmra.mxu1 %v8063_v57  ;;  %v8070_v47 = vld [vmem:[#allocation64_spill] sm:$0xff] }
 0x1e3   :  { %5145 = vmatprep.mubr.f32.mxu0 %v6500_v8  ;;  %5231 = vmatprep.mubr.f32.mxu1 %v8064_v0  ;;  %v8069_v8 = vld [vmem:[#allocation58_spill] sm:$0xff] }
 0x1e6   :  { %5146 = vmatmul.mubr.f32.vlgmr.msra.gmra.mxu0 %v8060_v15  ;;  %5232 = vmatmul.mubr.f32.gmra.mxu1 %v8065_v4 }
 0x1e7   :  { %5148 = vmatprep.mubr.f32.mxu0 %v8061_v36  ;;  %5234 = vmatprep.mubr.f32.mxu1 %v8066_v27 }
 0x1ea   :  { %5149 = vmatmul.mubr.f32.gmra.mxu0 %v8063_v57  ;;  %5235 = vmatmul.mubr.f32.gmra.mxu1 %v8067_v44 }
 0x1eb   :  { %5151 = vmatprep.mubr.f32.mxu0 %v8064_v0  ;;  %5237 = vmatprep.mubr.f32.mxu1 %v8068_v28 }
 0x1ee   :  { %5152 = vmatmul.mubr.f32.gmra.mxu0 %v8065_v4  ;;  %5238 = vmatmul.mubr.f32.gmra.mxu1 %v8069_v8 }
 0x1ef   :  { %5154 = vmatprep.mubr.f32.mxu0 %v8066_v27  ;;  %5240 = vmatprep.mubr.f32.mxu1 %v8070_v47 }
 0x1f2   :  { %5155 = vmatmul.mubr.f32.gmra.mxu0 %v8067_v44  ;;  %5241 = vmatmul.mubr.f32.gmra.mxu1 %v8071_v48 }
 0x1f3   :  { %5157 = vmatprep.mubr.f32.mxu0 %v8068_v28  ;;  %5243 = vmatprep.mubr.f32.mxu1 %v8072_v62 }
 0x1f6   :  { %5158 = vmatmul.mubr.f32.gmra.mxu0 %v8069_v8  ;;  %5244 = vmatmul.mubr.f32.gmra.mxu1 %v8073_v1 }
 0x1f7   :  { %5160 = vmatprep.mubr.f32.mxu0 %v8070_v47  ;;  %5246 = vmatprep.mubr.f32.mxu1 %v8074_v17 }
 0x1fa   :  { %5161 = vmatmul.mubr.f32.gmra.mxu0 %v8071_v48  ;;  %5247 = vmatmul.mubr.f32.gmra.mxu1 %v8075_v20 }
 0x1fb   :  { %5163 = vmatprep.mubr.f32.mxu0 %v8072_v62  ;;  %5249 = vmatprep.mubr.f32.mxu1 %v8076_v5 }
 0x1fe   :  { %5164 = vmatmul.mubr.f32.gmra.mxu0 %v8073_v1  ;;  %5250 = vmatmul.mubr.f32.gmra.mxu1 %v8077_v63 }
 0x1ff   :  { %5166 = vmatprep.mubr.f32.mxu0 %v8074_v17  ;;  %5252 = vmatprep.mubr.f32.mxu1 %v8078_v23 }
 0x202   :  { %5167 = vmatmul.mubr.f32.gmra.mxu0 %v8075_v20  ;;  %5253 = vmatmul.mubr.f32.gmra.mxu1 %v8079_v16 }
 0x203   :  { %5169 = vmatprep.mubr.f32.mxu0 %v8076_v5  ;;  %5255 = vmatprep.mubr.f32.mxu1 %v8080_v18 }
 0x206   :  { %5170 = vmatmul.mubr.f32.gmra.mxu0 %v8077_v63  ;;  %5256 = vmatmul.mubr.f32.gmra.mxu1 %v8081_v58 }
 0x207   :  { %5172 = vmatprep.mubr.f32.mxu0 %v8078_v23  ;;  %5258 = vmatprep.mubr.f32.mxu1 %v8082_v39 }
 0x20a   :  { %5173 = vmatmul.mubr.f32.gmra.mxu0 %v8079_v16  ;;  %5259 = vmatmul.mubr.f32.gmra.mxu1 %v8083_v41 }
 0x20b   :  { %5175 = vmatprep.mubr.f32.mxu0 %v8080_v18  ;;  %5261 = vmatprep.mubr.f32.mxu1 %v8084_v32 }
 0x20e   :  { %5176 = vmatmul.mubr.f32.gmra.mxu0 %v8081_v58  ;;  %5262 = vmatmul.mubr.f32.gmra.mxu1 %v6801_v34 }
 0x20f   :  { %5178 = vmatprep.mubr.f32.mxu0 %v8082_v39  ;;  %5264 = vmatprep.mubr.f32.mxu1 %v8085_v7 }
 0x212   :  { %5179 = vmatmul.mubr.f32.gmra.mxu0 %v8083_v41  ;;  %5265 = vmatmul.mubr.f32.gmra.mxu1 %v6830_v11 }
 0x213   :  { %5181 = vmatprep.mubr.f32.mxu0 %v8084_v32  ;;  %5267 = vmatprep.mubr.f32.mxu1 %v8086_v31 }
 0x216   :  { %5182 = vmatmul.mubr.f32.gmra.mxu0 %v6801_v34  ;;  %5268 = vmatmul.mubr.f32.gmra.mxu1 %v6849_v24 }
 0x217   :  { %5184 = vmatprep.mubr.f32.mxu0 %v8085_v7  ;;  %5270 = vmatprep.mubr.f32.mxu1 %v8087_v59 }
 0x21a   :  { %5185 = vmatmul.mubr.f32.gmra.mxu0 %v6830_v11  ;;  %5271 = vmatmul.mubr.f32.gmra.mxu1 %v6878_v51 }
 0x21b   :  { %5187 = vmatprep.mubr.f32.mxu0 %v8086_v31  ;;  %v4907_v43 = vpop.f32.mrf.mxu1 }
 0x21d   :  { %v2543_v52 = vpop.f32.mrf.mxu1 }
 0x21e   :  { %5188 = vmatmul.mubr.f32.gmra.mxu0 %v6849_v24 }
 0x21f   :  { %5190 = vmatprep.mubr.f32.mxu0 %v8087_v59 }
 0x220   :  { %v4910_v9 = vpop.f32.mrf.mxu1 }
 0x222   :  { %5191 = vmatmul.mubr.f32.gmra.mxu0 %v6878_v51  ;;  %v2555_v34 = vpop.f32.mrf.mxu1 }
 0x224   :  { %v4827_v11 = vpop.f32.mrf.mxu0 }
 0x225   :  { %v4913_v26 = vpop.f32.mrf.mxu1  ;;  %v2093_v40 = vadd.f32 %v4827_v11, %v7146_v35 }
 0x226   :  { %v2082_v30 = vpop.f32.mrf.mxu0 }
 0x227   :  { %v2567_v2 = vpop.f32.mrf.mxu1  ;;  %v2083_v24 = vadd.f32 %v7146_v35, %v2082_v30  ;;  %v7150_v10 = vadd.f32 %v4907_v43, %v2093_v40 }
 0x229   :  { %v4830_v54 = vpop.f32.mrf.mxu0  ;;  %v4916_v42 = vpop.f32.mrf.mxu1  ;;  %v7153_v53 = vadd.f32 %v2543_v52, %v2083_v24 }
 0x22a   :  { %v2113_v51 = vadd.f32 %v4830_v54, %v7146_v35 }
 0x22b   :  { %v2102_v55 = vpop.f32.mrf.mxu0  ;;  %v2579_v13 = vpop.f32.mrf.mxu1 }
 0x22c   :  { %v2103_v3 = vadd.f32 %v7146_v35, %v2102_v55  ;;  %v7156_v22 = vadd.f32 %v4910_v9, %v2113_v51 }
 0x22d   :  { %v4833_v46 = vpop.f32.mrf.mxu0  ;;  %v4919_v60 = vpop.f32.mrf.mxu1 }
 0x22e   :  { %v2133_v49 = vadd.f32 %v4833_v46, %v7146_v35  ;;  %v7159_v21 = vadd.f32 %v2555_v34, %v2103_v3 }
 0x22f   :  { %v2122_v50 = vpop.f32.mrf.mxu0  ;;  %v2591_v14 = vpop.f32.mrf.mxu1 }
 0x230   :  { %v2123_v6 = vadd.f32 %v7146_v35, %v2122_v50  ;;  %v7162_v25 = vadd.f32 %v4913_v26, %v2133_v49 }
 0x231   :  { %v4836_v61 = vpop.f32.mrf.mxu0  ;;  %v4922_v19 = vpop.f32.mrf.mxu1 }
 0x232   :  { %v2153_v29 = vadd.f32 %v4836_v61, %v7146_v35  ;;  %v7165_v38 = vadd.f32 %v2567_v2, %v2123_v6 }
 0x233   :  { %v2142_v33 = vpop.f32.mrf.mxu0  ;;  %v2603_v12 = vpop.f32.mrf.mxu1 }
 0x234   :  { %v2143_v37 = vadd.f32 %v7146_v35, %v2142_v33  ;;  %v7168_v45 = vadd.f32 %v4916_v42, %v2153_v29 }
 0x235   :  { %v4839_v15 = vpop.f32.mrf.mxu0  ;;  %v4925_v36 = vpop.f32.mrf.mxu1 }
 0x236   :  { %v2173_v56 = vadd.f32 %v4839_v15, %v7146_v35  ;;  %v7171_v57 = vadd.f32 %v2579_v13, %v2143_v37 }
 0x237   :  { %v2162_v0 = vpop.f32.mrf.mxu0  ;;  %v2615_v4 = vpop.f32.mrf.mxu1 }
 0x238   :  { %v2163_v27 = vadd.f32 %v7146_v35, %v2162_v0  ;;  %v7174_v44 = vadd.f32 %v4919_v60, %v2173_v56 }
 0x239   :  { %v4842_v28 = vpop.f32.mrf.mxu0  ;;  %v4928_v8 = vpop.f32.mrf.mxu1 }
 0x23a   :  { %v2193_v47 = vadd.f32 %v4842_v28, %v7146_v35  ;;  %v7177_v48 = vadd.f32 %v2591_v14, %v2163_v27 }
 0x23b   :  { %v2182_v62 = vpop.f32.mrf.mxu0  ;;  %v2627_v1 = vpop.f32.mrf.mxu1 }
 0x23c   :  { %v2183_v17 = vadd.f32 %v7146_v35, %v2182_v62  ;;  %v7180_v20 = vadd.f32 %v4922_v19, %v2193_v47 }
 0x23d   :  { %v4845_v5 = vpop.f32.mrf.mxu0  ;;  %v4931_v63 = vpop.f32.mrf.mxu1 }
 0x23e   :  { %v2213_v23 = vadd.f32 %v4845_v5, %v7146_v35  ;;  %v7183_v16 = vadd.f32 %v2603_v12, %v2183_v17 }
 0x23f   :  { %v2202_v18 = vpop.f32.mrf.mxu0  ;;  %v2639_v58 = vpop.f32.mrf.mxu1 }
 0x240   :  { %v2203_v39 = vadd.f32 %v7146_v35, %v2202_v18  ;;  %v7186_v41 = vadd.f32 %v4925_v36, %v2213_v23 }
 0x242   :  { %v4848_v32 = vpop.f32.mrf.mxu0  ;;  %v4934_v7 = vpop.f32.mrf.mxu1  ;;  %v7189_v59 = vadd.f32 %v2615_v4, %v2203_v39 }
 0x243   :  { %v2233_v31 = vadd.f32 %v4848_v32, %v7146_v35 }
 0x244   :  { %v2222_v43 = vpop.f32.mrf.mxu0  ;;  %v2651_v52 = vpop.f32.mrf.mxu1 }
 0x245   :  { %v2223_v9 = vadd.f32 %v7146_v35, %v2222_v43  ;;  %v7192_v34 = vadd.f32 %v4928_v8, %v2233_v31 }
 0x246   :  { %v4851_v11 = vpop.f32.mrf.mxu0  ;;  %v4937_v26 = vpop.f32.mrf.mxu1 }
 0x247   :  { %v2253_v40 = vadd.f32 %v4851_v11, %v7146_v35  ;;  %v7195_v30 = vadd.f32 %v2627_v1, %v2223_v9 }
 0x248   :  { %v2242_v2 = vpop.f32.mrf.mxu0  ;;  %v2663_v24 = vpop.f32.mrf.mxu1 }
 0x249   :  { %v2243_v54 = vadd.f32 %v7146_v35, %v2242_v2  ;;  %v7198_v42 = vadd.f32 %v4931_v63, %v2253_v40 }
 0x24a   :  { %v4854_v51 = vpop.f32.mrf.mxu0  ;;  %v4940_v55 = vpop.f32.mrf.mxu1 }
 0x24b   :  { %v2273_v13 = vadd.f32 %v4854_v51, %v7146_v35  ;;  %v7201_v3 = vadd.f32 %v2639_v58, %v2243_v54 }
 0x24c   :  { %v2262_v46 = vpop.f32.mrf.mxu0  ;;  %v2675_v60 = vpop.f32.mrf.mxu1 }
 0x24d   :  { %8088 = vst [vmem:[#allocation65_spill] sm:$0xff] %v7201_v3  ;;  %v2263_v49 = vadd.f32 %v7146_v35, %v2262_v46  ;;  %v7204_v50 = vadd.f32 %v4934_v7, %v2273_v13 }
 0x24e   :  { %v4857_v14 = vpop.f32.mrf.mxu0  ;;  %v4943_v6 = vpop.f32.mrf.mxu1 }
 0x24f   :  { %8089 = vst [vmem:[#allocation9_spill] sm:$0xff] %v7204_v50  ;;  %v2293_v61 = vadd.f32 %v4857_v14, %v7146_v35  ;;  %v7207_v19 = vadd.f32 %v2651_v52, %v2263_v49 }
 0x250   :  { %v2282_v29 = vpop.f32.mrf.mxu0  ;;  %v2687_v33 = vpop.f32.mrf.mxu1 }
 0x251   :  { %8090 = vst [vmem:[#allocation12_spill] sm:$0xff] %v7207_v19  ;;  %v2283_v12 = vadd.f32 %v7146_v35, %v2282_v29  ;;  %v7210_v37 = vadd.f32 %v4937_v26, %v2293_v61 }
 0x252   :  { %v4860_v15 = vpop.f32.mrf.mxu0  ;;  %v4946_v36 = vpop.f32.mrf.mxu1 }
 0x253   :  { %8091 = vst [vmem:[#allocation67_spill] sm:$0xff] %v7210_v37  ;;  %v2313_v56 = vadd.f32 %v4860_v15, %v7146_v35  ;;  %v7213_v0 = vadd.f32 %v2663_v24, %v2283_v12 }
 0x254   :  { %v2302_v4 = vpop.f32.mrf.mxu0  ;;  %v2699_v27 = vpop.f32.mrf.mxu1 }
 0x255   :  { %8092 = vst [vmem:[#allocation17_spill] sm:$0xff] %v7213_v0  ;;  %v2303_v28 = vadd.f32 %v7146_v35, %v2302_v4  ;;  %v7216_v8 = vadd.f32 %v4940_v55, %v2313_v56 }
 0x256   :  { %v4863_v47 = vpop.f32.mrf.mxu0  ;;  %v4949_v62 = vpop.f32.mrf.mxu1 }
 0x257   :  { %8093 = vst [vmem:[#allocation15_spill] sm:$0xff] %v7216_v8  ;;  %v2333_v1 = vadd.f32 %v4863_v47, %v7146_v35  ;;  %v7219_v17 = vadd.f32 %v2675_v60, %v2303_v28 }
 0x258   :  { %v2322_v5 = vpop.f32.mrf.mxu0  ;;  %v2711_v63 = vpop.f32.mrf.mxu1 }
 0x259   :  { %8094 = vst [vmem:[#allocation69_spill] sm:$0xff] %v7219_v17  ;;  %v2323_v23 = vadd.f32 %v7146_v35, %v2322_v5  ;;  %v7222_v18 = vadd.f32 %v4943_v6, %v2333_v1 }
 0x25a   :  { %v4866_v58 = vpop.f32.mrf.mxu0  ;;  %v4952_v39 = vpop.f32.mrf.mxu1 }
 0x25b   :  { %8095 = vst [vmem:[#allocation18_spill] sm:$0xff] %v7222_v18  ;;  %v2353_v32 = vadd.f32 %v4866_v58, %v7146_v35  ;;  %v7225_v7 = vadd.f32 %v2687_v33, %v2323_v23 }
 0x25c   :  { %v2342_v31 = vpop.f32.mrf.mxu0  ;;  %v2723_v43 = vpop.f32.mrf.mxu1 }
 0x25d   :  { %8096 = vst [vmem:[#allocation21_spill] sm:$0xff] %v7225_v7  ;;  %v2343_v52 = vadd.f32 %v7146_v35, %v2342_v31  ;;  %v7228_v9 = vadd.f32 %v4946_v36, %v2353_v32 }
 0x25e   :  { %v4869_v11 = vpop.f32.mrf.mxu0  ;;  %v7230_v26 = vpop.f32.mrf.mxu1 }
 0x25f   :  { %8097 = vst [vmem:[#allocation71_spill] sm:$0xff] %v7228_v9  ;;  %v2373_v40 = vadd.f32 %v4869_v11, %v7146_v35  ;;  %v7233_v2 = vadd.f32 %v2699_v27, %v2343_v52 }
 0x260   :  { %v2362_v24 = vpop.f32.mrf.mxu0  ;;  %v7235_v54 = vpop.f32.mrf.mxu1 }
 0x261   :  { %8098 = vst [vmem:[#allocation20_spill] sm:$0xff] %v7233_v2  ;;  %v2363_v51 = vadd.f32 %v7146_v35, %v2362_v24  ;;  %v7238_v55 = vadd.f32 %v4949_v62, %v2373_v40 }
 0x262   :  { %v4872_v13 = vpop.f32.mrf.mxu0  ;;  %v7240_v46 = vpop.f32.mrf.mxu1 }
 0x263   :  { %8099 = vst [vmem:[#allocation24_spill] sm:$0xff] %v7238_v55  ;;  %v2393_v60 = vadd.f32 %v4872_v13, %v7146_v35  ;;  %v7243_v49 = vadd.f32 %v2711_v63, %v2363_v51 }
 0x264   :  { %v2382_v14 = vpop.f32.mrf.mxu0  ;;  %v7245_v6 = vpop.f32.mrf.mxu1 }
 0x265   :  { %8100 = vst [vmem:[#allocation73_spill] sm:$0xff] %v7243_v49  ;;  %v2383_v61 = vadd.f32 %v7146_v35, %v2382_v14  ;;  %v7248_v29 = vadd.f32 %v4952_v39, %v2393_v60 }
 0x266   :  { %v4987_v33 = vpop.f32.mrf.mxu0  ;;  %v7250_v12 = vpop.f32.mrf.mxu1 }
 0x267   :  { %8101 = vst [vmem:[#allocation22_spill] sm:$0xff] %v7248_v29  ;;  %v7252_v15 = vadd.f32 %v2723_v43, %v2383_v61 }
 0x268   :  { %v2833_v36 = vpop.f32.mrf.mxu0  ;;  %v7254_v56 = vpop.f32.mrf.mxu1 }
 0x269   :  { %8102 = vst [vmem:[#allocation27_spill] sm:$0xff] %v7252_v15 }
 0x26a   :  { %v4990_v4 = vpop.f32.mrf.mxu0  ;;  %v7256_v27 = vpop.f32.mrf.mxu1 }
 0x26c   :  { %v7258_v28 = vpop.f32.mrf.mxu0  ;;  %v7260_v47 = vpop.f32.mrf.mxu1 }
 0x26e   :  { %v7262_v62 = vpop.f32.mrf.mxu0  ;;  %v7264_v35 = vpop.f32.mrf.mxu1 }
 0x270   :  { %v7266_v1 = vpop.f32.mrf.mxu0  ;;  %v7268_v5 = vpop.f32.mrf.mxu1 }
 0x272   :  { %v7270_v63 = vpop.f32.mrf.mxu0  ;;  %v7272_v23 = vpop.f32.mrf.mxu1 }
 0x274   :  { %v7274_v58 = vpop.f32.mrf.mxu0  ;;  %v7276_v39 = vpop.f32.mrf.mxu1 }
 0x276   :  { %v7278_v32 = vpop.f32.mrf.mxu0  ;;  %v7280_v31 = vpop.f32.mrf.mxu1 }
 0x278   :  { %v7282_v43 = vpop.f32.mrf.mxu0  ;;  %v7284_v52 = vpop.f32.mrf.mxu1 }
 0x27a   :  { %v7286_v11 = vpop.f32.mrf.mxu0  ;;  %v7288_v40 = vpop.f32.mrf.mxu1 }
 0x27c   :  { %v7290_v24 = vpop.f32.mrf.mxu0  ;;  %v7292_v51 = vpop.f32.mrf.mxu1 }
 0x27d   :  { %8103 = vst [vmem:[#allocation74_spill] sm:$0xff] %v7292_v51 }
 0x27e   :  { %v7294_v13 = vpop.f32.mrf.mxu0  ;;  %v7296_v60 = vpop.f32.mrf.mxu1 }
 0x27f   :  { %8104 = vst [vmem:[#allocation25_spill] sm:$0xff] %v7296_v60 }
 0x280   :  { %v7298_v14 = vpop.f32.mrf.mxu0  ;;  %v7300_v61 = vpop.f32.mrf.mxu1 }
 0x281   :  { %8105 = vst [vmem:[#allocation30_spill] sm:$0xff] %v7300_v61 }
 0x282   :  { %v7302_v15 = vpop.f32.mrf.mxu0  ;;  %v7304_v29 = vpop.f32.mrf.mxu1 }
 0x283   :  { %8106 = vst [vmem:[#allocation75_spill] sm:$0xff] %v7304_v29 }
 0x284   :  { %v7306_v49 = vpop.f32.mrf.mxu0  ;;  %v7308_v55 = vpop.f32.mrf.mxu1 }
 0x285   :  { %8107 = vst [vmem:[#allocation28_spill] sm:$0xff] %v7308_v55 }
 0x286   :  { %v7310_v2 = vpop.f32.mrf.mxu0  ;;  %v7312_v9 = vpop.f32.mrf.mxu1 }
 0x287   :  { %8108 = vst [vmem:[#allocation34_spill] sm:$0xff] %v7312_v9 }
 0x288   :  { %v7314_v7 = vpop.f32.mrf.mxu0  ;;  %v7316_v18 = vpop.f32.mrf.mxu1 }
 0x289   :  { %8109 = vst [vmem:[#allocation31_spill] sm:$0xff] %v7314_v7  ;;  %8110 = vst [vmem:[#allocation35_spill] sm:$0xff] %v7316_v18 }
 0x28a   :  { %v7318_v17 = vpop.f32.mrf.mxu0  ;;  %v7320_v8 = vpop.f32.mrf.mxu1 }
 0x28b   :  { %8111 = vst [vmem:[#allocation33_spill] sm:$0xff] %v7318_v17  ;;  %8112 = vst [vmem:[#allocation39_spill] sm:$0xff] %v7320_v8 }
 0x28c   :  { %v7322_v0 = vpop.f32.mrf.mxu0  ;;  %v7324_v37 = vpop.f32.mrf.mxu1 }
 0x28d   :  { %8113 = vst [vmem:[#allocation36_spill] sm:$0xff] %v7322_v0  ;;  %8114 = vst [vmem:[#allocation42_spill] sm:$0xff] %v7324_v37 }
 0x28e   :  { %v7326_v29 = vpop.f32.mrf.mxu0  ;;  %v7328_v61 = vpop.f32.mrf.mxu1 }
 0x28f   :  { %8115 = vst [vmem:[#allocation40_spill] sm:$0xff] %v7326_v29  ;;  %8116 = vst [vmem:[#allocation43_spill] sm:$0xff] %v7328_v61 }
 0x290   :  { %v7330_v55 = vpop.f32.mrf.mxu0  ;;  %v7332_v19 = vpop.f32.mrf.mxu1 }
 0x291   :  { %8117 = vst [vmem:[#allocation45_spill] sm:$0xff] %v7330_v55  ;;  %8118 = vst [vmem:[#allocation46_spill] sm:$0xff] %v7332_v19 }
 0x292   :  { %v7334_v9 = vpop.f32.mrf.mxu0  ;;  %v7336_v60 = vpop.f32.mrf.mxu1 }
 0x293   :  { %8119 = vst [vmem:[#allocation48_spill] sm:$0xff] %v7334_v9  ;;  %8120 = vst [vmem:[#allocation5_spill] sm:$0xff] %v7336_v60 }
 0x294   :  { %v7338_v18 = vpop.f32.mrf.mxu0  ;;  %v7340_v17 = vpop.f32.mrf.mxu1 }
 0x295   :  { %8121 = vst [vmem:[#allocation7_spill] sm:$0xff] %v7338_v18  ;;  %8122 = vst [vmem:[#allocation10_spill] sm:$0xff] %v7340_v17 }
 0x296   :  { %v7342_v8 = vpop.f32.mrf.mxu0  ;;  %v7344_v0 = vpop.f32.mrf.mxu1 }
 0x297   :  { %8123 = vst [vmem:[#allocation13_spill] sm:$0xff] %v7342_v8  ;;  %8124 = vst [vmem:[#allocation16_spill] sm:$0xff] %v7344_v0  ;;  %v2841_v0 = vadd.f32 %v4987_v33, %v7150_v10 }
 0x298   :  { %v7346_v37 = vpop.f32.mrf.mxu0  ;;  %v7348_v29 = vpop.f32.mrf.mxu1 }
 0x299   :  { %8125 = vst [vmem:[#allocation19_spill] sm:$0xff] %v7346_v37  ;;  %8126 = vst [vmem:[#allocation23_spill] sm:$0xff] %v7348_v29  ;;  %v2834_v29 = vadd.f32 %v2833_v36, %v7153_v53  ;;  %v2869_v53 = vadd.f32 %v7262_v62, %v7162_v25  ;;  %v2883_v25 = vadd.f32 %v7270_v63, %v7168_v45 }
 0x29a   :  { %v7350_v61 = vpop.f32.mrf.mxu0  ;;  %v7352_v55 = vpop.f32.mrf.mxu1 }
 0x29b   :  { %8127 = vst [vmem:[#allocation26_spill] sm:$0xff] %v7350_v61  ;;  %8128 = vst [vmem:[#allocation29_spill] sm:$0xff] %v7352_v55  ;;  %v3140_v10 = vadd.f32 %v7235_v54, %v2834_v29 }
 0x29c   :  { %v7354_v19 = vpop.f32.mrf.mxu0  ;;  %v7356_v9 = vpop.f32.mrf.mxu1 }
 0x29d   :  { %8129 = vst [vmem:[#allocation32_spill] sm:$0xff] %v7354_v19  ;;  %8130 = vst [vmem:[#allocation37_spill] sm:$0xff] %v7356_v9  ;;  %v2855_v19 = vadd.f32 %v4990_v4, %v7156_v22  ;;  %v3148_v9 = vadd.f32 %v7230_v26, %v2841_v0  ;;  %v2862_v0 = vadd.f32 %v7266_v1, %v7165_v38 }
 0x29e   :  { %v7358_v60 = vpop.f32.mrf.mxu0  ;;  %v5227_v18 = vpop.f32.mrf.mxu1  ;;  %v3180_v38 = vadd.f32 %v7250_v12, %v2869_v53 }
 0x29f   :  { %8131 = vst [vmem:[#allocation38_spill] sm:$0xff] %v7358_v60  ;;  %v3164_v3 = vadd.f32 %v7240_v46, %v2855_v19  ;;  %v3172_v45 = vadd.f32 %v7254_v56, %v2862_v0  ;;  %v2918_v0 = vadd.f32 %v7298_v14, %v7189_v59 }
 0x2a0   :  { %v7360_v17 = vpop.f32.mrf.mxu0  ;;  %v3779_v8 = vpop.f32.mrf.mxu1 }
 0x2a1   :  { %8132 = vst [vmem:[#allocation41_spill] sm:$0xff] %v7360_v17  ;;  %v2848_v17 = vadd.f32 %v7258_v28, %v7159_v21 }
 0x2a2   :  { %v7363_v50 = vpop.f32.mrf.mxu0  ;;  %v5230_v37 = vpop.f32.mrf.mxu1 }
 0x2a3   :  { %8133 = vst [vmem:[#allocation44_spill] sm:$0xff] %v7363_v50  ;;  %v3156_v26 = vadd.f32 %v7245_v6, %v2848_v17 }
 0x2a4   :  { %v7366_v61 = vpop.f32.mrf.mxu0  ;;  %v3791_v55 = vpop.f32.mrf.mxu1 }
 0x2a5   :  { %8134 = vst [vmem:[#allocation47_spill] sm:$0xff] %v7366_v61 }
 0x2a6   :  { %v5147_v51 = vpop.f32.mrf.mxu0  ;;  %v5233_v60 = vpop.f32.mrf.mxu1 }
 0x2a7   :  { %v3513_v7 = vadd.f32 %v5147_v51, %v3148_v9 }
 0x2a8   :  { %v3506_v33 = vpop.f32.mrf.mxu0  ;;  %v3803_v50 = vpop.f32.mrf.mxu1 }
 0x2a9   :  { %v3786_v36 = vadd.f32 %v5227_v18, %v3513_v7  ;;  %v3507_v61 = vadd.f32 %v3506_v33, %v3140_v10 }
 0x2aa   :  { %v5150_v22 = vpop.f32.mrf.mxu0  ;;  %v5236_v4 = vpop.f32.mrf.mxu1 }
 0x2ab   :  { %3970 = vst [vmem:[%s7560_s5 + $0x8] sm:$0xff] %v3786_v36  ;;  %v3780_v21 = vadd.f32 %v3779_v8, %v3507_v61  ;;  %v3525_v9 = vadd.f32 %v5150_v22, %v3164_v3  ;;  %v2876_v3 = vadd.f32 %v7274_v58, %v7171_v57  ;;  %v3196_v57 = vadd.f32 %v7256_v27, %v2883_v25 }
 0x2ac   :  { %v3518_v54 = vpop.f32.mrf.mxu0  ;;  %v3815_v29 = vpop.f32.mrf.mxu1  ;;  %v2925_v36 = vadd.f32 %v7294_v13, %v7186_v41  ;;  %v2932_v25 = vadd.f32 %v7306_v49, %v7195_v30 }
 0x2ad   :  { %3969 = vst [vmem:[%s7560_s5] sm:$0xff] %v3780_v21  ;;  %v3798_v19 = vadd.f32 %v5230_v37, %v3525_v9  ;;  %v3519_v18 = vadd.f32 %v3518_v54, %v3156_v26  ;;  %v2897_v37 = vadd.f32 %v7278_v32, %v7174_v44  ;;  %v3188_v44 = vadd.f32 %v7260_v47, %v2876_v3  ;;  %v8135_v3 = vld [vmem:[#allocation65_spill] sm:$0xff] }
 0x2ae   :  { %v5153_v7 = vpop.f32.mrf.mxu0  ;;  %v5239_v46 = vpop.f32.mrf.mxu1  ;;  %v2939_v26 = vadd.f32 %v7302_v15, %v7192_v34  ;;  %v3244_v59 = vadd.f32 %v7280_v31, %v2925_v36  ;;  %v3236_v34 = vadd.f32 %v7284_v52, %v2918_v0 }
 0x2af   :  { %3972 = vst [vmem:[%s7560_s5 + $0x18] sm:$0xff] %v3798_v19  ;;  %v3792_v8 = vadd.f32 %v3791_v55, %v3519_v18  ;;  %v3537_v17 = vadd.f32 %v5153_v7, %v3180_v38  ;;  %v2890_v55 = vadd.f32 %v7282_v43, %v7177_v48  ;;  %v3212_v48 = vadd.f32 %v7264_v35, %v2897_v37  ;;  %v8138_v37 = vld [vmem:[#allocation9_spill] sm:$0xff] }
 0x2b0   :  { %v3530_v6 = vpop.f32.mrf.mxu0  ;;  %v3827_v28 = vpop.f32.mrf.mxu1  ;;  %v2953_v38 = vadd.f32 %v7310_v2, %v7198_v42  ;;  %v3260_v30 = vadd.f32 %v7288_v40, %v2939_v26  ;;  %v8137_v42 = vld [vmem:[#allocation74_spill] sm:$0xff]  ;;  %v8151_v26 = vld [vmem:[#allocation48_spill] sm:$0xff] }
 0x2b1   :  { %3971 = vst [vmem:[%s7560_s5 + $0x10] sm:$0xff] %v3792_v8  ;;  %v3810_v12 = vadd.f32 %v5233_v60, %v3537_v17  ;;  %v3531_v62 = vadd.f32 %v3530_v6, %v3172_v45  ;;  %v2911_v60 = vadd.f32 %v7286_v11, %v7180_v20  ;;  %v3204_v20 = vadd.f32 %v7268_v5, %v2890_v55  ;;  %v8136_v8 = vld [vmem:[#allocation31_spill] sm:$0xff] }
 0x2b2   :  { %v5156_v1 = vpop.f32.mrf.mxu0  ;;  %v5242_v63 = vpop.f32.mrf.mxu1  ;;  %v2946_v17 = vadd.f32 %v8136_v8, %v8135_v3  ;;  %v3252_v2 = vadd.f32 %v8137_v42, %v2932_v25  ;;  %v8156_v3 = vld [vmem:[#allocation18_spill] sm:$0xff] }
 0x2b3   :  { %3974 = vst [vmem:[%s7560_s5 + $0x28] sm:$0xff] %v3810_v12  ;;  %v3804_v56 = vadd.f32 %v3803_v50, %v3531_v62  ;;  %v3549_v58 = vadd.f32 %v5156_v1, %v3196_v57  ;;  %v2904_v50 = vadd.f32 %v7290_v24, %v7183_v16  ;;  %v3228_v16 = vadd.f32 %v7272_v23, %v2911_v60  ;;  %v8139_v12 = vld [vmem:[#allocation33_spill] sm:$0xff] }
 0x2b4   :  { %v3542_v32 = vpop.f32.mrf.mxu0  ;;  %v3839_v51 = vpop.f32.mrf.mxu1  ;;  %v2967_v62 = vadd.f32 %v8139_v12, %v8138_v37  ;;  %v8140_v1 = vld [vmem:[#allocation25_spill] sm:$0xff] }
 0x2b5   :  { %3973 = vst [vmem:[%s7560_s5 + $0x20] sm:$0xff] %v3804_v56  ;;  %v3822_v27 = vadd.f32 %v5236_v4, %v3549_v58  ;;  %v3543_v61 = vadd.f32 %v3542_v32, %v3188_v44  ;;  %v3220_v41 = vadd.f32 %v7276_v39, %v2904_v50  ;;  %v8141_v58 = vld [vmem:[#allocation12_spill] sm:$0xff]  ;;  %v8159_v37 = vld [vmem:[#allocation21_spill] sm:$0xff] }
 0x2b6   :  { %v5159_v43 = vpop.f32.mrf.mxu0  ;;  %v5245_v10 = vpop.f32.mrf.mxu1  ;;  %v8142_v44 = vld [vmem:[#allocation36_spill] sm:$0xff] }
 0x2b7   :  { %3976 = vst [vmem:[%s7560_s5 + $0x38] sm:$0xff] %v3822_v27  ;;  %v3816_v47 = vadd.f32 %v3815_v29, %v3543_v61  ;;  %v3561_v33 = vadd.f32 %v5159_v43, %v3212_v48  ;;  %v2960_v32 = vadd.f32 %v8142_v44, %v8141_v58  ;;  %v8143_v27 = vld [vmem:[#allocation30_spill] sm:$0xff]  ;;  %v8145_v50 = vld [vmem:[#allocation40_spill] sm:$0xff] }
 0x2b8   :  { %v3554_v11 = vpop.f32.mrf.mxu0  ;;  %v3851_v53 = vpop.f32.mrf.mxu1  ;;  %v3268_v61 = vadd.f32 %v8143_v27, %v2946_v17  ;;  %v8163_v58 = vld [vmem:[#allocation26_spill] sm:$0xff] }
 0x2b9   :  { %3975 = vst [vmem:[%s7560_s5 + $0x30] sm:$0xff] %v3816_v47  ;;  %v3834_v35 = vadd.f32 %v5239_v46, %v3561_v33  ;;  %v3555_v22 = vadd.f32 %v3554_v11, %v3204_v20  ;;  %v8146_v11 = vld [vmem:[#allocation75_spill] sm:$0xff] }
 0x2ba   :  { %v5162_v24 = vpop.f32.mrf.mxu0  ;;  %v5248_v4 = vpop.f32.mrf.mxu1 }
 0x2bb   :  { %3978 = vst [vmem:[%s7560_s5 + $0x48] sm:$0xff] %v3834_v35  ;;  %v3828_v5 = vadd.f32 %v3827_v28, %v3555_v22  ;;  %v3573_v21 = vadd.f32 %v5162_v24, %v3228_v16  ;;  %v8147_v22 = vld [vmem:[#allocation17_spill] sm:$0xff] }
 0x2bc   :  { %v3566_v13 = vpop.f32.mrf.mxu0  ;;  %v3863_v9 = vpop.f32.mrf.mxu1  ;;  %v8148_v16 = vld [vmem:[#allocation45_spill] sm:$0xff] }
 0x2bd   :  { %3977 = vst [vmem:[%s7560_s5 + $0x40] sm:$0xff] %v3828_v5  ;;  %v3846_v23 = vadd.f32 %v5242_v63, %v3573_v21  ;;  %v3567_v54 = vadd.f32 %v3566_v13, %v3220_v41  ;;  %v3276_v63 = vadd.f32 %v8140_v1, %v2953_v38  ;;  %v2974_v24 = vadd.f32 %v8148_v16, %v8147_v22  ;;  %v8149_v5 = vld [vmem:[#allocation28_spill] sm:$0xff] }
 0x2be   :  { %v5165_v14 = vpop.f32.mrf.mxu0  ;;  %v5251_v29 = vpop.f32.mrf.mxu1  ;;  %v3284_v21 = vadd.f32 %v8149_v5, %v2960_v32 }
 0x2bf   :  { %3980 = vst [vmem:[%s7560_s5 + $0x58] sm:$0xff] %v3846_v23  ;;  %v3840_v39 = vadd.f32 %v3839_v51, %v3567_v54  ;;  %v3585_v19 = vadd.f32 %v5165_v14, %v3244_v59  ;;  %v8152_v14 = vld [vmem:[#allocation34_spill] sm:$0xff] }
 0x2c0   :  { %v3578_v15 = vpop.f32.mrf.mxu0  ;;  %v3875_v18 = vpop.f32.mrf.mxu1 }
 0x2c1   :  { %3979 = vst [vmem:[%s7560_s5 + $0x50] sm:$0xff] %v3840_v39  ;;  %v3858_v31 = vadd.f32 %v5245_v10, %v3585_v19  ;;  %v3579_v7 = vadd.f32 %v3578_v15, %v3236_v34  ;;  %v8144_v10 = vld [vmem:[#allocation67_spill] sm:$0xff]  ;;  %v8153_v19 = vld [vmem:[#allocation69_spill] sm:$0xff] }
 0x2c2   :  { %v5168_v49 = vpop.f32.mrf.mxu0  ;;  %v5254_v46 = vpop.f32.mrf.mxu1  ;;  %v2981_v47 = vadd.f32 %v8145_v50, %v8144_v10  ;;  %v8154_v34 = vld [vmem:[#allocation7_spill] sm:$0xff]  ;;  %v8166_v10 = vld [vmem:[#allocation32_spill] sm:$0xff] }
 0x2c3   :  { %3982 = vst [vmem:[%s7560_s5 + $0x68] sm:$0xff] %v3858_v31  ;;  %v3852_v52 = vadd.f32 %v3851_v53, %v3579_v7  ;;  %v3597_v45 = vadd.f32 %v5168_v49, %v3260_v30  ;;  %v3292_v53 = vadd.f32 %v8146_v11, %v2967_v62  ;;  %v2988_v15 = vadd.f32 %v8154_v34, %v8153_v19  ;;  %v8155_v31 = vld [vmem:[#allocation35_spill] sm:$0xff]  ;;  %v8176_v34 = vld [vmem:[#allocation16_spill] sm:$0xff] }
 0x2c4   :  { %v3590_v6 = vpop.f32.mrf.mxu0  ;;  %v3887_v28 = vpop.f32.mrf.mxu1  ;;  %v3300_v7 = vadd.f32 %v8155_v31, %v2974_v24  ;;  %v8170_v24 = vld [vmem:[#allocation5_spill] sm:$0xff]  ;;  %v8177_v31 = vld [vmem:[#allocation27_spill] sm:$0xff] }
 0x2c5   :  { %3981 = vst [vmem:[%s7560_s5 + $0x60] sm:$0xff] %v3852_v52  ;;  %v3870_v40 = vadd.f32 %v5248_v4, %v3597_v45  ;;  %v3591_v57 = vadd.f32 %v3590_v6, %v3252_v2  ;;  %v8158_v45 = vld [vmem:[#allocation39_spill] sm:$0xff] }
 0x2c6   :  { %v5171_v55 = vpop.f32.mrf.mxu0  ;;  %v5257_v56 = vpop.f32.mrf.mxu1 }
 0x2c7   :  { %3984 = vst [vmem:[%s7560_s5 + $0x78] sm:$0xff] %v3870_v40  ;;  %v3864_v51 = vadd.f32 %v3863_v9, %v3591_v57  ;;  %v3609_v60 = vadd.f32 %v5171_v55, %v3276_v63  ;;  %v8150_v9 = vld [vmem:[#allocation15_spill] sm:$0xff]  ;;  %v8161_v57 = vld [vmem:[#allocation42_spill] sm:$0xff] }
 0x2c8   :  { %v3602_v48 = vpop.f32.mrf.mxu0  ;;  %v3899_v43 = vpop.f32.mrf.mxu1  ;;  %v2995_v23 = vadd.f32 %v8151_v26, %v8150_v9  ;;  %v3316_v1 = vadd.f32 %v8161_v57, %v2988_v15  ;;  %v8162_v55 = vld [vmem:[#allocation71_spill] sm:$0xff] }
 0x2c9   :  { %3983 = vst [vmem:[%s7560_s5 + $0x70] sm:$0xff] %v3864_v51  ;;  %v3882_v33 = vadd.f32 %v5251_v29, %v3609_v60  ;;  %v3603_v20 = vadd.f32 %v3602_v48, %v3268_v61  ;;  %v3308_v29 = vadd.f32 %v8152_v14, %v2981_v47  ;;  %v8164_v51 = vld [vmem:[#allocation43_spill] sm:$0xff]  ;;  %v8165_v48 = vld [vmem:[#allocation20_spill] sm:$0xff]  ;;  %v8174_v14 = vld [vmem:[#allocation22_spill] sm:$0xff] }
 0x2ca   :  { %v5174_v36 = vpop.f32.mrf.mxu0  ;;  %v5260_v35 = vpop.f32.mrf.mxu1  ;;  %v3324_v42 = vadd.f32 %v8158_v45, %v2995_v23  ;;  %v8173_v23 = vld [vmem:[#allocation10_spill] sm:$0xff] }
 0x2cb   :  { %3986 = vst [vmem:[%s7560_s5 + $0x88] sm:$0xff] %v3882_v33  ;;  %v3876_v4 = vadd.f32 %v3875_v18, %v3603_v20  ;;  %v3621_v0 = vadd.f32 %v5174_v36, %v3292_v53  ;;  %v8167_v33 = vld [vmem:[#allocation46_spill] sm:$0xff]  ;;  %v8168_v53 = vld [vmem:[#allocation24_spill] sm:$0xff] }
 0x2cc   :  { %v3614_v41 = vpop.f32.mrf.mxu0  ;;  %v3911_v13 = vpop.f32.mrf.mxu1  ;;  %v8169_v36 = vld [vmem:[#allocation38_spill] sm:$0xff] }
 0x2cd   :  { %3985 = vst [vmem:[%s7560_s5 + $0x80] sm:$0xff] %v3876_v4  ;;  %v3894_v54 = vadd.f32 %v5254_v46, %v3621_v0  ;;  %v3615_v59 = vadd.f32 %v3614_v41, %v3284_v21  ;;  %v8157_v46 = vld [vmem:[#allocation13_spill] sm:$0xff] }
 0x2ce   :  { %v5177_v25 = vpop.f32.mrf.mxu0  ;;  %v5263_v39 = vpop.f32.mrf.mxu1  ;;  %v3009_v8 = vadd.f32 %v8157_v46, %v8156_v3  ;;  %v8171_v21 = vld [vmem:[#allocation73_spill] sm:$0xff]  ;;  %v8179_v46 = vld [vmem:[#allocation23_spill] sm:$0xff] }
 0x2cf   :  { %3988 = vst [vmem:[%s7560_s5 + $0x98] sm:$0xff] %v3894_v54  ;;  %v3888_v18 = vadd.f32 %v3887_v28, %v3615_v59  ;;  %v3633_v38 = vadd.f32 %v5177_v25, %v3308_v29  ;;  %v8160_v28 = vld [vmem:[#allocation19_spill] sm:$0xff]  ;;  %v8172_v41 = vld [vmem:[#allocation41_spill] sm:$0xff]  ;;  %v8175_v29 = vld [vmem:[#allocation44_spill] sm:$0xff] }
 0x2d0   :  { %v3626_v30 = vpop.f32.mrf.mxu0  ;;  %v3923_v49 = vpop.f32.mrf.mxu1  ;;  %v3002_v12 = vadd.f32 %v8160_v28, %v8159_v37  ;;  %v3340_v60 = vadd.f32 %v8164_v51, %v3009_v8  ;;  %v3051_v25 = vadd.f32 %v8175_v29, %v8174_v14 }
 0x2d1   :  { %3987 = vst [vmem:[%s7560_s5 + $0x90] sm:$0xff] %v3888_v18  ;;  %v3906_v17 = vadd.f32 %v5257_v56, %v3633_v38  ;;  %v3627_v52 = vadd.f32 %v3626_v30, %v3300_v7  ;;  %v3023_v56 = vadd.f32 %v8163_v58, %v8162_v55  ;;  %v8178_v7 = vld [vmem:[#allocation47_spill] sm:$0xff] }
 0x2d2   :  { %v5180_v2 = vpop.f32.mrf.mxu0  ;;  %v5266_v6 = vpop.f32.mrf.mxu1  ;;  %v3332_v20 = vadd.f32 %v8167_v33, %v3002_v12  ;;  %v3044_v30 = vadd.f32 %v8178_v7, %v8177_v31 }
 0x2d3   :  { %3990 = vst [vmem:[%s7560_s5 + $0xa8] sm:$0xff] %v3906_v17  ;;  %v3900_v62 = vadd.f32 %v3899_v43, %v3627_v52  ;;  %v3645_v40 = vadd.f32 %v5180_v2, %v3324_v42  ;;  %v3016_v43 = vadd.f32 %v8166_v10, %v8165_v48  ;;  %v3356_v4 = vadd.f32 %v8170_v24, %v3023_v56  ;;  %v8180_v42 = vld [vmem:[#allocation29_spill] sm:$0xff] }
 0x2d4   :  { %v3638_v63 = vpop.f32.mrf.mxu0  ;;  %v3935_v27 = vpop.f32.mrf.mxu1  ;;  %v3388_v2 = vadd.f32 %v8180_v42, %v3051_v25 }
 0x2d5   :  { %3989 = vst [vmem:[%s7560_s5 + $0xa0] sm:$0xff] %v3900_v62  ;;  %v3918_v44 = vadd.f32 %v5260_v35, %v3645_v40  ;;  %v3639_v32 = vadd.f32 %v3638_v63, %v3316_v1  ;;  %v3037_v35 = vadd.f32 %v8169_v36, %v8168_v53  ;;  %v3348_v54 = vadd.f32 %v8173_v23, %v3016_v43  ;;  %v8181_v62 = vld [vmem:[#allocation37_spill] sm:$0xff] }
 0x2d6   :  { %v5183_v61 = vpop.f32.mrf.mxu0  ;;  %v5269_v0 = vpop.f32.mrf.mxu1  ;;  %v3380_v40 = vadd.f32 %v8181_v62, %v3044_v30 }
 0x2d7   :  { %3992 = vst [vmem:[%s7560_s5 + $0xb8] sm:$0xff] %v3918_v44  ;;  %v3912_v50 = vadd.f32 %v3911_v13, %v3639_v32  ;;  %v3657_v47 = vadd.f32 %v5183_v61, %v3340_v60  ;;  %v3030_v13 = vadd.f32 %v8172_v41, %v8171_v21  ;;  %v3372_v15 = vadd.f32 %v8176_v34, %v3037_v35 }
 0x2d8   :  { %v3650_v11 = vpop.f32.mrf.mxu0  ;;  %v3947_v18 = vpop.f32.mrf.mxu1 }
 0x2d9   :  { %3991 = vst [vmem:[%s7560_s5 + $0xb0] sm:$0xff] %v3912_v50  ;;  %v3930_v22 = vadd.f32 %v5263_v39, %v3657_v47  ;;  %v3651_v16 = vadd.f32 %v3650_v11, %v3332_v20  ;;  %v3364_v8 = vadd.f32 %v8179_v46, %v3030_v13 }
 0x2da   :  { %v5186_v5 = vpop.f32.mrf.mxu0 }
 0x2db   :  { %3994 = vst [vmem:[%s7560_s5 + $0xc8] sm:$0xff] %v3930_v22  ;;  %v3924_v9 = vadd.f32 %v3923_v49, %v3651_v16  ;;  %v3669_v26 = vadd.f32 %v5186_v5, %v3356_v4 }
 0x2dc   :  { %v3662_v59 = vpop.f32.mrf.mxu0 }
 0x2dd   :  { %3993 = vst [vmem:[%s7560_s5 + $0xc0] sm:$0xff] %v3924_v9  ;;  %v3942_v39 = vadd.f32 %v5266_v6, %v3669_v26  ;;  %v3663_v19 = vadd.f32 %v3662_v59, %v3348_v54  ;;  %v5272_v6 = vpop.f32.mrf.mxu1 }
 0x2de   :  { %v5189_v38 = vpop.f32.mrf.mxu0 }
 0x2df   :  { %3996 = vst [vmem:[%s7560_s5 + $0xd8] sm:$0xff] %v3942_v39  ;;  %v3936_v49 = vadd.f32 %v3935_v27, %v3663_v19  ;;  %v3681_v3 = vadd.f32 %v5189_v38, %v3372_v15  ;;  %v3959_v55 = vpop.f32.mrf.mxu1 }
 0x2e0   :  { %v3674_v17 = vpop.f32.mrf.mxu0 }
 0x2e1   :  { %3995 = vst [vmem:[%s7560_s5 + $0xd0] sm:$0xff] %v3936_v49  ;;  %v3954_v52 = vadd.f32 %v5269_v0, %v3681_v3  ;;  %v3675_v45 = vadd.f32 %v3674_v17, %v3364_v8 }
 0x2e2   :  { %v5192_v37 = vpop.f32.mrf.mxu0 }
 0x2e3   :  { %3998 = vst [vmem:[%s7560_s5 + $0xe8] sm:$0xff] %v3954_v52  ;;  %v3948_v28 = vadd.f32 %v3947_v18, %v3675_v45  ;;  %v3693_v12 = vadd.f32 %v5192_v37, %v3388_v2 }
 0x2e4   :  { %v3686_v57 = vpop.f32.mrf.mxu0 }
 0x2e5   :  { %3997 = vst [vmem:[%s7560_s5 + $0xe0] sm:$0xff] %v3948_v28  ;;  %v3966_v1 = vadd.f32 %v5272_v6, %v3693_v12  ;;  %v3687_v63 = vadd.f32 %v3686_v57, %v3380_v40 }
 0x2e7   :  { %4000 = vst [vmem:[%s7560_s5 + $0xf8] sm:$0xff] %v3966_v1  ;;  %v3960_v58 = vadd.f32 %v3959_v55, %v3687_v63 }
 0x2e9   :  { %3999 = vst [vmem:[%s7560_s5 + $0xf0] sm:$0xff] %v3960_v58 }

</bundles_post_ra>
